<compile_context>
chip_gen: v7x
topology: tpu7x:2x2x1
jax: 0.10.0
libtpu: 0.0.40
codegen_flags: <defaults>
</compile_context>

<pallas_src>
import functools

import jax
import jax.numpy as jnp
from jax import lax
from jax.experimental import pallas as pl
from jax.experimental.pallas import tpu as pltpu

# ---- config (mirrors the PyTorch config dict) --------------------------------
S = 124                      # nodes per graph (fixed by reshape(-1, 124*out_dim))
C = 32                       # input_dim == hidden == out_dim
H = 2                        # n_heads
N_LAYERS = 2                 # n_layers
N_CLASS = 8                  # n_class
INTER_CONNECT = True         # inter_connect
EXTRA_DIM = 2 * C * N_LAYERS                 # == 128 (lane-dense!)
TMP_DIM = 124 + EXTRA_DIM if INTER_CONNECT else 124
EPS = 1e-5                   # BatchNorm1d eps
NEG_SLOPE = 0.2              # SuperGAT leaky_relu negative_slope
PROJ_W = 128                 # padded width of the augmented projection matmul
NEG_INF = -1e30


# ---- kernel 1: fused [SuperGATConv('MX', concat=False) + BN(eval) + ReLU] x 2
#                + per-graph [global_mean_pool | global_max_pool] per layer -----
def fused_layers_kernel(x_ref, adjb_ref, w_ref, wl_ref, scale_ref, shift_ref,
                        y_ref, inter_ref, *, G):
    # x_ref     : (G, S, C)  f32   node features for G graphs
    # adjb_ref  : (G, S, S)  bf16  additive mask: 0 (edge j->i) / -1e30 (no edge)
    # w_ref     : (L, C, 128) bf16 cols [0:H*C) = W per head, [H*C:H*C+H) = W_h @ att_r_h
    # wl_ref    : (L, H, C)  bf16  row h = W_h @ att_l_h  (gives e_l as a lane row)
    # scale_ref : (L, 1, C)  f32   BN(eval)+head-mean fold:  out = acc*scale + shift
    # shift_ref : (L, 1, C)  f32
    # y_ref     : (G, S, C)  f32   final node features
    # inter_ref : (G, 1, 2*C*L)    [mean_l0 | max_l0 | mean_l1 | max_l1]  (128 lanes)
    ones_col = jnp.ones((S, 1), jnp.bfloat16)        # row-sum column for the denom fold

    @pl.loop(0, G)                                   # dynamic loop bounds live ranges
    def _per_graph(g):
        xg = x_ref[g]                                # (S, C) f32
        pooled = []
        for l in range(N_LAYERS):                    # static unroll over layers
            xg_b = xg.astype(jnp.bfloat16)
            # projection for all heads + folded e_r columns (one bf16 MXU matmul)
            h_aug = jnp.dot(xg_b, w_ref[l],
                            preferred_element_type=jnp.float32)          # (S, 128)
            # e_l for both heads as lane rows (one small bf16 matmul)
            e_l_rows = lax.dot_general(wl_ref[l], xg_b, (((1,), (1,)), ((), ())),
                                       preferred_element_type=jnp.float32)  # (H, S)
            acc = jnp.zeros((S, C), jnp.float32)
            for hd in range(H):                      # static unroll over heads
                hf_b = h_aug[:, hd * C:(hd + 1) * C].astype(jnp.bfloat16)  # (S, C)
                e_r = h_aug[:, H * C + hd:H * C + hd + 1]                  # (S, 1)
                e_l = e_l_rows[hd:hd + 1, :]                               # (1, S)
                # MX attention logits: logits[i, j] = h_i . h_j  (bf16 in, f32 acc)
                logits = lax.dot_general(hf_b, hf_b, (((1,), (1,)), ((), ())),
                                         preferred_element_type=jnp.float32)  # (S, S)
                raw = (e_l + e_r) * jax.nn.sigmoid(logits)
                raw = jnp.maximum(raw, NEG_SLOPE * raw)          # leaky_relu, no select
                raw = raw + adjb_ref[g].astype(jnp.float32)      # additive mask (re-read,
                                                                 # not hoisted -> less spill)
                # softmax over incoming edges j of each target i
                m = jnp.max(raw, axis=1, keepdims=True)
                p_b = jnp.exp((raw - m).astype(jnp.bfloat16))    # masked entries -> 0
                # numerator + denominator both on the MXU; normalize with EUP recip
                num = jnp.dot(p_b, hf_b, preferred_element_type=jnp.float32)    # (S, C)
                den = jnp.dot(p_b, ones_col, preferred_element_type=jnp.float32)  # (S, 1)
                acc = acc + num * pl.reciprocal(den, approx=True)
            # head mean + conv bias + BatchNorm1d(eval) folded into scale/shift, then ReLU
            out = jnp.maximum(acc * scale_ref[l] + shift_ref[l], 0.0)        # (S, C)
            pooled.append(jnp.mean(out, axis=0, keepdims=True))              # (1, C)
            pooled.append(jnp.max(out, axis=0, keepdims=True))               # (1, C)
            xg = out                                  # stays resident in VMEM
        y_ref[g] = xg
        # one lane-dense 128-wide store instead of four masked 32-lane stores
        inter_ref[g] = jnp.concatenate(pooled, axis=1)


def fused_supergat_layers(x, adj_bias, prep, G):
    B = x.shape[0]
    assert B % G == 0
    num_steps = B // G
    node_map = lambda i: (i, 0, 0)
    par_map = lambda i: (0, 0, 0)
    in_specs = [
        pl.BlockSpec((G, S, C), node_map),                    # x
        pl.BlockSpec((G, S, S), node_map),                    # additive adj mask (bf16)
        pl.BlockSpec((N_LAYERS, C, PROJ_W), par_map),         # augmented W (bf16)
        pl.BlockSpec((N_LAYERS, H, C), par_map),              # W @ att_l per head (bf16)
        pl.BlockSpec((N_LAYERS, 1, C), par_map),              # folded BN scale
        pl.BlockSpec((N_LAYERS, 1, C), par_map),              # folded BN shift
    ]
    out_specs = (
        pl.BlockSpec((G, S, C), node_map),                    # final node features
        pl.BlockSpec((G, 1, EXTRA_DIM), node_map),            # lane-dense pooled inter
    )
    out_shape = (
        jax.ShapeDtypeStruct((B, S, C), jnp.float32),
        jax.ShapeDtypeStruct((B, 1, EXTRA_DIM), jnp.float32),
    )
    kernel = functools.partial(fused_layers_kernel, G=G)
    return pl.pallas_call(
        kernel,
        out_shape=out_shape,
        grid=(num_steps,),
        in_specs=in_specs,
        out_specs=out_specs,
        compiler_params=pltpu.CompilerParams(
            dimension_semantics=("parallel",)),               # even steps -> v7x megacore
    )(x, adj_bias, prep["w_aug"], prep["wl"], prep["scale"], prep["shift"])


# ---- kernel 2: MLP head: linear(124*C -> 124) (BN1 folded in, bf16 weights)
#                + relu + [h | relu(inter)] @ w2 + b2, class dim padded to 128 ---
def head_kernel(xf_ref, inter_ref, w1_ref, shift1_ref, w2a_ref, w2b_ref, b2_ref, o_ref):
    xf = xf_ref[...].astype(jnp.bfloat16)                     # (B, S*C)
    h = jnp.dot(xf, w1_ref[...],
                preferred_element_type=jnp.float32) + shift1_ref[...]   # linear + bn1
    h = jnp.maximum(h, 0.0).astype(jnp.bfloat16)              # relu on first 124 cols
    z = jnp.maximum(inter_ref[...], 0.0).astype(jnp.bfloat16)  # relu on inter columns
    o_ref[...] = (jnp.dot(h, w2a_ref[...], preferred_element_type=jnp.float32)
                  + jnp.dot(z, w2b_ref[...], preferred_element_type=jnp.float32)
                  + b2_ref[...])                              # (B, 128) lane-dense


def mlp_head(xf, inter, prep):
    B = xf.shape[0]
    full = lambda shape: pl.BlockSpec(shape, lambda i: (0,) * len(shape))
    in_specs = [
        full((B, S * C)),
        full((B, EXTRA_DIM)),
        full((S * C, 124)),        # bf16, BN1 scale folded in
        full((1, 124)),            # folded BN1 shift
        full((124, 128)),          # bf16 w2[:124], class dim zero-padded to 128
        full((EXTRA_DIM, 128)),    # bf16 w2[124:], class dim zero-padded to 128
        full((1, 128)),            # b2 zero-padded
    ]
    return pl.pallas_call(
        head_kernel,
        out_shape=jax.ShapeDtypeStruct((B, 128), jnp.float32),
        grid=(1,),
        in_specs=in_specs,
        out_specs=full((B, 128)),
    )(xf, inter, prep["w1"], prep["shift1"], prep["w2a"], prep["w2b"], prep["b2"])


# ---- parameter preparation (algebraic folds; tiny, runs inside jit) ------------
def prepare_params(params):
    w_aug_l, wl_l, scale_l, shift_l = [], [], [], []
    for lp in params["layers"]:
        w = lp["w"]                                           # (C, H*C)
        w_heads = w.reshape(C, H, C)
        w_r = jnp.einsum("khc,hc->kh", w_heads, lp["att_r"])  # (C, H): e_r columns
        w_aug = jnp.zeros((C, PROJ_W), jnp.float32)
        w_aug = w_aug.at[:, :H * C].set(w).at[:, H * C:H * C + H].set(w_r)
        wl = jnp.einsum("khc,hc->hk", w_heads, lp["att_l"])   # (H, C): e_l rows
        inv = lax.rsqrt(lp["rvar"] + EPS)
        scale = lp["gamma"] * inv / H                         # head-mean + BN scale
        shift = (lp["bias"] - lp["rmean"]) * lp["gamma"] * inv + lp["beta"]
        w_aug_l.append(w_aug.astype(jnp.bfloat16))
        wl_l.append(wl.astype(jnp.bfloat16))
        scale_l.append(scale); shift_l.append(shift)

    inv1 = lax.rsqrt(params["v1"] + EPS)
    scale1 = params["g1"] * inv1                              # (1, 124)
    w1_eff = (params["w1"] * scale1).astype(jnp.bfloat16)     # BN1 scale folded, bf16
    shift1 = (params["b1"] - params["m1"]) * scale1 + params["bt1"]
    w2a = jnp.zeros((124, 128), jnp.float32).at[:, :N_CLASS].set(
        params["w2a"]).astype(jnp.bfloat16)
    w2b = jnp.zeros((EXTRA_DIM, 128), jnp.float32).at[:, :N_CLASS].set(
        params["w2b"]).astype(jnp.bfloat16)
    b2 = jnp.zeros((1, 128), jnp.float32).at[:, :N_CLASS].set(params["b2"])
    return dict(w_aug=jnp.stack(w_aug_l), wl=jnp.stack(wl_l),
                scale=jnp.stack(scale_l), shift=jnp.stack(shift_l),
                w1=w1_eff, shift1=shift1, w2a=w2a, w2b=w2b, b2=b2)


# ---- parameter init (deterministic, shapes from XaiModel.__init__) -------------
def init_params(key):
    params = {"layers": []}
    for _ in range(N_LAYERS):
        key, *ks = jax.random.split(key, 9)
        params["layers"].append(dict(
            w=jax.random.normal(ks[0], (C, H * C), jnp.float32) / jnp.sqrt(C * 1.0),
            att_l=jax.random.normal(ks[1], (H, C), jnp.float32) * 0.1,
            att_r=jax.random.normal(ks[2], (H, C), jnp.float32) * 0.1,
            bias=jax.random.normal(ks[3], (1, C), jnp.float32) * 0.05,
            gamma=jax.random.uniform(ks[4], (1, C), jnp.float32, 0.5, 1.5),
            beta=jax.random.normal(ks[5], (1, C), jnp.float32) * 0.1,
            rmean=jax.random.normal(ks[6], (1, C), jnp.float32) * 0.1,
            rvar=jax.random.uniform(ks[7], (1, C), jnp.float32, 0.5, 1.5),
        ))
    key, *ks = jax.random.split(key, 9)
    params["w1"] = jax.random.normal(ks[0], (S * C, 124), jnp.float32) / jnp.sqrt(S * C * 1.0)
    params["b1"] = jax.random.normal(ks[1], (1, 124), jnp.float32) * 0.05
    params["g1"] = jax.random.uniform(ks[2], (1, 124), jnp.float32, 0.5, 1.5)
    params["bt1"] = jax.random.normal(ks[3], (1, 124), jnp.float32) * 0.1
    params["m1"] = jax.random.normal(ks[4], (1, 124), jnp.float32) * 0.1
    params["v1"] = jax.random.uniform(ks[5], (1, 124), jnp.float32, 0.5, 1.5)
    w2 = jax.random.normal(ks[6], (TMP_DIM, N_CLASS), jnp.float32) / jnp.sqrt(TMP_DIM * 1.0)
    params["w2a"], params["w2b"] = w2[:124], w2[124:]
    params["b2"] = jax.random.normal(ks[7], (1, N_CLASS), jnp.float32) * 0.05
    return params


def make_adj_bias(adj_bool):
    # ship the adjacency as a bf16 additive mask: 0 where edge, -1e30 otherwise
    return jnp.where(adj_bool, 0.0, NEG_INF).astype(jnp.bfloat16)


# ---- full forward (glue in plain JAX; hot paths in the two kernels) ------------
@jax.jit
def xai_model_forward(x, adj_bias, params):
    B = x.shape[0]
    G = 2 if B % 2 == 0 else 1                  # even step count for v7x megacore
    prep = prepare_params(params)
    y, inter = fused_supergat_layers(x, adj_bias, prep, G)
    xf = y.reshape(B, S * C)                    # contiguous reshape: free in HBM
    inter2 = inter.reshape(B, EXTRA_DIM)        # already in torch cat order
    logits_pad = mlp_head(xf, inter2, prep)     # (B, 128)
    return logits_pad[:, :N_CLASS]


if __name__ == "__main__":
    B = 4
    key = jax.random.PRNGKey(0)
    kx, kadj, kp = jax.random.split(key, 3)
    x = jax.random.normal(kx, (B, S, C), jnp.float32)
    adj = jax.random.bernoulli(kadj, 0.15, (B, S, S))
    adj = jnp.logical_or(adj, jnp.eye(S, dtype=bool)[None])   # self-loops
    adj_bias = make_adj_bias(adj)
    params = init_params(kp)

    out = jax.block_until_ready(xai_model_forward(x, adj_bias, params))
    assert out.shape == (B, N_CLASS) and out.dtype == jnp.float32
    assert bool(jnp.all(jnp.isfinite(out)))
    print("KERNEL_OK")
</pallas_src>

<mosaic_0001>
module attributes {stable_mosaic.version = 11 : i64} {
  func.func @fused_layers_kernel(%arg0: i32, %arg1: memref<2x124x32xf32, #tpu.memory_space<vmem>>, %arg2: memref<2x124x124xbf16, #tpu.memory_space<vmem>>, %arg3: memref<2x32x128xbf16, #tpu.memory_space<vmem>>, %arg4: memref<2x2x32xbf16, #tpu.memory_space<vmem>>, %arg5: memref<2x1x32xf32, #tpu.memory_space<vmem>>, %arg6: memref<2x1x32xf32, #tpu.memory_space<vmem>>, %arg7: memref<2x124x32xf32, #tpu.memory_space<vmem>>, %arg8: memref<2x1x128xf32, #tpu.memory_space<vmem>>) attributes {dimension_semantics = [#tpu.dimension_semantics<parallel>], iteration_bounds = array<i64: 2>, scalar_prefetch = 0 : i64, scratch_operands = 0 : i64, tpu.core_type = #tpu.core_type<tc>, window_params = [{transform_indices = @transform_0, window_bounds = array<i64: 2, 124, 32>}, {transform_indices = @transform_1, window_bounds = array<i64: 2, 124, 124>}, {pipeline_mode = #tpu.pipeline_mode<synchronous>, transform_indices = @transform_2, window_bounds = array<i64: 2, 32, 128>}, {pipeline_mode = #tpu.pipeline_mode<synchronous>, transform_indices = @transform_3, window_bounds = array<i64: 2, 2, 32>}, {pipeline_mode = #tpu.pipeline_mode<synchronous>, transform_indices = @transform_4, window_bounds = array<i64: 2, 1, 32>}, {pipeline_mode = #tpu.pipeline_mode<synchronous>, transform_indices = @transform_5, window_bounds = array<i64: 2, 1, 32>}, {transform_indices = @transform_6, window_bounds = array<i64: 2, 124, 32>}, {transform_indices = @transform_7, window_bounds = array<i64: 2, 1, 128>}]} {
    %cst = arith.constant 1.000000e+00 : bf16
    %0 = vector.broadcast %cst : bf16 to vector<124x1xbf16>
    %c0_i32 = arith.constant 0 : i32
    %c2_i32 = arith.constant 2 : i32
    %1 = arith.addi %c0_i32, %c2_i32 : i32
    %c1_i32 = arith.constant 1 : i32
    scf.for %arg9 = %c0_i32 to %1 step %c1_i32  : i32 {
      %c1_i32_1 = arith.constant 1 : i32
      %2 = arith.muli %arg9, %c1_i32_1 : i32
      %c0_i32_2 = arith.constant 0 : i32
      %3 = arith.addi %c0_i32_2, %2 : i32
      %4 = arith.index_cast %3 : i32 to index
      %c0 = arith.constant 0 : index
      %c0_3 = arith.constant 0 : index
      %5 = vector.load %arg1[%4, %c0, %c0_3] : memref<2x124x32xf32, #tpu.memory_space<vmem>>, vector<1x124x32xf32>
      %6 = vector.shape_cast %5 : vector<1x124x32xf32> to vector<124x32xf32>
      %7 = arith.truncf %6 : vector<124x32xf32> to vector<124x32xbf16>
      %c0_4 = arith.constant 0 : index
      %c0_5 = arith.constant 0 : index
      %c0_6 = arith.constant 0 : index
      %8 = vector.load %arg3[%c0_4, %c0_5, %c0_6] : memref<2x32x128xbf16, #tpu.memory_space<vmem>>, vector<1x32x128xbf16>
      %9 = vector.shape_cast %8 : vector<1x32x128xbf16> to vector<32x128xbf16>
      %cst_7 = arith.constant dense<0.000000e+00> : vector<124x128xf32>
      %10 = tpu.matmul %7, %9, %cst_7 {dimension_numbers = #tpu.dot_dimension_numbers<[1], [0], [0], [1], [0, 0, 1, 1], [], []>} : vector<124x32xbf16>, vector<32x128xbf16>, vector<124x128xf32> -> vector<124x128xf32>
      %c0_8 = arith.constant 0 : index
      %c0_9 = arith.constant 0 : index
      %c0_10 = arith.constant 0 : index
      %11 = vector.load %arg4[%c0_8, %c0_9, %c0_10] : memref<2x2x32xbf16, #tpu.memory_space<vmem>>, vector<1x2x32xbf16>
      %12 = vector.shape_cast %11 : vector<1x2x32xbf16> to vector<2x32xbf16>
      %cst_11 = arith.constant dense<0.000000e+00> : vector<2x124xf32>
      %13 = tpu.matmul %12, %7, %cst_11 {dimension_numbers = #tpu.dot_dimension_numbers<[1], [1], [0], [0], [0, 0, 1, 0], [], []>} : vector<2x32xbf16>, vector<124x32xbf16>, vector<2x124xf32> -> vector<2x124xf32>
      %cst_12 = arith.constant 0.000000e+00 : f32
      %14 = vector.broadcast %cst_12 : f32 to vector<124x32xf32>
      %15 = vector.extract_strided_slice %10 {offsets = [0, 0], sizes = [124, 32], strides = [1, 1]} : vector<124x128xf32> to vector<124x32xf32>
      %16 = arith.truncf %15 : vector<124x32xf32> to vector<124x32xbf16>
      %17 = vector.extract_strided_slice %10 {offsets = [0, 64], sizes = [124, 1], strides = [1, 1]} : vector<124x128xf32> to vector<124x1xf32>
      %18 = vector.extract_strided_slice %13 {offsets = [0, 0], sizes = [1, 124], strides = [1, 1]} : vector<2x124xf32> to vector<1x124xf32>
      %cst_13 = arith.constant dense<0.000000e+00> : vector<124x124xf32>
      %19 = tpu.matmul %16, %16, %cst_13 {dimension_numbers = #tpu.dot_dimension_numbers<[1], [1], [0], [0], [0, 0, 1, 0], [], []>} : vector<124x32xbf16>, vector<124x32xbf16>, vector<124x124xf32> -> vector<124x124xf32>
      %20 = vector.broadcast %18 : vector<1x124xf32> to vector<124x124xf32>
      %21 = vector.broadcast %17 : vector<124x1xf32> to vector<124x124xf32>
      %22 = arith.addf %20, %21 : vector<124x124xf32>
      %23 = arith.negf %19 : vector<124x124xf32>
      %24 = math.exp %23 : vector<124x124xf32>
      %cst_14 = arith.constant 1.000000e+00 : f32
      %25 = vector.broadcast %cst_14 : f32 to vector<124x124xf32>
      %26 = arith.addf %25, %24 : vector<124x124xf32>
      %27 = arith.divf %25, %26 : vector<124x124xf32>
      %28 = arith.mulf %22, %27 : vector<124x124xf32>
      %cst_15 = arith.constant 2.000000e-01 : f32
      %29 = vector.broadcast %cst_15 : f32 to vector<124x124xf32>
      %30 = arith.mulf %29, %28 : vector<124x124xf32>
      %31 = arith.maximumf %28, %30 : vector<124x124xf32>
      %32 = arith.index_cast %3 : i32 to index
      %c0_16 = arith.constant 0 : index
      %c0_17 = arith.constant 0 : index
      %33 = vector.load %arg2[%32, %c0_16, %c0_17] : memref<2x124x124xbf16, #tpu.memory_space<vmem>>, vector<1x124x124xbf16>
      %34 = vector.shape_cast %33 : vector<1x124x124xbf16> to vector<124x124xbf16>
      %35 = arith.extf %34 : vector<124x124xbf16> to vector<124x124xf32>
      %36 = arith.addf %31, %35 : vector<124x124xf32>
      %cst_18 = arith.constant dense<0xFF800000> : vector<124xf32>
      %37 = vector.multi_reduction <maximumf>, %36, %cst_18 [1] : vector<124x124xf32> to vector<124xf32>
      %38 = vector.shape_cast %37 : vector<124xf32> to vector<124x1xf32>
      %39 = vector.broadcast %38 : vector<124x1xf32> to vector<124x124xf32>
      %40 = arith.subf %36, %39 : vector<124x124xf32>
      %41 = arith.truncf %40 : vector<124x124xf32> to vector<124x124xbf16>
      %42 = math.exp %41 : vector<124x124xbf16>
      %cst_19 = arith.constant dense<0.000000e+00> : vector<124x32xf32>
      %43 = tpu.matmul %42, %16, %cst_19 {dimension_numbers = #tpu.dot_dimension_numbers<[1], [0], [0], [1], [0, 0, 1, 1], [], []>} : vector<124x124xbf16>, vector<124x32xbf16>, vector<124x32xf32> -> vector<124x32xf32>
      %cst_20 = arith.constant dense<0.000000e+00> : vector<124x1xf32>
      %44 = tpu.matmul %42, %0, %cst_20 {dimension_numbers = #tpu.dot_dimension_numbers<[1], [0], [0], [1], [0, 0, 1, 1], [], []>} : vector<124x124xbf16>, vector<124x1xbf16>, vector<124x1xf32> -> vector<124x1xf32>
      %45 = tpu.reciprocal %44 {approx = true} : vector<124x1xf32> -> vector<124x1xf32>
      %46 = vector.broadcast %45 : vector<124x1xf32> to vector<124x32xf32>
      %47 = arith.mulf %43, %46 : vector<124x32xf32>
      %48 = arith.addf %14, %47 : vector<124x32xf32>
      %49 = vector.extract_strided_slice %10 {offsets = [0, 32], sizes = [124, 32], strides = [1, 1]} : vector<124x128xf32> to vector<124x32xf32>
      %50 = arith.truncf %49 : vector<124x32xf32> to vector<124x32xbf16>
      %51 = vector.extract_strided_slice %10 {offsets = [0, 65], sizes = [124, 1], strides = [1, 1]} : vector<124x128xf32> to vector<124x1xf32>
      %52 = vector.extract_strided_slice %13 {offsets = [1, 0], sizes = [1, 124], strides = [1, 1]} : vector<2x124xf32> to vector<1x124xf32>
      %cst_21 = arith.constant dense<0.000000e+00> : vector<124x124xf32>
      %53 = tpu.matmul %50, %50, %cst_21 {dimension_numbers = #tpu.dot_dimension_numbers<[1], [1], [0], [0], [0, 0, 1, 0], [], []>} : vector<124x32xbf16>, vector<124x32xbf16>, vector<124x124xf32> -> vector<124x124xf32>
      %54 = vector.broadcast %52 : vector<1x124xf32> to vector<124x124xf32>
      %55 = vector.broadcast %51 : vector<124x1xf32> to vector<124x124xf32>
      %56 = arith.addf %54, %55 : vector<124x124xf32>
      %57 = arith.negf %53 : vector<124x124xf32>
      %58 = math.exp %57 : vector<124x124xf32>
      %cst_22 = arith.constant 1.000000e+00 : f32
      %59 = vector.broadcast %cst_22 : f32 to vector<124x124xf32>
      %60 = arith.addf %59, %58 : vector<124x124xf32>
      %61 = arith.divf %59, %60 : vector<124x124xf32>
      %62 = arith.mulf %56, %61 : vector<124x124xf32>
      %cst_23 = arith.constant 2.000000e-01 : f32
      %63 = vector.broadcast %cst_23 : f32 to vector<124x124xf32>
      %64 = arith.mulf %63, %62 : vector<124x124xf32>
      %65 = arith.maximumf %62, %64 : vector<124x124xf32>
      %66 = arith.index_cast %3 : i32 to index
      %c0_24 = arith.constant 0 : index
      %c0_25 = arith.constant 0 : index
      %67 = vector.load %arg2[%66, %c0_24, %c0_25] : memref<2x124x124xbf16, #tpu.memory_space<vmem>>, vector<1x124x124xbf16>
      %68 = vector.shape_cast %67 : vector<1x124x124xbf16> to vector<124x124xbf16>
      %69 = arith.extf %68 : vector<124x124xbf16> to vector<124x124xf32>
      %70 = arith.addf %65, %69 : vector<124x124xf32>
      %cst_26 = arith.constant dense<0xFF800000> : vector<124xf32>
      %71 = vector.multi_reduction <maximumf>, %70, %cst_26 [1] : vector<124x124xf32> to vector<124xf32>
      %72 = vector.shape_cast %71 : vector<124xf32> to vector<124x1xf32>
      %73 = vector.broadcast %72 : vector<124x1xf32> to vector<124x124xf32>
      %74 = arith.subf %70, %73 : vector<124x124xf32>
      %75 = arith.truncf %74 : vector<124x124xf32> to vector<124x124xbf16>
      %76 = math.exp %75 : vector<124x124xbf16>
      %cst_27 = arith.constant dense<0.000000e+00> : vector<124x32xf32>
      %77 = tpu.matmul %76, %50, %cst_27 {dimension_numbers = #tpu.dot_dimension_numbers<[1], [0], [0], [1], [0, 0, 1, 1], [], []>} : vector<124x124xbf16>, vector<124x32xbf16>, vector<124x32xf32> -> vector<124x32xf32>
      %cst_28 = arith.constant dense<0.000000e+00> : vector<124x1xf32>
      %78 = tpu.matmul %76, %0, %cst_28 {dimension_numbers = #tpu.dot_dimension_numbers<[1], [0], [0], [1], [0, 0, 1, 1], [], []>} : vector<124x124xbf16>, vector<124x1xbf16>, vector<124x1xf32> -> vector<124x1xf32>
      %79 = tpu.reciprocal %78 {approx = true} : vector<124x1xf32> -> vector<124x1xf32>
      %80 = vector.broadcast %79 : vector<124x1xf32> to vector<124x32xf32>
      %81 = arith.mulf %77, %80 : vector<124x32xf32>
      %82 = arith.addf %48, %81 : vector<124x32xf32>
      %c0_29 = arith.constant 0 : index
      %c0_30 = arith.constant 0 : index
      %c0_31 = arith.constant 0 : index
      %83 = vector.load %arg5[%c0_29, %c0_30, %c0_31] : memref<2x1x32xf32, #tpu.memory_space<vmem>>, vector<1x1x32xf32>
      %84 = vector.shape_cast %83 : vector<1x1x32xf32> to vector<1x32xf32>
      %85 = vector.broadcast %84 : vector<1x32xf32> to vector<124x32xf32>
      %86 = arith.mulf %82, %85 : vector<124x32xf32>
      %c0_32 = arith.constant 0 : index
      %c0_33 = arith.constant 0 : index
      %c0_34 = arith.constant 0 : index
      %87 = vector.load %arg6[%c0_32, %c0_33, %c0_34] : memref<2x1x32xf32, #tpu.memory_space<vmem>>, vector<1x1x32xf32>
      %88 = vector.shape_cast %87 : vector<1x1x32xf32> to vector<1x32xf32>
      %89 = vector.broadcast %88 : vector<1x32xf32> to vector<124x32xf32>
      %90 = arith.addf %86, %89 : vector<124x32xf32>
      %cst_35 = arith.constant 0.000000e+00 : f32
      %91 = vector.broadcast %cst_35 : f32 to vector<124x32xf32>
      %92 = arith.maximumf %90, %91 : vector<124x32xf32>
      %cst_36 = arith.constant dense<0.000000e+00> : vector<32xf32>
      %93 = vector.multi_reduction <add>, %92, %cst_36 [0] : vector<124x32xf32> to vector<32xf32>
      %94 = vector.shape_cast %93 : vector<32xf32> to vector<1x32xf32>
      %cst_37 = arith.constant 1.240000e+02 : f32
      %95 = vector.broadcast %cst_37 : f32 to vector<1x32xf32>
      %96 = arith.divf %94, %95 : vector<1x32xf32>
      %cst_38 = arith.constant dense<0xFF800000> : vector<32xf32>
      %97 = vector.multi_reduction <maximumf>, %92, %cst_38 [0] : vector<124x32xf32> to vector<32xf32>
      %98 = vector.shape_cast %97 : vector<32xf32> to vector<1x32xf32>
      %99 = arith.truncf %92 : vector<124x32xf32> to vector<124x32xbf16>
      %c1 = arith.constant 1 : index
      %c0_39 = arith.constant 0 : index
      %c0_40 = arith.constant 0 : index
      %100 = vector.load %arg3[%c1, %c0_39, %c0_40] : memref<2x32x128xbf16, #tpu.memory_space<vmem>>, vector<1x32x128xbf16>
      %101 = vector.shape_cast %100 : vector<1x32x128xbf16> to vector<32x128xbf16>
      %cst_41 = arith.constant dense<0.000000e+00> : vector<124x128xf32>
      %102 = tpu.matmul %99, %101, %cst_41 {dimension_numbers = #tpu.dot_dimension_numbers<[1], [0], [0], [1], [0, 0, 1, 1], [], []>} : vector<124x32xbf16>, vector<32x128xbf16>, vector<124x128xf32> -> vector<124x128xf32>
      %c1_42 = arith.constant 1 : index
      %c0_43 = arith.constant 0 : index
      %c0_44 = arith.constant 0 : index
      %103 = vector.load %arg4[%c1_42, %c0_43, %c0_44] : memref<2x2x32xbf16, #tpu.memory_space<vmem>>, vector<1x2x32xbf16>
      %104 = vector.shape_cast %103 : vector<1x2x32xbf16> to vector<2x32xbf16>
      %cst_45 = arith.constant dense<0.000000e+00> : vector<2x124xf32>
      %105 = tpu.matmul %104, %99, %cst_45 {dimension_numbers = #tpu.dot_dimension_numbers<[1], [1], [0], [0], [0, 0, 1, 0], [], []>} : vector<2x32xbf16>, vector<124x32xbf16>, vector<2x124xf32> -> vector<2x124xf32>
      %cst_46 = arith.constant 0.000000e+00 : f32
      %106 = vector.broadcast %cst_46 : f32 to vector<124x32xf32>
      %107 = vector.extract_strided_slice %102 {offsets = [0, 0], sizes = [124, 32], strides = [1, 1]} : vector<124x128xf32> to vector<124x32xf32>
      %108 = arith.truncf %107 : vector<124x32xf32> to vector<124x32xbf16>
      %109 = vector.extract_strided_slice %102 {offsets = [0, 64], sizes = [124, 1], strides = [1, 1]} : vector<124x128xf32> to vector<124x1xf32>
      %110 = vector.extract_strided_slice %105 {offsets = [0, 0], sizes = [1, 124], strides = [1, 1]} : vector<2x124xf32> to vector<1x124xf32>
      %cst_47 = arith.constant dense<0.000000e+00> : vector<124x124xf32>
      %111 = tpu.matmul %108, %108, %cst_47 {dimension_numbers = #tpu.dot_dimension_numbers<[1], [1], [0], [0], [0, 0, 1, 0], [], []>} : vector<124x32xbf16>, vector<124x32xbf16>, vector<124x124xf32> -> vector<124x124xf32>
      %112 = vector.broadcast %110 : vector<1x124xf32> to vector<124x124xf32>
      %113 = vector.broadcast %109 : vector<124x1xf32> to vector<124x124xf32>
      %114 = arith.addf %112, %113 : vector<124x124xf32>
      %115 = arith.negf %111 : vector<124x124xf32>
      %116 = math.exp %115 : vector<124x124xf32>
      %cst_48 = arith.constant 1.000000e+00 : f32
      %117 = vector.broadcast %cst_48 : f32 to vector<124x124xf32>
      %118 = arith.addf %117, %116 : vector<124x124xf32>
      %119 = arith.divf %117, %118 : vector<124x124xf32>
      %120 = arith.mulf %114, %119 : vector<124x124xf32>
      %cst_49 = arith.constant 2.000000e-01 : f32
      %121 = vector.broadcast %cst_49 : f32 to vector<124x124xf32>
      %122 = arith.mulf %121, %120 : vector<124x124xf32>
      %123 = arith.maximumf %120, %122 : vector<124x124xf32>
      %124 = arith.index_cast %3 : i32 to index
      %c0_50 = arith.constant 0 : index
      %c0_51 = arith.constant 0 : index
      %125 = vector.load %arg2[%124, %c0_50, %c0_51] : memref<2x124x124xbf16, #tpu.memory_space<vmem>>, vector<1x124x124xbf16>
      %126 = vector.shape_cast %125 : vector<1x124x124xbf16> to vector<124x124xbf16>
      %127 = arith.extf %126 : vector<124x124xbf16> to vector<124x124xf32>
      %128 = arith.addf %123, %127 : vector<124x124xf32>
      %cst_52 = arith.constant dense<0xFF800000> : vector<124xf32>
      %129 = vector.multi_reduction <maximumf>, %128, %cst_52 [1] : vector<124x124xf32> to vector<124xf32>
      %130 = vector.shape_cast %129 : vector<124xf32> to vector<124x1xf32>
      %131 = vector.broadcast %130 : vector<124x1xf32> to vector<124x124xf32>
      %132 = arith.subf %128, %131 : vector<124x124xf32>
      %133 = arith.truncf %132 : vector<124x124xf32> to vector<124x124xbf16>
      %134 = math.exp %133 : vector<124x124xbf16>
      %cst_53 = arith.constant dense<0.000000e+00> : vector<124x32xf32>
      %135 = tpu.matmul %134, %108, %cst_53 {dimension_numbers = #tpu.dot_dimension_numbers<[1], [0], [0], [1], [0, 0, 1, 1], [], []>} : vector<124x124xbf16>, vector<124x32xbf16>, vector<124x32xf32> -> vector<124x32xf32>
      %cst_54 = arith.constant dense<0.000000e+00> : vector<124x1xf32>
      %136 = tpu.matmul %134, %0, %cst_54 {dimension_numbers = #tpu.dot_dimension_numbers<[1], [0], [0], [1], [0, 0, 1, 1], [], []>} : vector<124x124xbf16>, vector<124x1xbf16>, vector<124x1xf32> -> vector<124x1xf32>
      %137 = tpu.reciprocal %136 {approx = true} : vector<124x1xf32> -> vector<124x1xf32>
      %138 = vector.broadcast %137 : vector<124x1xf32> to vector<124x32xf32>
      %139 = arith.mulf %135, %138 : vector<124x32xf32>
      %140 = arith.addf %106, %139 : vector<124x32xf32>
      %141 = vector.extract_strided_slice %102 {offsets = [0, 32], sizes = [124, 32], strides = [1, 1]} : vector<124x128xf32> to vector<124x32xf32>
      %142 = arith.truncf %141 : vector<124x32xf32> to vector<124x32xbf16>
      %143 = vector.extract_strided_slice %102 {offsets = [0, 65], sizes = [124, 1], strides = [1, 1]} : vector<124x128xf32> to vector<124x1xf32>
      %144 = vector.extract_strided_slice %105 {offsets = [1, 0], sizes = [1, 124], strides = [1, 1]} : vector<2x124xf32> to vector<1x124xf32>
      %cst_55 = arith.constant dense<0.000000e+00> : vector<124x124xf32>
      %145 = tpu.matmul %142, %142, %cst_55 {dimension_numbers = #tpu.dot_dimension_numbers<[1], [1], [0], [0], [0, 0, 1, 0], [], []>} : vector<124x32xbf16>, vector<124x32xbf16>, vector<124x124xf32> -> vector<124x124xf32>
      %146 = vector.broadcast %144 : vector<1x124xf32> to vector<124x124xf32>
      %147 = vector.broadcast %143 : vector<124x1xf32> to vector<124x124xf32>
      %148 = arith.addf %146, %147 : vector<124x124xf32>
      %149 = arith.negf %145 : vector<124x124xf32>
      %150 = math.exp %149 : vector<124x124xf32>
      %cst_56 = arith.constant 1.000000e+00 : f32
      %151 = vector.broadcast %cst_56 : f32 to vector<124x124xf32>
      %152 = arith.addf %151, %150 : vector<124x124xf32>
      %153 = arith.divf %151, %152 : vector<124x124xf32>
      %154 = arith.mulf %148, %153 : vector<124x124xf32>
      %cst_57 = arith.constant 2.000000e-01 : f32
      %155 = vector.broadcast %cst_57 : f32 to vector<124x124xf32>
      %156 = arith.mulf %155, %154 : vector<124x124xf32>
      %157 = arith.maximumf %154, %156 : vector<124x124xf32>
      %158 = arith.index_cast %3 : i32 to index
      %c0_58 = arith.constant 0 : index
      %c0_59 = arith.constant 0 : index
      %159 = vector.load %arg2[%158, %c0_58, %c0_59] : memref<2x124x124xbf16, #tpu.memory_space<vmem>>, vector<1x124x124xbf16>
      %160 = vector.shape_cast %159 : vector<1x124x124xbf16> to vector<124x124xbf16>
      %161 = arith.extf %160 : vector<124x124xbf16> to vector<124x124xf32>
      %162 = arith.addf %157, %161 : vector<124x124xf32>
      %cst_60 = arith.constant dense<0xFF800000> : vector<124xf32>
      %163 = vector.multi_reduction <maximumf>, %162, %cst_60 [1] : vector<124x124xf32> to vector<124xf32>
      %164 = vector.shape_cast %163 : vector<124xf32> to vector<124x1xf32>
      %165 = vector.broadcast %164 : vector<124x1xf32> to vector<124x124xf32>
      %166 = arith.subf %162, %165 : vector<124x124xf32>
      %167 = arith.truncf %166 : vector<124x124xf32> to vector<124x124xbf16>
      %168 = math.exp %167 : vector<124x124xbf16>
      %cst_61 = arith.constant dense<0.000000e+00> : vector<124x32xf32>
      %169 = tpu.matmul %168, %142, %cst_61 {dimension_numbers = #tpu.dot_dimension_numbers<[1], [0], [0], [1], [0, 0, 1, 1], [], []>} : vector<124x124xbf16>, vector<124x32xbf16>, vector<124x32xf32> -> vector<124x32xf32>
      %cst_62 = arith.constant dense<0.000000e+00> : vector<124x1xf32>
      %170 = tpu.matmul %168, %0, %cst_62 {dimension_numbers = #tpu.dot_dimension_numbers<[1], [0], [0], [1], [0, 0, 1, 1], [], []>} : vector<124x124xbf16>, vector<124x1xbf16>, vector<124x1xf32> -> vector<124x1xf32>
      %171 = tpu.reciprocal %170 {approx = true} : vector<124x1xf32> -> vector<124x1xf32>
      %172 = vector.broadcast %171 : vector<124x1xf32> to vector<124x32xf32>
      %173 = arith.mulf %169, %172 : vector<124x32xf32>
      %174 = arith.addf %140, %173 : vector<124x32xf32>
      %c1_63 = arith.constant 1 : index
      %c0_64 = arith.constant 0 : index
      %c0_65 = arith.constant 0 : index
      %175 = vector.load %arg5[%c1_63, %c0_64, %c0_65] : memref<2x1x32xf32, #tpu.memory_space<vmem>>, vector<1x1x32xf32>
      %176 = vector.shape_cast %175 : vector<1x1x32xf32> to vector<1x32xf32>
      %177 = vector.broadcast %176 : vector<1x32xf32> to vector<124x32xf32>
      %178 = arith.mulf %174, %177 : vector<124x32xf32>
      %c1_66 = arith.constant 1 : index
      %c0_67 = arith.constant 0 : index
      %c0_68 = arith.constant 0 : index
      %179 = vector.load %arg6[%c1_66, %c0_67, %c0_68] : memref<2x1x32xf32, #tpu.memory_space<vmem>>, vector<1x1x32xf32>
      %180 = vector.shape_cast %179 : vector<1x1x32xf32> to vector<1x32xf32>
      %181 = vector.broadcast %180 : vector<1x32xf32> to vector<124x32xf32>
      %182 = arith.addf %178, %181 : vector<124x32xf32>
      %cst_69 = arith.constant 0.000000e+00 : f32
      %183 = vector.broadcast %cst_69 : f32 to vector<124x32xf32>
      %184 = arith.maximumf %182, %183 : vector<124x32xf32>
      %cst_70 = arith.constant dense<0.000000e+00> : vector<32xf32>
      %185 = vector.multi_reduction <add>, %184, %cst_70 [0] : vector<124x32xf32> to vector<32xf32>
      %186 = vector.shape_cast %185 : vector<32xf32> to vector<1x32xf32>
      %cst_71 = arith.constant 1.240000e+02 : f32
      %187 = vector.broadcast %cst_71 : f32 to vector<1x32xf32>
      %188 = arith.divf %186, %187 : vector<1x32xf32>
      %cst_72 = arith.constant dense<0xFF800000> : vector<32xf32>
      %189 = vector.multi_reduction <maximumf>, %184, %cst_72 [0] : vector<124x32xf32> to vector<32xf32>
      %190 = vector.shape_cast %189 : vector<32xf32> to vector<1x32xf32>
      %191 = arith.index_cast %3 : i32 to index
      %c0_73 = arith.constant 0 : index
      %c0_74 = arith.constant 0 : index
      %192 = vector.load %arg7[%191, %c0_73, %c0_74] : memref<2x124x32xf32, #tpu.memory_space<vmem>>, vector<1x124x32xf32>
      %193 = vector.shape_cast %192 : vector<1x124x32xf32> to vector<124x32xf32>
      %194 = vector.shape_cast %184 : vector<124x32xf32> to vector<1x124x32xf32>
      tpu.vector_store %arg7[%191, %c0_73, %c0_74], %194 {strides = array<i32>} : memref<2x124x32xf32, #tpu.memory_space<vmem>>, vector<1x124x32xf32>,
      %195 = tpu.concatenate %96, %98, %188, %190 in 1 : vector<1x32xf32>, vector<1x32xf32>, vector<1x32xf32>, vector<1x32xf32> -> vector<1x128xf32>
      %196 = arith.index_cast %3 : i32 to index
      %c0_75 = arith.constant 0 : index
      %c0_76 = arith.constant 0 : index
      %197 = vector.load %arg8[%196, %c0_75, %c0_76] : memref<2x1x128xf32, #tpu.memory_space<vmem>>, vector<1x1x128xf32>
      %198 = vector.shape_cast %197 : vector<1x1x128xf32> to vector<1x128xf32>
      %199 = vector.shape_cast %195 : vector<1x128xf32> to vector<1x1x128xf32>
      tpu.vector_store %arg8[%196, %c0_75, %c0_76], %199 {strides = array<i32>} : memref<2x1x128xf32, #tpu.memory_space<vmem>>, vector<1x1x128xf32>,
    }
    %c2_i32_0 = arith.constant 2 : i32
    return
  }
  func.func @transform_0(%arg0: i32) -> (i32, i32, i32) {
    %c0_i32 = arith.constant 0 : i32
    %c0_i32_0 = arith.constant 0 : i32
    %c0_i32_1 = arith.constant 0 : i32
    return %arg0, %c0_i32, %c0_i32_0 : i32, i32, i32
  }
  func.func @transform_1(%arg0: i32) -> (i32, i32, i32) {
    %c0_i32 = arith.constant 0 : i32
    %c0_i32_0 = arith.constant 0 : i32
    %c0_i32_1 = arith.constant 0 : i32
    return %arg0, %c0_i32, %c0_i32_0 : i32, i32, i32
  }
  func.func @transform_2(%arg0: i32) -> (i32, i32, i32) {
    %c0_i32 = arith.constant 0 : i32
    %c0_i32_0 = arith.constant 0 : i32
    %c0_i32_1 = arith.constant 0 : i32
    %c0_i32_2 = arith.constant 0 : i32
    return %c0_i32, %c0_i32_0, %c0_i32_1 : i32, i32, i32
  }
  func.func @transform_3(%arg0: i32) -> (i32, i32, i32) {
    %c0_i32 = arith.constant 0 : i32
    %c0_i32_0 = arith.constant 0 : i32
    %c0_i32_1 = arith.constant 0 : i32
    %c0_i32_2 = arith.constant 0 : i32
    return %c0_i32, %c0_i32_0, %c0_i32_1 : i32, i32, i32
  }
  func.func @transform_4(%arg0: i32) -> (i32, i32, i32) {
    %c0_i32 = arith.constant 0 : i32
    %c0_i32_0 = arith.constant 0 : i32
    %c0_i32_1 = arith.constant 0 : i32
    %c0_i32_2 = arith.constant 0 : i32
    return %c0_i32, %c0_i32_0, %c0_i32_1 : i32, i32, i32
  }
  func.func @transform_5(%arg0: i32) -> (i32, i32, i32) {
    %c0_i32 = arith.constant 0 : i32
    %c0_i32_0 = arith.constant 0 : i32
    %c0_i32_1 = arith.constant 0 : i32
    %c0_i32_2 = arith.constant 0 : i32
    return %c0_i32, %c0_i32_0, %c0_i32_1 : i32, i32, i32
  }
  func.func @transform_6(%arg0: i32) -> (i32, i32, i32) {
    %c0_i32 = arith.constant 0 : i32
    %c0_i32_0 = arith.constant 0 : i32
    %c0_i32_1 = arith.constant 0 : i32
    return %arg0, %c0_i32, %c0_i32_0 : i32, i32, i32
  }
  func.func @transform_7(%arg0: i32) -> (i32, i32, i32) {
    %c0_i32 = arith.constant 0 : i32
    %c0_i32_0 = arith.constant 0 : i32
    %c0_i32_1 = arith.constant 0 : i32
    return %arg0, %c0_i32, %c0_i32_0 : i32, i32, i32
  }
}

module attributes {stable_mosaic.version = 11 : i64} {
  func.func @head_kernel(%arg0: i32, %arg1: memref<4x3968xf32, #tpu.memory_space<vmem>>, %arg2: memref<4x128xf32, #tpu.memory_space<vmem>>, %arg3: memref<3968x124xbf16, #tpu.memory_space<vmem>>, %arg4: memref<1x124xf32, #tpu.memory_space<vmem>>, %arg5: memref<124x128xbf16, #tpu.memory_space<vmem>>, %arg6: memref<128x128xbf16, #tpu.memory_space<vmem>>, %arg7: memref<1x128xf32, #tpu.memory_space<vmem>>, %arg8: memref<4x128xf32, #tpu.memory_space<vmem>>) attributes {dimension_semantics = [#tpu.dimension_semantics<arbitrary>], iteration_bounds = array<i64: 1>, scalar_prefetch = 0 : i64, scratch_operands = 0 : i64, tpu.core_type = #tpu.core_type<tc>, window_params = [{pipeline_mode = #tpu.pipeline_mode<synchronous>, transform_indices = @transform_0, window_bounds = array<i64: 4, 3968>}, {pipeline_mode = #tpu.pipeline_mode<synchronous>, transform_indices = @transform_1, window_bounds = array<i64: 4, 128>}, {pipeline_mode = #tpu.pipeline_mode<synchronous>, transform_indices = @transform_2, window_bounds = array<i64: 3968, 124>}, {pipeline_mode = #tpu.pipeline_mode<synchronous>, transform_indices = @transform_3, window_bounds = array<i64: 1, 124>}, {pipeline_mode = #tpu.pipeline_mode<synchronous>, transform_indices = @transform_4, window_bounds = array<i64: 124, 128>}, {pipeline_mode = #tpu.pipeline_mode<synchronous>, transform_indices = @transform_5, window_bounds = array<i64: 128, 128>}, {pipeline_mode = #tpu.pipeline_mode<synchronous>, transform_indices = @transform_6, window_bounds = array<i64: 1, 128>}, {pipeline_mode = #tpu.pipeline_mode<synchronous>, transform_indices = @transform_7, window_bounds = array<i64: 4, 128>}]} {
    %c0 = arith.constant 0 : index
    %c0_0 = arith.constant 0 : index
    %0 = vector.load %arg1[%c0, %c0_0] : memref<4x3968xf32, #tpu.memory_space<vmem>>, vector<4x3968xf32>
    %1 = arith.truncf %0 : vector<4x3968xf32> to vector<4x3968xbf16>
    %c0_1 = arith.constant 0 : index
    %c0_2 = arith.constant 0 : index
    %2 = vector.load %arg3[%c0_1, %c0_2] : memref<3968x124xbf16, #tpu.memory_space<vmem>>, vector<3968x124xbf16>
    %cst = arith.constant dense<0.000000e+00> : vector<4x124xf32>
    %3 = tpu.matmul %1, %2, %cst {dimension_numbers = #tpu.dot_dimension_numbers<[1], [0], [0], [1], [0, 0, 1, 1], [], []>} : vector<4x3968xbf16>, vector<3968x124xbf16>, vector<4x124xf32> -> vector<4x124xf32>
    %c0_3 = arith.constant 0 : index
    %c0_4 = arith.constant 0 : index
    %4 = vector.load %arg4[%c0_3, %c0_4] : memref<1x124xf32, #tpu.memory_space<vmem>>, vector<1x124xf32>
    %5 = vector.broadcast %4 : vector<1x124xf32> to vector<4x124xf32>
    %6 = arith.addf %3, %5 : vector<4x124xf32>
    %cst_5 = arith.constant 0.000000e+00 : f32
    %7 = vector.broadcast %cst_5 : f32 to vector<4x124xf32>
    %8 = arith.maximumf %6, %7 : vector<4x124xf32>
    %9 = arith.truncf %8 : vector<4x124xf32> to vector<4x124xbf16>
    %c0_6 = arith.constant 0 : index
    %c0_7 = arith.constant 0 : index
    %10 = vector.load %arg2[%c0_6, %c0_7] : memref<4x128xf32, #tpu.memory_space<vmem>>, vector<4x128xf32>
    %cst_8 = arith.constant 0.000000e+00 : f32
    %11 = vector.broadcast %cst_8 : f32 to vector<4x128xf32>
    %12 = arith.maximumf %10, %11 : vector<4x128xf32>
    %13 = arith.truncf %12 : vector<4x128xf32> to vector<4x128xbf16>
    %c0_9 = arith.constant 0 : index
    %c0_10 = arith.constant 0 : index
    %14 = vector.load %arg5[%c0_9, %c0_10] : memref<124x128xbf16, #tpu.memory_space<vmem>>, vector<124x128xbf16>
    %cst_11 = arith.constant dense<0.000000e+00> : vector<4x128xf32>
    %15 = tpu.matmul %9, %14, %cst_11 {dimension_numbers = #tpu.dot_dimension_numbers<[1], [0], [0], [1], [0, 0, 1, 1], [], []>} : vector<4x124xbf16>, vector<124x128xbf16>, vector<4x128xf32> -> vector<4x128xf32>
    %c0_12 = arith.constant 0 : index
    %c0_13 = arith.constant 0 : index
    %16 = vector.load %arg6[%c0_12, %c0_13] : memref<128x128xbf16, #tpu.memory_space<vmem>>, vector<128x128xbf16>
    %cst_14 = arith.constant dense<0.000000e+00> : vector<4x128xf32>
    %17 = tpu.matmul %13, %16, %cst_14 {dimension_numbers = #tpu.dot_dimension_numbers<[1], [0], [0], [1], [0, 0, 1, 1], [], []>} : vector<4x128xbf16>, vector<128x128xbf16>, vector<4x128xf32> -> vector<4x128xf32>
    %18 = arith.addf %15, %17 : vector<4x128xf32>
    %c0_15 = arith.constant 0 : index
    %c0_16 = arith.constant 0 : index
    %19 = vector.load %arg7[%c0_15, %c0_16] : memref<1x128xf32, #tpu.memory_space<vmem>>, vector<1x128xf32>
    %20 = vector.broadcast %19 : vector<1x128xf32> to vector<4x128xf32>
    %21 = arith.addf %18, %20 : vector<4x128xf32>
    %c0_17 = arith.constant 0 : index
    %c0_18 = arith.constant 0 : index
    %22 = vector.load %arg8[%c0_17, %c0_18] : memref<4x128xf32, #tpu.memory_space<vmem>>, vector<4x128xf32>
    tpu.vector_store %arg8[%c0_17, %c0_18], %21 {strides = array<i32>} : memref<4x128xf32, #tpu.memory_space<vmem>>, vector<4x128xf32>,
    return
  }
  func.func @transform_0(%arg0: i32) -> (i32, i32) {
    %c0_i32 = arith.constant 0 : i32
    %c0_i32_0 = arith.constant 0 : i32
    %c0_i32_1 = arith.constant 0 : i32
    return %c0_i32, %c0_i32_0 : i32, i32
  }
  func.func @transform_1(%arg0: i32) -> (i32, i32) {
    %c0_i32 = arith.constant 0 : i32
    %c0_i32_0 = arith.constant 0 : i32
    %c0_i32_1 = arith.constant 0 : i32
    return %c0_i32, %c0_i32_0 : i32, i32
  }
  func.func @transform_2(%arg0: i32) -> (i32, i32) {
    %c0_i32 = arith.constant 0 : i32
    %c0_i32_0 = arith.constant 0 : i32
    %c0_i32_1 = arith.constant 0 : i32
    return %c0_i32, %c0_i32_0 : i32, i32
  }
  func.func @transform_3(%arg0: i32) -> (i32, i32) {
    %c0_i32 = arith.constant 0 : i32
    %c0_i32_0 = arith.constant 0 : i32
    %c0_i32_1 = arith.constant 0 : i32
    return %c0_i32, %c0_i32_0 : i32, i32
  }
  func.func @transform_4(%arg0: i32) -> (i32, i32) {
    %c0_i32 = arith.constant 0 : i32
    %c0_i32_0 = arith.constant 0 : i32
    %c0_i32_1 = arith.constant 0 : i32
    return %c0_i32, %c0_i32_0 : i32, i32
  }
  func.func @transform_5(%arg0: i32) -> (i32, i32) {
    %c0_i32 = arith.constant 0 : i32
    %c0_i32_0 = arith.constant 0 : i32
    %c0_i32_1 = arith.constant 0 : i32
    return %c0_i32, %c0_i32_0 : i32, i32
  }
  func.func @transform_6(%arg0: i32) -> (i32, i32) {
    %c0_i32 = arith.constant 0 : i32
    %c0_i32_0 = arith.constant 0 : i32
    %c0_i32_1 = arith.constant 0 : i32
    return %c0_i32, %c0_i32_0 : i32, i32
  }
  func.func @transform_7(%arg0: i32) -> (i32, i32) {
    %c0_i32 = arith.constant 0 : i32
    %c0_i32_0 = arith.constant 0 : i32
    %c0_i32_1 = arith.constant 0 : i32
    return %c0_i32, %c0_i32_0 : i32, i32
  }
}

</mosaic_0001>

<bundles_post_ra>
// kernel: xai_model_forward.2
= control target key start
LH: loop header
LB: loop body
LE: loop exit
PB: predicated region body
PF: predicated region fallthrough
CT: control target
= control target key end

     0   :  { %s6098_s24 = smov 0   ;;  %s7994_s0 = inlined_call_operand.vmem [shape: f32[4,124,32], index: 0, kind: input, shape index: {}]   ;;  %s7995_s1 = inlined_call_operand.vmem [shape: bf16[4,124,124], index: 1, kind: input, shape index: {}]   ;;  %s7996_s2 = inlined_call_operand.vmem [shape: bf16[2,32,128], index: 2, kind: input, shape index: {}]   ;;  %s7997_s3 = inlined_call_operand.vmem [shape: bf16[2,2,32], index: 3, kind: input, shape index: {}]   ;;  %s7998_s4 = inlined_call_operand.vmem [shape: f32[2,1,32], index: 4, kind: input, shape index: {}]   ;;  %s7999_s5 = inlined_call_operand.vmem [shape: f32[2,1,32], index: 5, kind: input, shape index: {}]   ;;  %s8000_s6 = inlined_call_operand.vmem [shape: f32[4,124,32], index: 6, kind: output, shape index: {0}]   ;;  %s8001_s7 = inlined_call_operand.vmem [shape: f32[4,1,128], index: 7, kind: output, shape index: {1}]  }
   0x1 LB: > { %s4542_s25 = sadd.s32 4294967295, %s6043_s24   ;;  %p4546_p0 = scmp.ge.s32.totalorder %s6043_s24, 1  ;;  %s6043_s24 = sphi %s6098_s24, %s18_s24  }
   0x2   : > { %p254_p1 = scmp.lt.s32.totalorder %s6043_s24, 3 }
   0x4   : > { %p255_p2 = pnand %p4546_p0, %p254_p1 }
   0x5   : > { %s4547_s26 = sshll.u32 (!%p255_p2), %s4542_s25, 1  ;;  %s6129_s18 = smov (!%p255_p2), 0  }
   0x6   : > { %258 = sbr.rel (%p255_p2) target bundleno = 3415 (0xd57), region = 44  ;;  %p299_p3 = scmp.lt.s32.totalorder (!%p255_p2), %s4547_s26, 3 }
   0xd   : > { %s8152_s26 = smov (!%p299_p3, %s4547_s26), 3 }
   0xe   : > { %s4755_s27 = sshll.u32 %s8152_s26, 7  ;;  %s4756_s28 = sshll.u32 %s8152_s26, 6 }
   0xf   : > { %s6113_s8 = scalar_lea.vmem %s7994_s0, %s4755_s27  ;;  %s6118_s11 = scalar_lea.vmem %s7995_s1, %s4756_s28 }
  0x10   : > { %s6123_s14 = scalar_lea.vmem %s8000_s6, %s4755_s27  ;;  %s322_s17 = scalar_lea.vmem %s8001_s7, %s8152_s26 }
  0x11 LB: >> { %v5581_v0 = vld [vmem:[%s7996_s2] sm:$0xff]   ;;  %v5582_v1 = vld [vmem:[%s7996_s2 + $0x8] sm:$0xff]   ;;  %s4557_s23 = sshll.u32 %s6047_s18, 7  ;;  %v8007_v2 = vmov 0.0   ;;  %vm6050_vm0 = vmmov 0   ;;  %vm374_vm1 = vcmask 261120   ;;  %s6047_s18 = sphi %s6129_s18, %s331_s18  }
  0x12   : >> { %5023 = vmatprep.subr.bf16.mxu0 %v5581_v0  ;;  %5043 = vmatprep.subr.bf16.mxu1 %v8007_v2  ;;  %s6145_s25 = scalar_lea.vmem %s6113_s8, %s4557_s23  ;;  %v8005_v6 = vmov 64   ;;  %v496_v36 = vld [vmem:[%s7997_s3] sm:$0x1]  ;;  %s6052_s29 = smov 96   ;;  %vm1086_vm2 = vcmask 1045504   ;;  %vm964_vm3 = vcmask 1014784  }
  0x13   : >> { %5024 = vmatpush3.bf16.msra.mxu0 %v5581_v0  ;;  %5059 = vmatprep.mubr.msk.bf16.mxu1 %vm6050_vm0, %v8007_v2  ;;  %v334_v3 = vld [vmem:[%s6145_s25] sm:$0xff]  ;;  %v335_v4 = vld [vmem:[%s6145_s25 + $0x8] sm:$0xff]  ;;  %v336_v5 = vld [vmem:[%s6145_s25 + $0x10] sm:$0xff]  ;;  %s4758_s30 = sshll.u32 %s6047_s18, 6  ;;  %vm1010_vm4 = vcmask 1010688   ;;  %vm2345_vm5 = vcmask 257024   ;;  %s7841_s12 = scalar_lea.vmem %s6123_s14, %s4557_s23 }
  0x14   : >> { %5025 = vmatprep.subr.bf16.mxu0 %v5582_v1  ;;  %5569 = vset.pattern.permute.xlu1 %v8005_v6  ;;  %v350_v7 = vpack.c.bf16 %v335_v4, %v334_v3  ;;  %v337_v8 = vld [vmem:[%s6145_s25 + $0x18] sm:$0xff]  ;;  %v338_v9 = vld [vmem:[%s6145_s25 + $0x20] sm:$0xff]  ;;  %v339_v10 = vld [vmem:[%s6145_s25 + $0x28] sm:$0xff]  ;;  %s6388_s9 = scalar_lea.vmem %s6118_s11, %s4758_s30  ;;  %s6056_s27 = smov 32   ;;  %vm4426_vm6 = vcmask 523264   ;;  %vm4428_vm7 = vcmask 785408  }
  0x15   : >> { %5570 = vset.pattern.permute.xlu0 %v8005_v6  ;;  %v351_v11 = vpack.c.bf16 %v337_v8, %v336_v5  ;;  %v352_v12 = vpack.c.bf16 %v339_v10, %v338_v9  ;;  %v340_v14 = vld [vmem:[%s6145_s25 + $0x30] sm:$0xff]  ;;  %v341_v15 = vld [vmem:[%s6145_s25 + $0x38] sm:$0xff]  ;;  %v342_v16 = vld [vmem:[%s6145_s25 + $0x40] sm:$0xff]  ;;  %s6057_s23 = smov 64  }
  0x16   : >> { %5027 = vmatprep.mubr.msk.bf16.mxu0 %vm374_vm1, %v350_v7  ;;  %v376_v13 = vsel %vm374_vm1, %v350_v7, 0  ;;  %v343_v17 = vld [vmem:[%s6145_s25 + $0x48] sm:$0xff]  ;;  %v353_v19 = vpack.c.bf16 %v341_v15, %v340_v14  ;;  %v344_v21 = vld [vmem:[%s6145_s25 + $0x50] sm:$0xff]  ;;  %v345_v22 = vld [vmem:[%s6145_s25 + $0x58] sm:$0xff] }
  0x17   : >> { %5026 = vmatpush3.bf16.msra.mxu0 %v5582_v1  ;;  %5044 = vmatpush3.bf16.xpose.msra.mxu1 %v376_v13  ;;  %v379_v18 = vsel %vm374_vm1, %v351_v11, 0  ;;  %v354_v20 = vpack.c.bf16 %v343_v17, %v342_v16  ;;  %v346_v23 = vld [vmem:[%s6145_s25 + $0x60] sm:$0xff]  ;;  %v347_v24 = vld [vmem:[%s6145_s25 + $0x68] sm:$0xff]  ;;  %v382_v25 = vsel %vm374_vm1, %v352_v12, 0  ;;  %v355_v26 = vpack.c.bf16 %v345_v22, %v344_v21  ;;  %v348_v28 = vld [vmem:[%s6145_s25 + $0x70] sm:$0xff] }
  0x18   : >> { %5045 = vmatprep.subr.bf16.mxu1 %v8007_v2  ;;  %v356_v27 = vpack.c.bf16 %v347_v24, %v346_v23  ;;  %v349_v29 = vld [vmem:[%s6145_s25 + $0x78] sm:$0xf]  ;;  %v385_v30 = vsel %vm374_vm1, %v353_v19, 0  ;;  %v8011_v13 = vmov 0  }
  0x19   : >> { %v357_v31 = vpack.c.bf16 %v349_v29, %v348_v28  ;;  %v388_v32 = vsel %vm374_vm1, %v354_v20, 0  ;;  %v391_v33 = vsel %vm374_vm1, %v355_v26, 0  ;;  %v6360_v14 = vsel %vm1086_vm2, 1065369472, %v8011_v13 }
  0x1a   : >> { %5028 = vmatmul.mubr.msk.bf16.vlgmr.msra.gmra.mrb[0].mxu0 %vm374_vm1, %v351_v11  ;;  %v394_v34 = vsel %vm374_vm1, %v356_v27, 0  ;;  %8044 = vst [vmem:[#allocation2_spill] sm:$0xff] %v6360_v14  ;;  %v669_v29 = vlaneseq }
  0x1b   : >> { %5031 = vmatprep.mubr.msk.bf16.mxu0 %vm374_vm1, %v352_v12  ;;  %v397_v35 = vsel %vm374_vm1, %v357_v31, 0  ;;  %v8009_v12 = vmov 1065369472  }
  0x1f   : >> { %5046 = vmatpush3.bf16.xpose.msra.mxu1 %v379_v18 }
  0x20   : >> { %5047 = vmatprep.subr.bf16.mxu1 %v8007_v2 }
  0x22   : >> { %5032 = vmatmul.mubr.msk.bf16.gmra.mrb[4].mxu0 %vm374_vm1, %v353_v19  ;;  %v8003_v19 = vmov 65  }
  0x23   : >> { %5035 = vmatprep.mubr.msk.bf16.mxu0 %vm374_vm1, %v354_v20 }
  0x27   : >> { %5048 = vmatpush3.bf16.xpose.msra.mxu1 %v382_v25 }
  0x28   : >> { %5049 = vmatprep.subr.bf16.mxu1 %v8007_v2 }
  0x2a   : >> { %5036 = vmatmul.mubr.msk.bf16.gmra.mrb[8].mxu0 %vm374_vm1, %v355_v26 }
  0x2b   : >> { %5039 = vmatprep.mubr.msk.bf16.mxu0 %vm374_vm1, %v356_v27 }
  0x2f   : >> { %5050 = vmatpush3.bf16.xpose.msra.mxu1 %v385_v30 }
  0x30   : >> { %5051 = vmatprep.subr.bf16.mxu1 %v8007_v2 }
  0x32   : >> { %5040 = vmatmul.mubr.msk.bf16.gmra.mrb[12].mxu0 %vm374_vm1, %v357_v31 }
  0x37   : >> { %5052 = vmatpush3.bf16.xpose.msra.mxu1 %v388_v32 }
  0x38   : >> { %5053 = vmatprep.subr.bf16.mxu1 %v8007_v2 }
  0x3f   : >> { %5054 = vmatpush3.bf16.xpose.msra.mxu1 %v391_v33 }
  0x40   : >> { %5055 = vmatprep.subr.bf16.mxu1 %v8007_v2 }
  0x47   : >> { %5056 = vmatpush3.bf16.xpose.msra.mxu1 %v394_v34 }
  0x48   : >> { %5057 = vmatprep.subr.bf16.mxu1 %v8007_v2 }
  0x4f   : >> { %5058 = vmatpush3.bf16.xpose.msra.mxu1 %v397_v35 }
  0x56   : >> { %5060 = vmatmul.mubr.msk.bf16.vlgmr.msra.gmra.mrb[0].mxu1 %vm374_vm1, %v496_v36  ;;  %v6376_v36 = vshrl.u32 %v669_v29, 7 }
  0x58   : >> { %8045 = vst [vmem:[#allocation3_spill] sm:$0xff] %v6376_v36 }
  0xed   : >> { %v6194_v37 = vpop.f32.mrb[0].mxu0 }
  0xee   : >> { %685 = vperm.xlu1 %5569, %v6194_v37   ;;  %v6197_v38 = vpop.f32.mrb[1].mxu0 }
  0xef   : >> { %675 = vperm.xlu0 %5570, %v6197_v38   ;;  %v6200_v39 = vpop.f32.mrb[2].mxu0 }
  0xf0   : >> { %v6204_v40 = vpack.c.bf16 %v6200_v39, %v6194_v37  ;;  %v6206_v41 = vpop.f32.mrb[3].mxu0 }
  0xf1   : >> { %v540_v42 = vpack.c.bf16 %v6206_v41, %v6197_v38 }
  0xf2   : >> { %690 = vperm.xlu1 %5569, %v6200_v39   ;;  %v552_v50 = vsel %vm374_vm1, %v6204_v40, 0 }
  0xf3   : >> { %680 = vperm.xlu0 %5570, %v6206_v41   ;;  %5503 = vmatprep.subr.msk.bf16.mxu0 %vm374_vm1, %v540_v42  ;;  %v549_v43 = vsel %vm374_vm1, %v540_v42, 0 }
  0xf4   : >> { %5079 = vmatprep.mubr.msk.bf16.mxu0 %vm374_vm1, %v540_v42  ;;  %5095 = vmatprep.subr.bf16.mxu1 %v540_v42 }
  0xf5   : >> { %5064 = vmatpush3.bf16.xpose.msra.mxu0 %v549_v43  ;;  %5096 = vmatpush3.bf16.msra.mxu1 %v540_v42  ;;  %v6215_v44 = vpop.f32.mrb[4].mxu0 }
  0xf6   : >> { %5504 = vmatprep.subr.msk.bf16.mxu0 %vm374_vm1, %v6204_v40  ;;  %5097 = vmatprep.subr.bf16.mxu1 %v6204_v40  ;;  %v6220_v45 = vpop.f32.mrb[5].mxu0 }
  0xf7   : >> { %1424 = vrot.lane.b32.xlu1 %v6204_v40, %s6052_s29  ;;  %705 = vperm.xlu0 %5570, %v6215_v44   ;;  %v6225_v46 = vpop.f32.mrb[6].mxu0 }
  0xf8   : >> { %v6229_v47 = vpack.c.bf16 %v6225_v46, %v6215_v44  ;;  %v6231_v48 = vpop.f32.mrb[7].mxu0 }
  0xf9   : >> { %v6235_v49 = vpack.c.bf16 %v6231_v48, %v6220_v45  ;;  %5098 = vmatpush3.bf16.msra.mxu1 %v6204_v40 }
  0xfa   : >> { %v558_v0 = vsel %vm374_vm1, %v6229_v47, 0 }
  0xfb   : >> { %1422 = vrot.lane.b32.xlu1 %v540_v42, %s6052_s29  ;;  %695 = vperm.xlu0 %5570, %v6220_v45   ;;  %v555_v57 = vsel %vm374_vm1, %v6235_v49, 0 }
  0xfc   : >> { %5099 = vmatprep.subr.bf16.mxu1 %v6235_v49 }
  0xfd   : >> { %5066 = vmatpush3.bf16.xpose.msra.mxu0 %v552_v50  ;;  %5100 = vmatpush3.bf16.msra.mxu1 %v6235_v49  ;;  %v6244_v51 = vpop.f32.mrb[8].mxu0 }
  0xfe   : >> { %5101 = vmatprep.subr.bf16.mxu1 %v6229_v47  ;;  %5505 = vmatprep.subr.msk.bf16.mxu0 %vm374_vm1, %v6235_v49  ;;  %v6249_v52 = vpop.f32.mrb[9].mxu0 }
  0xff   : >> { %710 = vperm.xlu1 %5569, %v6225_v46   ;;  %1426 = vrot.lane.b32.xlu0 %v6235_v49, %s6052_s29  ;;  %v6254_v53 = vpop.f32.mrb[10].mxu0 }
 0x100   : >> { %v6258_v54 = vpack.c.bf16 %v6254_v53, %v6244_v51  ;;  %v6260_v55 = vpop.f32.mrb[11].mxu0 }
 0x101   : >> { %5102 = vmatpush3.bf16.msra.mxu1 %v6229_v47  ;;  %v6265_v56 = vpack.c.bf16 %v6260_v55, %v6249_v52 }
 0x102   : >> { %v564_v4 = vsel %vm374_vm1, %v6258_v54, 0 }
 0x103   : >> { %700 = vperm.xlu1 %5569, %v6231_v48   ;;  %725 = vperm.xlu0 %5570, %v6244_v51   ;;  %v561_v3 = vsel %vm374_vm1, %v6265_v56, 0 }
 0x104   : >> { %5103 = vmatprep.subr.bf16.mxu1 %v6265_v56 }
 0x105   : >> { %5068 = vmatpush3.bf16.xpose.msra.mxu0 %v555_v57  ;;  %5104 = vmatpush3.bf16.msra.mxu1 %v6265_v56  ;;  %v6273_v58 = vpop.f32.mrb[12].mxu0 }
 0x106   : >> { %5506 = vmatprep.subr.msk.bf16.mxu0 %vm374_vm1, %v6229_v47  ;;  %5105 = vmatprep.subr.bf16.mxu1 %v6258_v54  ;;  %v6278_v59 = vpop.f32.mrb[13].mxu0 }
 0x107   : >> { %1428 = vrot.lane.b32.xlu1 %v6229_v47, %s6052_s29  ;;  %715 = vperm.xlu0 %5570, %v6249_v52   ;;  %v6283_v60 = vpop.f32.mrb[14].mxu0 }
 0x108   : >> { %v6287_v61 = vpack.c.bf16 %v6283_v60, %v6273_v58  ;;  %v6289_v62 = vpop.f32.mrb[15].mxu0 }
 0x109   : >> { %5106 = vmatpush3.bf16.msra.mxu1 %v6258_v54  ;;  %v6294_v63 = vpack.c.bf16 %v6289_v62, %v6278_v59 }
 0x10a   : >> { %v1087_v1 = vsel %vm1086_vm2, %v6287_v61, 0  ;;  %v570_v9 = vsel %vm374_vm1, %v6287_v61, 0 }
 0x10b   : >> { %730 = vperm.xlu1 %5569, %v6254_v53   ;;  %745 = vperm.xlu0 %5570, %v6273_v58   ;;  %v567_v5 = vsel %vm374_vm1, %v6294_v63, 0 }
 0x10c   : >> { %5107 = vmatprep.subr.bf16.mxu1 %v6294_v63 }
 0x10d   : >> { %5070 = vmatpush3.bf16.xpose.msra.mxu0 %v558_v0  ;;  %5108 = vmatpush3.bf16.msra.mxu1 %v6294_v63  ;;  %v8002_v0 = vsub.s32 0, %v6376_v36 }
 0x10e   : >> { %5507 = vmatprep.subr.msk.bf16.mxu0 %vm374_vm1, %v6265_v56  ;;  %5511 = vmatprep.subr.msk.bf16.mxu1 %vm1086_vm2, %v6287_v61 }
 0x10f   : >> { %720 = vperm.xlu1 %5569, %v6260_v55   ;;  %735 = vperm.xlu0 %5570, %v6278_v59  }
 0x111   : >> { %5110 = vmatpush3.bf16.msra.mxu1 %v1087_v1 }
 0x113   : >> { %750 = vperm.xlu1 %5569, %v6283_v60   ;;  %5572 = vset.pattern.permute.xlu0 %v8003_v19 }
 0x115   : >> { %5072 = vmatpush3.bf16.xpose.msra.mxu0 %v561_v3 }
 0x116   : >> { %5508 = vmatprep.subr.msk.bf16.mxu0 %vm374_vm1, %v6258_v54 }
 0x117   : >> { %740 = vperm.xlu1 %5569, %v6289_v62  }
 0x11b   : >> { %5571 = vset.pattern.permute.xlu1 %v8003_v19 }
 0x11d   : >> { %5074 = vmatpush3.bf16.xpose.msra.mxu0 %v564_v4 }
 0x11e   : >> { %5509 = vmatprep.subr.msk.bf16.mxu0 %vm374_vm1, %v6294_v63 }
 0x125   : >> { %5076 = vmatpush3.bf16.xpose.msra.mxu0 %v567_v5 }
 0x126   : >> { %5510 = vmatprep.subr.msk.bf16.mxu0 %vm374_vm1, %v6287_v61 }
 0x129   : >> { %v6324_v7 = vpop.f32.mrb[0].mxu1 }
 0x12a   : >> { %v5061_v8 = vpop.f32.mrb[1].mxu1 }
 0x12b   : >> { %v537_v10 = vpop.f32.mrb[2].mxu1 }
 0x12c   : >> { %v5062_v11 = vpop.f32.mrb[3].mxu1 }
 0x12d   : >> { %5078 = vmatpush3.bf16.xpose.msra.mxu0 %v570_v9 }
 0x12e   : >> { %5127 = vmatprep.subr.bf16.mxu0 %v8009_v12 }
 0x134   : >> { %5080 = vmatmul.mubr.msk.bf16.vlgmr.msra.gmra.mrb[16].mxu0 %vm374_vm1, %v6204_v40 }
 0x135   : >> { %5083 = vmatprep.mubr.msk.bf16.mxu0 %vm374_vm1, %v6235_v49  ;;  %5128 = vmatpush3.bf16.msra.mxu0 %v8009_v12 }
 0x136   : >> { %5129 = vmatprep.subr.bf16.mxu0 %v8009_v12 }
 0x139   : >> { %5130 = vmatpush3.bf16.msra.mxu0 %v8009_v12 }
 0x13a   : >> { %5131 = vmatprep.subr.bf16.mxu0 %v8009_v12 }
 0x13c   : >> { %5084 = vmatmul.mubr.msk.bf16.gmra.mrb[20].mxu0 %vm374_vm1, %v6229_v47 }
 0x13d   : >> { %5087 = vmatprep.mubr.msk.bf16.mxu0 %vm374_vm1, %v6265_v56  ;;  %5132 = vmatpush3.bf16.msra.mxu0 %v8009_v12 }
 0x13e   : >> { %5133 = vmatprep.subr.bf16.mxu0 %v8009_v12 }
 0x141   : >> { %5134 = vmatpush3.bf16.msra.mxu0 %v8009_v12 }
 0x142   : >> { %5135 = vmatprep.subr.bf16.mxu0 %v8009_v12 }
 0x144   : >> { %5088 = vmatmul.mubr.msk.bf16.gmra.mrb[24].mxu0 %vm374_vm1, %v6258_v54 }
 0x145   : >> { %5091 = vmatprep.mubr.msk.bf16.mxu0 %vm374_vm1, %v6294_v63  ;;  %5136 = vmatpush3.bf16.msra.mxu0 %v8009_v12 }
 0x146   : >> { %5137 = vmatprep.subr.bf16.mxu0 %v8009_v12 }
 0x149   : >> { %5138 = vmatpush3.bf16.msra.mxu0 %v8009_v12 }
 0x14a   : >> { %5139 = vmatprep.subr.bf16.mxu0 %v8009_v12 }
 0x14c   : >> { %5092 = vmatmul.mubr.msk.bf16.gmra.mrb[28].mxu0 %vm374_vm1, %v6287_v61 }
 0x14d   : >> { %5140 = vmatpush3.bf16.msra.mxu0 %v8009_v12 }
 0x14e   : >> { %5512 = vmatprep.subr.msk.bf16.mxu0 %vm1086_vm2, %v8009_v12 }
 0x151   : >> { %5142 = vmatpush3.bf16.msra.mxu0 %v6360_v14 }
 0x16d   : >> { %v6363_v15 = vpop.permute.xlu1 %685 }
 0x16e   : >> { %v676_v27 = vpop.permute.xlu0 %675 }
 0x171   : >> { %v6365_v16 = vpop.permute.xlu1 %690 }
 0x172   : >> { %v681_v33 = vpop.permute.xlu0 %680 }
 0x175   : >> { %v6367_v17 = vpop.permute.xlu1 %1424 }
 0x176   : >> { %v706_v5 = vpop.permute.xlu0 %705 }
 0x179   : >> { %v6369_v18 = vpop.permute.xlu1 %1422 }
 0x17a   : >> { %5513 = vmatprep.subr.msk.bf16.mxu1 %vm374_vm1, %v6369_v18  ;;  %5191 = vmatprep.subr.bf16.mxu0 %v6369_v18 }
 0x17e   : >> { %v711_v1 = vpop.permute.xlu1 %710 }
 0x182   : >> { %v6385_v29 = vpop.permute.xlu1 %700 }
 0x207   : >> { %v5081_v20 = vpop.f32.mrb[16].mxu0 }
 0x208   : >> { %v4579_v21 = vmul.f32 -1.442695, %v5081_v20  ;;  %v606_v22 = vpop.f32.mrb[17].mxu0 }
 0x209   : >> { %v4577_v23 = vmul.f32 -1.442695, %v606_v22  ;;  %v5082_v24 = vpop.f32.mrb[18].mxu0 }
 0x20a   : >> { %5585 = vpow2.f32 %v4579_v21  ;;  %v4580_v25 = vmul.f32 -1.442695, %v5082_v24  ;;  %v609_v26 = vpop.f32.mrb[19].mxu0 }
 0x20b   : >> { %5587 = vpow2.f32 %v4577_v23  ;;  %v4578_v28 = vmul.f32 -1.442695, %v609_v26  ;;  %v6382_v23 = vrot.slane %v6324_v7, %v8002_v0 }
 0x20c   : >> { %5589 = vpow2.f32 %v4580_v25 }
 0x20d   : >> { %5591 = vpow2.f32 %v4578_v28 }
 0x20f   : >> { %v5085_v30 = vpop.f32.mrb[20].mxu0 }
 0x210   : >> { %v4583_v31 = vmul.f32 -1.442695, %v5085_v30  ;;  %v622_v32 = vpop.f32.mrb[21].mxu0 }
 0x211   : >> { %v4581_v34 = vmul.f32 -1.442695, %v622_v32  ;;  %v5086_v35 = vpop.f32.mrb[22].mxu0 }
 0x212   : >> { %5593 = vpow2.f32 %v4583_v31  ;;  %v4584_v40 = vmul.f32 -1.442695, %v5086_v35  ;;  %v625_v42 = vpop.f32.mrb[23].mxu0  ;;  %v696_v31 = vpop.permute.xlu0 %695  ;;  %v755_v35 = vadd.f32 %v6363_v15, %v6382_v23 }
 0x213   : >> { %5595 = vpow2.f32 %v4581_v34  ;;  %v4582_v43 = vmul.f32 -1.442695, %v625_v42 }
 0x214   : >> { %v5586_v47 = vpop.eup %5585  ;;  %5597 = vpow2.f32 %v4584_v40 }
 0x215   : >> { %v5588_v49 = vpop.eup %5587  ;;  %v819_v50 = vadd.f32 1.0, %v5586_v47  ;;  %5599 = vpow2.f32 %v4582_v43  ;;  %v753_v43 = vadd.f32 %v676_v27, %v6382_v23  ;;  %v756_v47 = vadd.f32 %v6365_v16, %v6382_v23  ;;  %v4760_v16 = vld [vmem:[%s6388_s9] sm:$0xff]  }
 0x216   : >> { %v5590_v57 = vpop.eup %5589  ;;  %v817_v3 = vadd.f32 1.0, %v5588_v49 }
 0x217   : >> { %v5592_v4 = vpop.eup %5591  ;;  %5601 = vrcp.f32 %v819_v50  ;;  %v820_v8 = vadd.f32 1.0, %v5590_v57  ;;  %v5089_v9 = vpop.f32.mrb[24].mxu0  ;;  %v754_v57 = vadd.f32 %v681_v33, %v6382_v23 }
 0x218   : >> { %5603 = vrcp.f32 %v817_v3  ;;  %v818_v10 = vadd.f32 1.0, %v5592_v4  ;;  %v4587_v11 = vmul.f32 -1.442695, %v5089_v9  ;;  %v638_v20 = vpop.f32.mrb[25].mxu0  ;;  %v4787_v9 = vld [vmem:[%s6388_s9 + $0x8] sm:$0xff]  }
 0x219   : >> { %5605 = vrcp.f32 %v820_v8  ;;  %v4585_v21 = vmul.f32 -1.442695, %v638_v20  ;;  %v5090_v22 = vpop.f32.mrb[26].mxu0 }
 0x21a   : >> { %5607 = vrcp.f32 %v818_v10  ;;  %v4588_v24 = vmul.f32 -1.442695, %v5090_v22  ;;  %v641_v25 = vpop.f32.mrb[27].mxu0  ;;  %v759_v10 = vadd.f32 %v706_v5, %v6382_v23  ;;  %v760_v22 = vadd.f32 %v711_v1, %v6382_v23 }
 0x21b   : >> { %5609 = vpow2.f32 %v4587_v11  ;;  %v4586_v26 = vmul.f32 -1.442695, %v641_v25  ;;  %v757_v11 = vadd.f32 %v696_v31, %v6382_v23 }
 0x21c   : >> { %v5594_v28 = vpop.eup %5593  ;;  %5611 = vpow2.f32 %v4585_v21 }
 0x21d   : >> { %v5596_v30 = vpop.eup %5595  ;;  %v823_v32 = vadd.f32 1.0, %v5594_v28  ;;  %5613 = vpow2.f32 %v4588_v24  ;;  %v6401_v24 = vpop.permute.xlu1 %1428 }
 0x21e   : >> { %v5598_v34 = vpop.eup %5597  ;;  %v821_v40 = vadd.f32 1.0, %v5596_v30  ;;  %5615 = vpow2.f32 %v4586_v26  ;;  %v6403_v30 = vpop.permute.xlu0 %1426 }
 0x21f   : >> { %v5600_v42 = vpop.eup %5599  ;;  %5617 = vrcp.f32 %v823_v32  ;;  %v824_v49 = vadd.f32 1.0, %v5598_v34  ;;  %v5093_v50 = vpop.f32.mrb[28].mxu0  ;;  %v6405_v32 = vunpack.c.l.bf16 %v4787_v9 }
 0x220   : >> { %5619 = vrcp.f32 %v821_v40  ;;  %v822_v3 = vadd.f32 1.0, %v5600_v42  ;;  %v4591_v4 = vmul.f32 -1.442695, %v5093_v50  ;;  %v654_v8 = vpop.f32.mrb[29].mxu0  ;;  %v6407_v42 = vunpack.c.l.bf16 %v4760_v16 }
 0x221   : >> { %v5602_v15 = vpop.eup %5601  ;;  %5621 = vrcp.f32 %v824_v49  ;;  %v4589_v27 = vmul.f32 -1.442695, %v654_v8  ;;  %v5094_v20 = vpop.f32.mrb[30].mxu0  ;;  %8046 = vst [vmem:[#allocation4_spill] sm:$0xff] %v6405_v32 }
 0x222   : >> { %v5604_v21 = vpop.eup %5603  ;;  %5623 = vrcp.f32 %v822_v3  ;;  %v4592_v33 = vmul.f32 -1.442695, %v5094_v20  ;;  %v657_v25 = vpop.f32.mrb[31].mxu0  ;;  %v867_v26 = vmul.f32 %v5602_v15, %v755_v35  ;;  %8047 = vst [vmem:[#allocation5_spill] sm:$0xff] %v6407_v42 }
 0x223   : >> { %v5606_v28 = vpop.eup %5605  ;;  %5625 = vpow2.f32 %v4591_v4  ;;  %v4590_v5 = vmul.f32 -1.442695, %v657_v25  ;;  %v865_v31 = vmul.f32 %v5604_v21, %v753_v43  ;;  %v726_v25 = vpop.permute.xlu0 %725  ;;  %v6409_v21 = vunpack.c.h.bf16 %v4760_v16 }
 0x224   : >> { %v5608_v34 = vpop.eup %5607  ;;  %5627 = vpow2.f32 %v4589_v27  ;;  %v883_v40 = vmul.f32 0.2, %v867_v26  ;;  %v868_v1 = vmul.f32 %v5606_v28, %v756_v47  ;;  %v731_v47 = vpop.permute.xlu1 %730  ;;  %v6414_v28 = vunpack.c.h.bf16 %v4787_v9 }
 0x225   : >> { %v5610_v49 = vpop.eup %5609  ;;  %5629 = vpow2.f32 %v4592_v33  ;;  %v866_v50 = vmul.f32 %v5608_v34, %v754_v57  ;;  %v881_v3 = vmul.f32 0.2, %v865_v31  ;;  %8048 = vst [vmem:[#allocation6_spill] sm:$0xff] %v6409_v21  ;;  %v758_v9 = vadd.f32 %v6385_v29, %v6382_v23 }
 0x226   : >> { %v5612_v35 = vpop.eup %5611  ;;  %v827_v8 = vadd.f32 1.0, %v5610_v49  ;;  %5631 = vpow2.f32 %v4590_v5  ;;  %v899_v15 = vmax.f32 %v867_v26, %v883_v40  ;;  %v884_v4 = vmul.f32 0.2, %v868_v1  ;;  %8049 = vst [vmem:[#allocation7_spill] sm:$0xff] %v6414_v28 }
 0x227   : >> { %v5614_v20 = vpop.eup %5613  ;;  %v825_v0 = vadd.f32 1.0, %v5612_v35  ;;  %v882_v43 = vmul.f32 0.2, %v866_v50  ;;  %v897_v27 = vmax.f32 %v865_v31, %v881_v3  ;;  %v4789_v35 = vld [vmem:[%s6388_s9 + $0x18] sm:$0xff]  }
 0x228   : >> { %v5616_v19 = vpop.eup %5615  ;;  %5633 = vrcp.f32 %v827_v8  ;;  %v828_v33 = vadd.f32 1.0, %v5614_v20  ;;  %v6412_v57 = vadd.f32 %v6405_v32, %v899_v15  ;;  %v900_v40 = vmax.f32 %v868_v1, %v884_v4  ;;  %v716_v20 = vpop.permute.xlu0 %715 }
 0x229   : >> { %v5618_v5 = vpop.eup %5617  ;;  %5635 = vrcp.f32 %v825_v0  ;;  %v826_v26 = vadd.f32 1.0, %v5616_v19  ;;  %v898_v34 = vmax.f32 %v866_v50, %v882_v43  ;;  %v6419_v31 = vadd.f32 %v6407_v42, %v897_v27 }
 0x22a   : >> { %v5620_v49 = vpop.eup %5619  ;;  %5637 = vrcp.f32 %v828_v33  ;;  %v971_v16 = vsel %vm964_vm3, %v6412_v57, -inf  ;;  %v871_v3 = vmul.f32 %v5618_v5, %v759_v10  ;;  %v6430_v43 = vadd.f32 %v6414_v28, %v900_v40  ;;  %v721_v5 = vpop.permute.xlu1 %720 }
 0x22b   : >> { %v5622_v8 = vpop.eup %5621  ;;  %5639 = vrcp.f32 %v826_v26  ;;  %972 = vmax.xlane.f32.xlu0 %v971_v16  ;;  %v6425_v19 = vadd.f32 %v6409_v21, %v898_v34  ;;  %v869_v0 = vmul.f32 %v5620_v49, %v757_v11  ;;  %v6432_v27 = vunpack.c.l.bf16 %v4789_v35  ;;  %v4788_v49 = vld [vmem:[%s6388_s9 + $0x10] sm:$0xff]  }
 0x22c   : >> { %v5624_v1 = vpop.eup %5623  ;;  %v887_v50 = vmul.f32 0.2, %v871_v3  ;;  %v872_v15 = vmul.f32 %v5622_v8, %v760_v22  ;;  %v965_v11 = vsel %vm964_vm3, %v6419_v31, -inf  ;;  %v763_v40 = vadd.f32 %v726_v25, %v6382_v23 }
 0x22d   : >> { %v5626_v4 = vpop.eup %5625  ;;  %v968_v10 = vsel %vm964_vm3, %v6425_v19, -inf  ;;  %8050 = vst [vmem:[#allocation8_spill] sm:$0xff] %v6432_v27  ;;  %v6434_v29 = vmul.f32 %v5624_v1, %v758_v9  ;;  %v885_v34 = vmul.f32 0.2, %v869_v0  ;;  %v761_v2 = vadd.f32 %v716_v20, %v6382_v23  ;;  %v746_v1 = vpop.permute.xlu0 %745 }
 0x22e   : >> { %v5628_v33 = vpop.eup %5627  ;;  %v831_v26 = vadd.f32 1.0, %v5626_v4  ;;  %969 = vmax.xlane.f32.xlu1 %v968_v10  ;;  %v903_v22 = vmax.f32 %v871_v3, %v887_v50  ;;  %v6441_v10 = vunpack.c.l.bf16 %v4788_v49  ;;  %v888_v12 = vmul.f32 0.2, %v872_v15  ;;  %v751_v3 = vpop.permute.xlu1 %750 }
 0x22f   : >> { %v5630_v16 = vpop.eup %5629  ;;  %v829_v8 = vadd.f32 1.0, %v5628_v33  ;;  %966 = vmax.xlane.f32.xlu0 %v965_v11  ;;  %v974_v50 = vsel %vm964_vm3, %v6430_v43, -inf  ;;  %v901_v25 = vmax.f32 %v869_v0, %v885_v34  ;;  %v764_v20 = vadd.f32 %v731_v47, %v6382_v23 }
 0x230   : >> { %v5632_v6 = vpop.eup %5631  ;;  %5641 = vrcp.f32 %v831_v26  ;;  %v832_v9 = vadd.f32 1.0, %v5630_v16  ;;  %8051 = vst [vmem:[#allocation9_spill] sm:$0xff] %v6441_v10  ;;  %v6446_v33 = vadd.f32 %v6432_v27, %v903_v22  ;;  %v762_v16 = vadd.f32 %v721_v5, %v6382_v23  ;;  %v4790_v5 = vld [vmem:[%s6388_s9 + $0x20] sm:$0xff]  }
 0x231   : >> { %5643 = vrcp.f32 %v829_v8  ;;  %v830_v4 = vadd.f32 1.0, %v5632_v6  ;;  %v6450_v21 = vunpack.c.h.bf16 %v4789_v35  ;;  %v886_v22 = vmul.f32 0.2, %v6434_v29 }
 0x232   : >> { %v5634_v13 = vpop.eup %5633  ;;  %5645 = vrcp.f32 %v832_v9  ;;  %v904_v9 = vmax.f32 %v872_v15, %v888_v12  ;;  %v983_v47 = vsel %vm964_vm3, %v6446_v33, -inf  ;;  %v6456_v34 = vadd.f32 %v6441_v10, %v901_v25  ;;  %v930_v15 = vld [vmem:[%s6388_s9 + $0x38] sm:$0xf]  ;;  %v4791_v25 = vld [vmem:[%s6388_s9 + $0x28] sm:$0xff]  }
 0x233   : >> { %v5636_v11 = vpop.eup %5635  ;;  %5647 = vrcp.f32 %v830_v4  ;;  %975 = vmax.xlane.f32.xlu0 %v974_v50  ;;  %v875_v6 = vmul.f32 %v5634_v13, %v763_v40  ;;  %8052 = vst [vmem:[#allocation10_spill] sm:$0xff] %v6450_v21  ;;  %v736_v40 = vpop.permute.xlu0 %735  ;;  %v6459_v50 = vunpack.c.h.bf16 %v4790_v5  ;;  %v767_v12 = vadd.f32 %v746_v1, %v6382_v23 }
 0x234   : >> { %v5638_v26 = vpop.eup %5637  ;;  %v873_v8 = vmul.f32 %v5636_v11, %v761_v2  ;;  %v741_v2 = vpop.permute.xlu1 %740  ;;  %v6463_v35 = vadd.f32 %v6450_v21, %v904_v9  ;;  %v902_v11 = vmax.f32 %v6434_v29, %v886_v22  ;;  %v768_v1 = vadd.f32 %v751_v3, %v6382_v23 }
 0x235   : >> { %v5640_v14 = vpop.eup %5639  ;;  %v876_v0 = vmul.f32 %v5638_v26, %v764_v20  ;;  %v6467_v20 = vunpack.c.h.bf16 %v4788_v49  ;;  %v891_v27 = vmul.f32 0.2, %v875_v6  ;;  %v766_v9 = vadd.f32 %v741_v2, %v6382_v23 }
 0x236   : >> { %v874_v13 = vmul.f32 %v5640_v14, %v762_v16  ;;  %v765_v14 = vadd.f32 %v736_v40, %v6382_v23  ;;  %v977_v16 = vsel %vm964_vm3, %v6456_v34, -inf  ;;  %v6478_v49 = vunpack.c.l.bf16 %v930_v15 }
 0x237   : >> { %984 = vmax.xlane.f32.xlu0 %v983_v47  ;;  %8053 = vst [vmem:[#allocation11_spill] sm:$0xff] %v6467_v20  ;;  %v6480_v22 = vunpack.c.l.bf16 %v4791_v25  ;;  %v6485_v3 = vadd.f32 %v6467_v20, %v902_v11 }
 0x238   : >> { %v890_v4 = vmul.f32 0.2, %v874_v13 }
 0x239   : >> { %v980_v11 = vsel %vm964_vm3, %v6485_v3, -inf }
 0x23a   : >> { %v5642_v26 = vpop.eup %5641  ;;  %v906_v47 = vmax.f32 %v874_v13, %v890_v4  ;;  %v986_v13 = vsel %vm964_vm3, %v6463_v35, -inf }
 0x23b   : >> { %v5644_v10 = vpop.eup %5643  ;;  %978 = vmax.xlane.f32.xlu0 %v977_v16  ;;  %v879_v21 = vmul.f32 %v5642_v26, %v767_v12  ;;  %v907_v12 = vmax.f32 %v875_v6, %v891_v27  ;;  %v889_v26 = vmul.f32 0.2, %v873_v8 }
 0x23c   : >> { %v5646_v32 = vpop.eup %5645  ;;  %v6476_v29 = vadd.f32 %v6459_v50, %v906_v47  ;;  %v877_v40 = vmul.f32 %v5644_v10, %v765_v14  ;;  %v6492_v14 = vunpack.c.l.bf16 %v4790_v5 }
 0x23d   : >> { %v5648_v28 = vpop.eup %5647  ;;  %v895_v4 = vmul.f32 0.2, %v879_v21  ;;  %v880_v23 = vmul.f32 %v5646_v32, %v768_v1  ;;  %v6497_v32 = vadd.f32 %v6480_v22, %v907_v12  ;;  %v905_v47 = vmax.f32 %v873_v8, %v889_v26 }
 0x23e   : >> { %v992_v2 = vsel %vm964_vm3, %v6476_v29, -inf  ;;  %v878_v16 = vmul.f32 %v5648_v28, %v766_v9  ;;  %v892_v1 = vmul.f32 0.2, %v876_v0  ;;  %v893_v9 = vmul.f32 0.2, %v877_v40 }
 0x23f   : >> { %993 = vmax.xlane.f32.xlu1 %v992_v2  ;;  %987 = vmax.xlane.f32.xlu0 %v986_v13  ;;  %v911_v15 = vmax.f32 %v879_v21, %v895_v4  ;;  %v6501_v21 = vunpack.c.h.bf16 %v4791_v25  ;;  %v995_v27 = vsel %vm964_vm3, %v6497_v32, -inf  ;;  %v6506_v6 = vadd.f32 %v6492_v14, %v905_v47  ;;  %v4792_v13 = vld [vmem:[%s6388_s9 + $0x30] sm:$0xff]  }
 0x240   : >> { %v908_v5 = vmax.f32 %v876_v0, %v892_v1  ;;  %v909_v2 = vmax.f32 %v877_v40, %v893_v9  ;;  %v6514_v25 = vunpack.c.l.bf16 %v4792_v13  ;;  %v896_v40 = vmul.f32 0.2, %v880_v23 }
 0x241   : >> { %v6490_v10 = vadd.f32 %v6478_v49, %v911_v15  ;;  %v989_v8 = vsel %vm964_vm3, %v6506_v6, -inf  ;;  %v931_v15 = vld [vmem:[%s6388_s9 + $0x3c] sm:$0x3]  ;;  %v894_v1 = vmul.f32 0.2, %v878_v16 }
 0x242   : >> { %v6512_v4 = vadd.f32 %v6501_v21, %v908_v5  ;;  %v6519_v26 = vadd.f32 %v6514_v25, %v909_v2  ;;  %v6532_v47 = vunpack.c.l.bf16 %v931_v15  ;;  %v1442_v15 = vsel %vm374_vm1, %v6367_v17, 0 }
 0x243   : >> { %v1007_v28 = vsel %vm964_vm3, %v6490_v10, -inf  ;;  %981 = vmax.xlane.f32.xlu0 %v980_v11  ;;  %v912_v11 = vmax.f32 %v880_v23, %v896_v40 }
 0x244   : >> { %1008 = vmax.xlane.f32.xlu1 %v1007_v28  ;;  %v998_v12 = vsel %vm964_vm3, %v6512_v4, -inf  ;;  %v1001_v0 = vsel %vm964_vm3, %v6519_v26, -inf  ;;  %v910_v28 = vmax.f32 %v878_v16, %v894_v1 }
 0x247   : >> { %996 = vmax.xlane.f32.xlu0 %v995_v27 }
 0x24b   : >> { %990 = vmax.xlane.f32.xlu0 %v989_v8 }
 0x24f   : >> { %999 = vmax.xlane.f32.xlu0 %v998_v12 }
 0x253   : >> { %1002 = vmax.xlane.f32.xlu0 %v1001_v0 }
 0x255   : >> { %1432 = vrot.lane.b32.xlu1 %v6258_v54, %s6052_s29  ;;  %v6536_v54 = vadd.f32 %v6532_v47, %v912_v11 }
 0x259   : >> { %1434 = vrot.lane.b32.xlu1 %v6294_v63, %s6052_s29  ;;  %v6538_v63 = vunpack.c.h.bf16 %v4792_v13 }
 0x269   : >> { %1430 = vrot.lane.b32.xlu0 %v6265_v56, %s6052_s29  ;;  %v8054_v56 = vmov 0  }
 0x26d   : >> { %1572 = vperm.xlu0 %5572, %v6194_v37   ;;  %v1011_v37 = vsel %vm1010_vm4, %v6536_v54, -inf }
 0x271   : >> { %1584 = vperm.xlu0 %5572, %v6231_v48   ;;  %v6544_v48 = vadd.f32 %v6538_v63, %v910_v28 }
 0x275   : >> { %1592 = vperm.xlu0 %5572, %v6225_v46   ;;  %v1004_v46 = vsel %vm964_vm3, %v6544_v48, -inf }
 0x279   : >> { %1600 = vperm.xlu0 %5572, %v6260_v55  }
 0x27d   : >> { %1012 = vmax.xlane.f32.xlu1 %v1011_v37  ;;  %1608 = vperm.xlu0 %5572, %v6254_v53  }
 0x281   : >> { %1005 = vmax.xlane.f32.xlu1 %v1004_v46  ;;  %1616 = vperm.xlu0 %5572, %v6289_v62  }
 0x285   : >> { %1624 = vperm.xlu0 %5572, %v6283_v60  }
 0x289   : >> { %5573 = vset.pattern.permute.xlu0 %v8054_v56 }
 0x292   : >> { %1436 = vrot.lane.b32.xlu1 %v6287_v61, %s6052_s29 }
 0x296   : >> { %1564 = vperm.xlu1 %5571, %v6197_v38  }
 0x29a   : >> { %1568 = vperm.xlu1 %5571, %v6206_v41  }
 0x29e   : >> { %1576 = vperm.xlu1 %5571, %v6200_v39  }
 0x2a2   : >> { %1580 = vperm.xlu1 %5571, %v6220_v45  }
 0x2a6   : >> { %1588 = vperm.xlu1 %5571, %v6215_v44  }
 0x2aa   : >> { %1596 = vperm.xlu1 %5571, %v6249_v52  }
 0x2ae   : >> { %1604 = vperm.xlu1 %5571, %v6244_v51  }
 0x2b2   : >> { %1612 = vperm.xlu1 %5571, %v6278_v59  }
 0x2b6   : >> { %1620 = vperm.xlu1 %5571, %v6273_v58  }
 0x2b8   : >> { %v973_v53 = vpop.xlane.xlu0 %972 }
 0x2b9   : >> { %v1016_v44 = vsub.f32 %v6412_v57, %v973_v53 }
 0x2ba   : >> { %5574 = vset.pattern.permute.xlu1 %v8054_v56 }
 0x2bb   : >> { %v970_v38 = vpop.xlane.xlu1 %969 }
 0x2bc   : >> { %v1015_v41 = vsub.f32 %v6425_v19, %v970_v38  ;;  %v967_v55 = vpop.xlane.xlu0 %966 }
 0x2bd   : >> { %v1014_v39 = vsub.f32 %v6419_v31, %v967_v55 }
 0x2bf   : >> { %v1030_v45 = vpack.c.bf16 %v1015_v41, %v1014_v39 }
 0x2c0   : >> { %v976_v60 = vpop.xlane.xlu0 %975 }
 0x2c1   : >> { %v1039_v52 = vmul.bf16 1069105081, %v1030_v45  ;;  %v1017_v51 = vsub.f32 %v6430_v43, %v976_v60  ;;  %v1448_v45 = vsel %vm374_vm1, %v6401_v24, 0 }
 0x2c3   : >> { %5649 = vpow.bf16 %v1039_v52  ;;  %v1031_v59 = vpack.c.bf16 %v1017_v51, %v1016_v44 }
 0x2c4   : >> { %v985_v61 = vpop.xlane.xlu0 %984 }
 0x2c5   : >> { %v1042_v58 = vmul.bf16 1069105081, %v1031_v59  ;;  %v1020_v27 = vsub.f32 %v6446_v33, %v985_v61 }
 0x2c7   : >> { %5651 = vpow.bf16 %v1042_v58 }
 0x2c8   : >> { %v979_v62 = vpop.xlane.xlu0 %978 }
 0x2c9   : >> { %v1018_v43 = vsub.f32 %v6456_v34, %v979_v62 }
 0x2cc   : >> { %v988_v23 = vpop.xlane.xlu0 %987  ;;  %v994_v34 = vpop.xlane.xlu1 %993 }
 0x2cd   : >> { %v1021_v16 = vsub.f32 %v6463_v35, %v988_v23  ;;  %v1439_v35 = vsel %vm374_vm1, %v6369_v18, 0  ;;  %v1023_v12 = vsub.f32 %v6476_v29, %v994_v34 }
 0x2ce   : >> { %v5650_v19 = vpop.eup %5649 }
 0x2cf   : >> { %5111 = vmatprep.mubr.msk.bf16.mxu1 %vm964_vm3, %v5650_v19  ;;  %5143 = vmatprep.mubr.msk.bf16.mxu0 %vm964_vm3, %v5650_v19  ;;  %v1033_v57 = vpack.c.bf16 %v1021_v16, %v1020_v27 }
 0x2d0   : >> { %v982_v31 = vpop.xlane.xlu0 %981 }
 0x2d1   : >> { %v1019_v5 = vsub.f32 %v6485_v3, %v982_v31  ;;  %v1048_v33 = vmul.bf16 1069105081, %v1033_v57  ;;  %v1009_v37 = vpop.xlane.xlu1 %1008 }
 0x2d2   : >> { %v5652_v9 = vpop.eup %5651  ;;  %v1028_v62 = vsub.f32 %v6490_v10, %v1009_v37  ;;  %v8055_v10 = vmov 1065369472  }
 0x2d3   : >> { %v1032_v13 = vpack.c.bf16 %v1019_v5, %v1018_v43  ;;  %5112 = vmatmul.mubr.msk.bf16.vlgmr.msra.gmra.mrb[4].mxu1 %vm964_vm3, %v5652_v9  ;;  %5144 = vmatmul.mubr.msk.bf16.vlgmr.msra.gmra.mrb[32].mxu0 %vm964_vm3, %v5652_v9 }
 0x2d4   : >> { %5160 = vmatpush3.bf16.xpose.msra.mxu1 %v1439_v35  ;;  %5192 = vmatpush3.bf16.msra.mxu0 %v6369_v18  ;;  %v997_v8 = vpop.xlane.xlu0 %996 }
 0x2d5   : >> { %v1045_v2 = vmul.bf16 1069105081, %v1032_v13  ;;  %5514 = vmatprep.subr.msk.bf16.mxu1 %vm374_vm1, %v6367_v17  ;;  %5193 = vmatprep.subr.bf16.mxu0 %v6367_v17  ;;  %v1024_v1 = vsub.f32 %v6497_v32, %v997_v8  ;;  %v1445_v32 = vsel %vm374_vm1, %v6403_v30, 0  ;;  %v1433_v55 = vpop.permute.xlu1 %1432 }
 0x2d6   : >> { %v1454_v51 = vsel %vm374_vm1, %v1433_v55, 0 }
 0x2d7   : >> { %5653 = vpow.bf16 %v1045_v2 }
 0x2d8   : >> { %5655 = vpow.bf16 %v1048_v33  ;;  %5194 = vmatpush3.bf16.msra.mxu0 %v6367_v17  ;;  %v991_v3 = vpop.xlane.xlu0 %990 }
 0x2d9   : >> { %5195 = vmatprep.subr.bf16.mxu0 %v6403_v30  ;;  %v1022_v0 = vsub.f32 %v6506_v6, %v991_v3  ;;  %v1435_v60 = vpop.permute.xlu1 %1434 }
 0x2da   : >> { %v1457_v59 = vsel %vm374_vm1, %v1435_v60, 0 }
 0x2db   : >> { %v1034_v40 = vpack.c.bf16 %v1023_v12, %v1022_v0 }
 0x2dc   : >> { %5162 = vmatpush3.bf16.xpose.msra.mxu1 %v1442_v15  ;;  %5196 = vmatpush3.bf16.msra.mxu0 %v6403_v30  ;;  %v1000_v11 = vpop.xlane.xlu0 %999 }
 0x2dd   : >> { %v1051_v28 = vmul.bf16 1069105081, %v1034_v40  ;;  %5515 = vmatprep.subr.msk.bf16.mxu1 %vm374_vm1, %v6403_v30  ;;  %5197 = vmatprep.subr.bf16.mxu0 %v6401_v24  ;;  %v1025_v29 = vsub.f32 %v6512_v4, %v1000_v11 }
 0x2df   : >> { %5657 = vpow.bf16 %v1051_v28  ;;  %v1035_v6 = vpack.c.bf16 %v1025_v29, %v1024_v1 }
 0x2e0   : >> { %5198 = vmatpush3.bf16.msra.mxu0 %v6401_v24  ;;  %v1003_v46 = vpop.xlane.xlu0 %1002 }
 0x2e1   : >> { %v1054_v53 = vmul.bf16 1069105081, %v1035_v6  ;;  %v1026_v19 = vsub.f32 %v6519_v26, %v1003_v46 }
 0x2e2   : >> { %v5654_v38 = vpop.eup %5653 }
 0x2e3   : >> { %v5656_v41 = vpop.eup %5655  ;;  %5659 = vpow.bf16 %v1054_v53  ;;  %5115 = vmatprep.mubr.msk.bf16.mxu1 %vm964_vm3, %v5654_v38  ;;  %5147 = vmatprep.mubr.msk.bf16.mxu0 %vm964_vm3, %v5654_v38 }
 0x2e4   : >> { %5164 = vmatpush3.bf16.xpose.msra.mxu1 %v1445_v32  ;;  %5148 = vmatmul.mubr.msk.bf16.gmra.mrb[36].mxu0 %vm964_vm3, %v5656_v41  ;;  %v1431_v4 = vpop.permute.xlu0 %1430 }
 0x2e5   : >> { %5116 = vmatmul.mubr.msk.bf16.gmra.mrb[8].mxu1 %vm964_vm3, %v5656_v41  ;;  %5516 = vmatprep.subr.msk.bf16.mxu1 %vm374_vm1, %v6401_v24  ;;  %v1451_v52 = vsel %vm374_vm1, %v1431_v4, 0 }
 0x2e6   : >> { %5199 = vmatprep.subr.bf16.mxu0 %v1431_v4 }
 0x2e7   : >> { %5200 = vmatpush3.bf16.msra.mxu0 %v1431_v4 }
 0x2e8   : >> { %5201 = vmatprep.subr.bf16.mxu0 %v1433_v55 }
 0x2ea   : >> { %v5658_v39 = vpop.eup %5657 }
 0x2eb   : >> { %5202 = vmatpush3.bf16.msra.mxu0 %v1433_v55  ;;  %5119 = vmatprep.mubr.msk.bf16.mxu1 %vm964_vm3, %v5658_v39 }
 0x2ec   : >> { %5151 = vmatprep.mubr.msk.bf16.mxu0 %vm964_vm3, %v5658_v39  ;;  %5166 = vmatpush3.bf16.xpose.msra.mxu1 %v1448_v45 }
 0x2ed   : >> { %5203 = vmatprep.subr.bf16.mxu0 %v1435_v60  ;;  %5517 = vmatprep.subr.msk.bf16.mxu1 %vm374_vm1, %v1431_v4 }
 0x2ee   : >> { %v5660_v44 = vpop.eup %5659 }
 0x2ef   : >> { %5204 = vmatpush3.bf16.msra.mxu0 %v1435_v60  ;;  %5120 = vmatmul.mubr.msk.bf16.gmra.mrb[12].mxu1 %vm964_vm3, %v5660_v44 }
 0x2f0   : >> { %5152 = vmatmul.mubr.msk.bf16.gmra.mrb[40].mxu0 %vm964_vm3, %v5660_v44 }
 0x2f4   : >> { %5168 = vmatpush3.bf16.xpose.msra.mxu1 %v1451_v52 }
 0x2f5   : >> { %5518 = vmatprep.subr.msk.bf16.mxu1 %vm374_vm1, %v1433_v55 }
 0x2fc   : >> { %5170 = vmatpush3.bf16.xpose.msra.mxu1 %v1454_v51 }
 0x2fd   : >> { %5519 = vmatprep.subr.msk.bf16.mxu1 %vm374_vm1, %v1435_v60 }
 0x304   : >> { %5172 = vmatpush3.bf16.xpose.msra.mxu1 %v1457_v59 }
 0x30a   : >> { %v1013_v61 = vpop.xlane.xlu1 %1012 }
 0x30b   : >> { %v1029_v58 = vsub.f32 %v6536_v54, %v1013_v61 }
 0x30d   : >> { %v1037_v23 = vpack.c.bf16 %v1029_v58, %v1028_v62 }
 0x30e   : >> { %v1006_v16 = vpop.xlane.xlu1 %1005 }
 0x30f   : >> { %v1027_v27 = vsub.f32 %v6544_v48, %v1006_v16  ;;  %v1060_v31 = vmul.bf16 1069105081, %v1037_v23 }
 0x311   : >> { %v1036_v57 = vpack.c.bf16 %v1027_v27, %v1026_v19 }
 0x312   : >> { %v1437_v43 = vpop.permute.xlu1 %1436 }
 0x313   : >> { %v1057_v5 = vmul.bf16 1069105081, %v1036_v57  ;;  %5520 = vmatprep.subr.msk.bf16.mxu1 %vm374_vm1, %v1437_v43  ;;  %5521 = vmatprep.subr.msk.bf16.mxu0 %vm1086_vm2, %v1437_v43  ;;  %v1460_v9 = vsel %vm374_vm1, %v1437_v43, 0  ;;  %v1930_v54 = vsel %vm1086_vm2, %v1437_v43, 0 }
 0x314   : >> { %5174 = vmatpush3.bf16.xpose.msra.mxu1 %v1460_v9  ;;  %5206 = vmatpush3.bf16.msra.mxu0 %v1930_v54 }
 0x315   : >> { %5661 = vpow.bf16 %v1057_v5  ;;  %5223 = vmatprep.subr.bf16.mxu0 %v8055_v10 }
 0x316   : >> { %5663 = vpow.bf16 %v1060_v31  ;;  %v6704_v52 = vpop.permute.xlu1 %1564 }
 0x31a   : >> { %v6706_v27 = vpop.permute.xlu1 %1568 }
 0x31e   : >> { %v1577_v54 = vpop.permute.xlu1 %1576 }
 0x320   : >> { %v5662_v26 = vpop.eup %5661 }
 0x321   : >> { %v5664_v48 = vpop.eup %5663  ;;  %5123 = vmatprep.mubr.msk.bf16.mxu1 %vm964_vm3, %v5662_v26  ;;  %5155 = vmatprep.mubr.msk.bf16.mxu0 %vm964_vm3, %v5662_v26 }
 0x322   : >> { %5124 = vmatmul.mubr.msk.bf16.gmra.mrb[16].mxu1 %vm964_vm3, %v5664_v48  ;;  %5156 = vmatmul.mubr.msk.bf16.gmra.mrb[44].mxu0 %vm964_vm3, %v5664_v48 }
 0x323   : >> { %5175 = vmatprep.mubr.msk.bf16.mxu1 %vm374_vm1, %v6369_v18 }
 0x32a   : >> { %5176 = vmatmul.mubr.msk.bf16.vlgmr.msra.gmra.mrb[20].mxu1 %vm374_vm1, %v6367_v17 }
 0x32b   : >> { %5179 = vmatprep.mubr.msk.bf16.mxu1 %vm374_vm1, %v6403_v30 }
 0x332   : >> { %5180 = vmatmul.mubr.msk.bf16.gmra.mrb[24].mxu1 %vm374_vm1, %v6401_v24 }
 0x333   : >> { %5183 = vmatprep.mubr.msk.bf16.mxu1 %vm374_vm1, %v1431_v4 }
 0x33a   : >> { %5184 = vmatmul.mubr.msk.bf16.gmra.mrb[28].mxu1 %vm374_vm1, %v1433_v55 }
 0x33b   : >> { %5187 = vmatprep.mubr.msk.bf16.mxu1 %vm374_vm1, %v1435_v60 }
 0x342   : >> { %5188 = vmatmul.mubr.msk.bf16.gmra.mrb[32].mxu1 %vm374_vm1, %v1437_v43 }
 0x3a6   : >> { %v6640_v13 = vpop.f32.mrb[4].mxu1  ;;  %v6642_v18 = vpop.f32.mrb[32].mxu0 }
 0x3a7   : >> { %v6644_v35 = vpop.f32.mrb[5].mxu1  ;;  %v6646_v17 = vpop.f32.mrb[33].mxu0 }
 0x3a8   : >> { %v6648_v30 = vpop.f32.mrb[6].mxu1  ;;  %v6650_v33 = vpop.f32.mrb[34].mxu0 }
 0x3a9   : >> { %8056 = vst [vmem:[#allocation12_spill] sm:$0xff] %v6648_v30  ;;  %v6652_v24 = vpop.f32.mrb[7].mxu1  ;;  %v6654_v8 = vpop.f32.mrb[35].mxu0 }
 0x3b7   : >> { %v6656_v2 = vpop.f32.mrb[36].mxu0 }
 0x3b8   : >> { %v6658_v34 = vpop.f32.mrb[8].mxu1  ;;  %v6660_v3 = vpop.f32.mrb[37].mxu0 }
 0x3b9   : >> { %8057 = vst [vmem:[#allocation13_spill] sm:$0xff] %v6658_v34  ;;  %v6662_v12 = vpop.f32.mrb[9].mxu1  ;;  %v6664_v0 = vpop.f32.mrb[38].mxu0 }
 0x3ba   : >> { %8058 = vst [vmem:[#allocation14_spill] sm:$0xff] %v6662_v12  ;;  %v6666_v40 = vpop.f32.mrb[10].mxu1  ;;  %v6668_v15 = vpop.f32.mrb[39].mxu0 }
 0x3bb   : >> { %8059 = vst [vmem:[#allocation15_spill] sm:$0xff] %v6666_v40  ;;  %v6670_v11 = vpop.f32.mrb[11].mxu1 }
 0x3bc   : >> { %8060 = vst [vmem:[#allocation16_spill] sm:$0xff] %v6670_v11 }
 0x3c2   : >> { %v6672_v1 = vpop.f32.mrb[12].mxu1 }
 0x3c3   : >> { %8061 = vst [vmem:[#allocation17_spill] sm:$0xff] %v6672_v1  ;;  %v6674_v28 = vpop.f32.mrb[40].mxu0  ;;  %v6676_v29 = vpop.f32.mrb[13].mxu1 }
 0x3c4   : >> { %8062 = vst [vmem:[#allocation18_spill] sm:$0xff] %v6676_v29  ;;  %v6678_v6 = vpop.f32.mrb[41].mxu0  ;;  %v6680_v37 = vpop.f32.mrb[14].mxu1 }
 0x3c5   : >> { %8063 = vst [vmem:[#allocation19_spill] sm:$0xff] %v6680_v37  ;;  %v6682_v46 = vpop.f32.mrb[42].mxu0  ;;  %v6684_v53 = vpop.f32.mrb[15].mxu1 }
 0x3c6   : >> { %8064 = vst [vmem:[#allocation20_spill] sm:$0xff] %v6684_v53  ;;  %v6686_v38 = vpop.f32.mrb[43].mxu0 }
 0x3f5   : >> { %v6688_v41 = vpop.f32.mrb[16].mxu1  ;;  %v6690_v32 = vpop.f32.mrb[44].mxu0 }
 0x3f6   : >> { %8065 = vst [vmem:[#allocation21_spill] sm:$0xff] %v6688_v41  ;;  %v6692_v4 = vpop.f32.mrb[17].mxu1  ;;  %v6694_v55 = vpop.f32.mrb[45].mxu0 }
 0x3f7   : >> { %8066 = vst [vmem:[#allocation22_spill] sm:$0xff] %v6692_v4  ;;  %v6696_v39 = vpop.f32.mrb[18].mxu1  ;;  %v6698_v45 = vpop.f32.mrb[46].mxu0 }
 0x3f8   : >> { %8067 = vst [vmem:[#allocation23_spill] sm:$0xff] %v6696_v39  ;;  %v6700_v60 = vpop.f32.mrb[19].mxu1  ;;  %v6702_v44 = vpop.f32.mrb[47].mxu0 }
 0x3f9   : >> { %8068 = vst [vmem:[#allocation24_spill] sm:$0xff] %v6700_v60 }
 0x3fd   : >> { %v5177_v51 = vpop.f32.mrb[20].mxu1 }
 0x3fe   : >> { %v4621_v59 = vmul.f32 -1.442695, %v5177_v51  ;;  %v1496_v61 = vpop.f32.mrb[21].mxu1 }
 0x3ff   : >> { %v4619_v58 = vmul.f32 -1.442695, %v1496_v61  ;;  %v5178_v62 = vpop.f32.mrb[22].mxu1  ;;  %v1573_v61 = vpop.permute.xlu0 %1572 }
 0x400   : >> { %5665 = vpow2.f32 %v4621_v59  ;;  %v4622_v23 = vmul.f32 -1.442695, %v5178_v62  ;;  %v1499_v16 = vpop.f32.mrb[23].mxu1 }
 0x401   : >> { %5667 = vpow2.f32 %v4619_v58  ;;  %v4620_v19 = vmul.f32 -1.442695, %v1499_v16 }
 0x402   : >> { %5669 = vpow2.f32 %v4622_v23 }
 0x403   : >> { %5671 = vpow2.f32 %v4620_v19  ;;  %v1585_v4 = vpop.permute.xlu0 %1584 }
 0x405   : >> { %v5181_v57 = vpop.f32.mrb[24].mxu1 }
 0x406   : >> { %v4625_v31 = vmul.f32 -1.442695, %v5181_v57  ;;  %v1512_v43 = vpop.f32.mrb[25].mxu1 }
 0x407   : >> { %v4623_v5 = vmul.f32 -1.442695, %v1512_v43  ;;  %v5182_v9 = vpop.f32.mrb[26].mxu1  ;;  %v6708_v43 = vpop.permute.xlu1 %1580 }
 0x408   : >> { %5673 = vpow2.f32 %v4625_v31  ;;  %v4626_v26 = vmul.f32 -1.442695, %v5182_v9  ;;  %v1515_v48 = vpop.f32.mrb[27].mxu1 }
 0x409   : >> { %5675 = vpow2.f32 %v4623_v5  ;;  %v4624_v51 = vmul.f32 -1.442695, %v1515_v48 }
 0x40a   : >> { %v5666_v59 = vpop.eup %5665  ;;  %5677 = vpow2.f32 %v4626_v26  ;;  %v8030_v26 = vsub.s32 1, %v6376_v36 }
 0x40b   : >> { %v5668_v58 = vpop.eup %5667  ;;  %v1693_v62 = vadd.f32 1.0, %v5666_v59  ;;  %5679 = vpow2.f32 %v4624_v51 }
 0x40c   : >> { %v5670_v16 = vpop.eup %5669  ;;  %v1691_v23 = vadd.f32 1.0, %v5668_v58 }
 0x40d   : >> { %v5672_v19 = vpop.eup %5671  ;;  %5681 = vrcp.f32 %v1693_v62  ;;  %v1694_v57 = vadd.f32 1.0, %v5670_v16  ;;  %v5185_v56 = vpop.f32.mrb[28].mxu1 }
 0x40e   : >> { %5683 = vrcp.f32 %v1691_v23  ;;  %v1692_v31 = vadd.f32 1.0, %v5672_v19  ;;  %v4629_v9 = vmul.f32 -1.442695, %v5185_v56  ;;  %v1528_v41 = vpop.f32.mrb[29].mxu1  ;;  %v6714_v56 = vrot.slane %v6324_v7, %v8030_v26 }
 0x40f   : >> { %5685 = vrcp.f32 %v1694_v57  ;;  %v4627_v5 = vmul.f32 -1.442695, %v1528_v41  ;;  %v5186_v48 = vpop.f32.mrb[30].mxu1  ;;  %v1589_v41 = vpop.permute.xlu1 %1588 }
 0x410   : >> { %5687 = vrcp.f32 %v1692_v31  ;;  %v4630_v51 = vmul.f32 -1.442695, %v5186_v48  ;;  %v1531_v59 = vpop.f32.mrb[31].mxu1  ;;  %v1627_v36 = vadd.f32 %v6704_v52, %v6714_v56  ;;  %v1632_v52 = vadd.f32 %v1585_v4, %v6714_v56 }
 0x411   : >> { %5689 = vpow2.f32 %v4629_v9  ;;  %v4628_v58 = vmul.f32 -1.442695, %v1531_v59  ;;  %v1629_v9 = vadd.f32 %v1573_v61, %v6714_v56  ;;  %v1593_v59 = vpop.permute.xlu0 %1592  ;;  %v1631_v4 = vadd.f32 %v6708_v43, %v6714_v56  ;;  %v8069_v43 = vld [vmem:[#allocation7_spill] sm:$0xff] }
 0x412   : >> { %v5674_v62 = vpop.eup %5673  ;;  %5691 = vpow2.f32 %v4627_v5 }
 0x413   : >> { %v5676_v16 = vpop.eup %5675  ;;  %v1697_v39 = vadd.f32 1.0, %v5674_v62  ;;  %5693 = vpow2.f32 %v4630_v51 }
 0x414   : >> { %v5678_v23 = vpop.eup %5677  ;;  %v1695_v19 = vadd.f32 1.0, %v5676_v16  ;;  %5695 = vpow2.f32 %v4628_v58  ;;  %v1630_v58 = vadd.f32 %v1577_v54, %v6714_v56 }
 0x415   : >> { %v5680_v57 = vpop.eup %5679  ;;  %5697 = vrcp.f32 %v1697_v39  ;;  %v1698_v31 = vadd.f32 1.0, %v5678_v23  ;;  %v5189_v48 = vpop.f32.mrb[32].mxu1 }
 0x416   : >> { %5699 = vrcp.f32 %v1695_v19  ;;  %v1696_v5 = vadd.f32 1.0, %v5680_v57  ;;  %v4633_v62 = vmul.f32 -1.442695, %v5189_v48  ;;  %v1544_v51 = vpop.f32.mrb[33].mxu1  ;;  %v1628_v19 = vadd.f32 %v6706_v27, %v6714_v56  ;;  %v6726_v34 = vpop.permute.xlu0 %1600 }
 0x417   : >> { %v5682_v1 = vpop.eup %5681  ;;  %5701 = vrcp.f32 %v1698_v31  ;;  %v4631_v7 = vmul.f32 -1.442695, %v1544_v51  ;;  %v5190_v26 = vpop.f32.mrb[34].mxu1 }
 0x418   : >> { %v5684_v16 = vpop.eup %5683  ;;  %5703 = vrcp.f32 %v1696_v5  ;;  %v4634_v39 = vmul.f32 -1.442695, %v5190_v26  ;;  %v1547_v23 = vpop.f32.mrb[35].mxu1  ;;  %v1741_v60 = vmul.f32 %v5682_v1, %v1629_v9  ;;  %v1634_v26 = vadd.f32 %v1593_v59, %v6714_v56 }
 0x419   : >> { %v5686_v61 = vpop.eup %5685  ;;  %5705 = vpow2.f32 %v4633_v62  ;;  %v4632_v57 = vmul.f32 -1.442695, %v1547_v23  ;;  %v1739_v48 = vmul.f32 %v5684_v16, %v1627_v36  ;;  %v6723_v31 = vpop.permute.xlu1 %1596  ;;  %v1633_v59 = vadd.f32 %v1589_v41, %v6714_v56 }
 0x41a   : >> { %v5688_v29 = vpop.eup %5687  ;;  %5707 = vpow2.f32 %v4631_v7  ;;  %v1742_v51 = vmul.f32 %v5686_v61, %v1630_v58  ;;  %v1757_v37 = vmul.f32 0.2, %v1741_v60  ;;  %v1635_v11 = vadd.f32 %v6723_v31, %v6714_v56 }
 0x41b   : >> { %v5690_v54 = vpop.eup %5689  ;;  %5709 = vpow2.f32 %v4634_v39  ;;  %v1755_v1 = vmul.f32 0.2, %v1739_v48  ;;  %v1740_v9 = vmul.f32 %v5688_v29, %v1628_v19 }
 0x41c   : >> { %v5692_v5 = vpop.eup %5691  ;;  %v1701_v27 = vadd.f32 1.0, %v5690_v54  ;;  %5711 = vpow2.f32 %v4632_v57  ;;  %v1758_v36 = vmul.f32 0.2, %v1742_v51  ;;  %v1773_v62 = vmax.f32 %v1741_v60, %v1757_v37 }
 0x41d   : >> { %v5694_v16 = vpop.eup %5693  ;;  %v1699_v7 = vadd.f32 1.0, %v5692_v5  ;;  %v1771_v58 = vmax.f32 %v1739_v48, %v1755_v1  ;;  %v1756_v23 = vmul.f32 0.2, %v1740_v9  ;;  %v1605_v54 = vpop.permute.xlu1 %1604  ;;  %v8070_v48 = vld [vmem:[#allocation4_spill] sm:$0xff] }
 0x41e   : >> { %v5696_v61 = vpop.eup %5695  ;;  %5713 = vrcp.f32 %v1701_v27  ;;  %v1702_v39 = vadd.f32 1.0, %v5694_v16  ;;  %v1774_v29 = vmax.f32 %v1742_v51, %v1758_v36  ;;  %v6738_v1 = vadd.f32 %v8070_v48, %v1773_v62  ;;  %v8071_v36 = vld [vmem:[#allocation6_spill] sm:$0xff] }
 0x41f   : >> { %v5698_v19 = vpop.eup %5697  ;;  %5715 = vrcp.f32 %v1699_v7  ;;  %v1700_v53 = vadd.f32 1.0, %v5696_v61  ;;  %v6732_v57 = vadd.f32 %v6407_v42, %v1771_v58  ;;  %v1772_v37 = vmax.f32 %v1740_v9, %v1756_v23  ;;  %v1609_v58 = vpop.permute.xlu0 %1608 }
 0x420   : >> { %v5700_v60 = vpop.eup %5699  ;;  %5717 = vrcp.f32 %v1702_v39  ;;  %v6735_v5 = vadd.f32 %v8069_v43, %v1774_v29  ;;  %v1745_v41 = vmul.f32 %v5698_v19, %v1633_v59 }
 0x421   : >> { %v5702_v27 = vpop.eup %5701  ;;  %5719 = vrcp.f32 %v1700_v53  ;;  %v1803_v51 = vsel %vm964_vm3, %v6732_v57, -inf  ;;  %v6743_v16 = vadd.f32 %v8071_v36, %v1772_v37  ;;  %v1743_v7 = vmul.f32 %v5700_v60, %v1631_v4  ;;  %v1613_v48 = vpop.permute.xlu1 %1612 }
 0x422   : >> { %v5704_v9 = vpop.eup %5703  ;;  %1804 = vmax.xlane.f32.xlu1 %v1803_v51  ;;  %v1761_v23 = vmul.f32 0.2, %v1745_v41  ;;  %v1746_v61 = vmul.f32 %v5702_v27, %v1634_v26  ;;  %v1637_v53 = vadd.f32 %v1605_v54, %v6714_v56  ;;  %v1809_v37 = vsel %vm964_vm3, %v6738_v1, -inf }
 0x423   : >> { %v5706_v39 = vpop.eup %5705  ;;  %v1806_v62 = vsel %vm964_vm3, %v6743_v16, -inf  ;;  %v1759_v29 = vmul.f32 0.2, %v1743_v7  ;;  %v1744_v59 = vmul.f32 %v5704_v9, %v1632_v52  ;;  %v1812_v26 = vsel %vm964_vm3, %v6735_v5, -inf }
 0x424   : >> { %v5708_v19 = vpop.eup %5707  ;;  %v1705_v43 = vadd.f32 1.0, %v5706_v39  ;;  %1807 = vmax.xlane.f32.xlu0 %v1806_v62  ;;  %v1762_v4 = vmul.f32 0.2, %v1746_v61  ;;  %v1777_v9 = vmax.f32 %v1745_v41, %v1761_v23  ;;  %v8072_v62 = vld [vmem:[#allocation9_spill] sm:$0xff]  ;;  %v1636_v23 = vadd.f32 %v6726_v34, %v6714_v56 }
 0x425   : >> { %v5710_v60 = vpop.eup %5709  ;;  %v1703_v36 = vadd.f32 1.0, %v5708_v19  ;;  %v1775_v27 = vmax.f32 %v1743_v7, %v1759_v29  ;;  %v1760_v51 = vmul.f32 0.2, %v1744_v59  ;;  %v1617_v19 = vpop.permute.xlu0 %1616 }
 0x426   : >> { %v5712_v42 = vpop.eup %5711  ;;  %5721 = vrcp.f32 %v1705_v43  ;;  %v1706_v52 = vadd.f32 1.0, %v5710_v60  ;;  %1813 = vmax.xlane.f32.xlu1 %v1812_v26  ;;  %v1778_v54 = vmax.f32 %v1746_v61, %v1762_v4  ;;  %v1638_v43 = vadd.f32 %v1609_v58, %v6714_v56  ;;  %v8073_v61 = vld [vmem:[#allocation8_spill] sm:$0xff] }
 0x427   : >> { %5723 = vrcp.f32 %v1703_v36  ;;  %v1704_v39 = vadd.f32 1.0, %v5712_v42  ;;  %v6753_v12 = vadd.f32 %v8072_v62, %v1775_v27  ;;  %v1776_v40 = vmax.f32 %v1744_v59, %v1760_v51  ;;  %v8074_v59 = vld [vmem:[#allocation10_spill] sm:$0xff] }
 0x428   : >> { %v5714_v30 = vpop.eup %5713  ;;  %5725 = vrcp.f32 %v1706_v52  ;;  %1810 = vmax.xlane.f32.xlu0 %v1809_v37  ;;  %v6764_v29 = vadd.f32 %v8073_v61, %v1777_v9  ;;  %v6767_v4 = vadd.f32 %v8074_v59, %v1778_v54  ;;  %v1639_v52 = vadd.f32 %v1613_v48, %v6714_v56 }
 0x429   : >> { %v5716_v7 = vpop.eup %5715  ;;  %5727 = vrcp.f32 %v1704_v39  ;;  %v6759_v41 = vadd.f32 %v6467_v20, %v1776_v40  ;;  %v1749_v36 = vmul.f32 %v5714_v30, %v1637_v53  ;;  %v1815_v58 = vsel %vm964_vm3, %v6753_v12, -inf  ;;  %v1621_v53 = vpop.permute.xlu1 %1620 }
 0x42a   : >> { %v5718_v42 = vpop.eup %5717  ;;  %v1747_v31 = vmul.f32 %v5716_v7, %v1635_v11  ;;  %v1625_v51 = vpop.permute.xlu0 %1624  ;;  %v1641_v54 = vadd.f32 %v1621_v53, %v6714_v56  ;;  %v1821_v39 = vsel %vm964_vm3, %v6764_v29, -inf  ;;  %v1824_v7 = vsel %vm964_vm3, %v6767_v4, -inf }
 0x42b   : >> { %v5720_v37 = vpop.eup %5719  ;;  %v1818_v40 = vsel %vm964_vm3, %v6759_v41, -inf  ;;  %v1765_v60 = vmul.f32 0.2, %v1749_v36  ;;  %v1750_v30 = vmul.f32 %v5718_v42, %v1638_v43  ;;  %5729 = vrcp.f32 %v6654_v8 }
 0x42c   : >> { %1816 = vmax.xlane.f32.xlu0 %v1815_v58  ;;  %1819 = vmax.xlane.f32.xlu1 %v1818_v40  ;;  %v1763_v34 = vmul.f32 0.2, %v1747_v31  ;;  %v1748_v26 = vmul.f32 %v5720_v37, %v1636_v23  ;;  %5731 = vrcp.f32 %v6642_v18 }
 0x42d   : >> { %v1766_v27 = vmul.f32 0.2, %v1750_v30  ;;  %v1781_v43 = vmax.f32 %v1749_v36, %v1765_v60  ;;  %5733 = vrcp.f32 %v6646_v17 }
 0x42e   : >> { %v1779_v9 = vmax.f32 %v1747_v31, %v1763_v34  ;;  %v1764_v11 = vmul.f32 0.2, %v1748_v26  ;;  %v1642_v31 = vadd.f32 %v1625_v51, %v6714_v56  ;;  %v1640_v34 = vadd.f32 %v1617_v19, %v6714_v56 }
 0x42f   : >> { %v1782_v58 = vmax.f32 %v1750_v30, %v1766_v27  ;;  %5735 = vrcp.f32 %v6650_v33 }
 0x430   : >> { %v5722_v42 = vpop.eup %5721  ;;  %1822 = vmax.xlane.f32.xlu0 %v1821_v39  ;;  %1825 = vmax.xlane.f32.xlu1 %v1824_v7  ;;  %v6780_v23 = vadd.f32 %v6492_v14, %v1779_v9  ;;  %v1780_v37 = vmax.f32 %v1748_v26, %v1764_v11  ;;  %v6790_v9 = vadd.f32 %v6480_v22, %v1781_v43  ;;  %5737 = vrcp.f32 %v6668_v15 }
 0x431   : >> { %v5724_v48 = vpop.eup %5723  ;;  %v1753_v40 = vmul.f32 %v5722_v42, %v1641_v54  ;;  %v6795_v51 = vadd.f32 %v6501_v21, %v1782_v58  ;;  %5739 = vrcp.f32 %v6664_v0 }
 0x432   : >> { %v5726_v53 = vpop.eup %5725  ;;  %v6785_v20 = vadd.f32 %v6459_v50, %v1780_v37  ;;  %v1751_v59 = vmul.f32 %v5724_v48, %v1639_v52  ;;  %v1827_v60 = vsel %vm964_vm3, %v6780_v23, -inf  ;;  %v1833_v39 = vsel %vm964_vm3, %v6790_v9, -inf }
 0x433   : >> { %v5728_v36 = vpop.eup %5727  ;;  %v1769_v26 = vmul.f32 0.2, %v1753_v40  ;;  %v1754_v30 = vmul.f32 %v5726_v53, %v1642_v31  ;;  %v1836_v43 = vsel %vm964_vm3, %v6795_v51, -inf }
 0x434   : >> { %1828 = vmax.xlane.f32.xlu0 %v1827_v60  ;;  %v1830_v27 = vsel %vm964_vm3, %v6785_v20, -inf  ;;  %v1767_v56 = vmul.f32 0.2, %v1751_v59  ;;  %v1752_v19 = vmul.f32 %v5728_v36, %v1640_v34 }
 0x435   : >> { %1831 = vmax.xlane.f32.xlu1 %v1830_v27  ;;  %v1770_v52 = vmul.f32 0.2, %v1754_v30  ;;  %v1785_v7 = vmax.f32 %v1753_v40, %v1769_v26  ;;  %v5730_v60 = vpop.eup %5729 }
 0x436   : >> { %v1783_v11 = vmax.f32 %v1751_v59, %v1767_v56  ;;  %v1768_v54 = vmul.f32 0.2, %v1752_v19  ;;  %v5732_v26 = vpop.eup %5731 }
 0x437   : >> { %v1786_v58 = vmax.f32 %v1754_v30, %v1770_v52  ;;  %v6810_v31 = vadd.f32 %v1785_v7, %v6478_v49  ;;  %v5734_v30 = vpop.eup %5733 }
 0x438   : >> { %1834 = vmax.xlane.f32.xlu0 %v1833_v39  ;;  %v6802_v42 = vadd.f32 %v6514_v25, %v1783_v11  ;;  %v1784_v37 = vmax.f32 %v1752_v19, %v1768_v54 }
 0x439   : >> { %1837 = vmax.xlane.f32.xlu1 %v1836_v43  ;;  %v6815_v53 = vadd.f32 %v1786_v58, %v6532_v47  ;;  %v1845_v34 = vsel %vm964_vm3, %v6810_v31, -inf  ;;  %v5736_v27 = vpop.eup %5735 }
 0x43a   : >> { %v6805_v48 = vadd.f32 %v6538_v63, %v1784_v37  ;;  %v1839_v59 = vsel %vm964_vm3, %v6802_v42, -inf  ;;  %v5738_v56 = vpop.eup %5737 }
 0x43b   : >> { %v1848_v36 = vsel %vm1010_vm4, %v6815_v53, -inf  ;;  %v5740_v8 = vpop.eup %5739 }
 0x43c   : >> { %1840 = vmax.xlane.f32.xlu0 %v1839_v59  ;;  %v1842_v40 = vsel %vm964_vm3, %v6805_v48, -inf }
 0x43d   : >> { %1843 = vmax.xlane.f32.xlu1 %v1842_v40 }
 0x440   : >> { %1846 = vmax.xlane.f32.xlu0 %v1845_v34 }
 0x441   : >> { %1849 = vmax.xlane.f32.xlu1 %v1848_v36 }
 0x452   : >> { %1309 = vperm.xlu1 %5574, %v5730_v60  }
 0x456   : >> { %1314 = vperm.xlu1 %5574, %v5732_v26   ;;  %1304 = vperm.xlu0 %5573, %v5734_v30  }
 0x45a   : >> { %1319 = vperm.xlu1 %5574, %v5736_v27   ;;  %1329 = vperm.xlu0 %5573, %v5738_v56  }
 0x45e   : >> { %1339 = vperm.xlu0 %5573, %v5740_v8  }
 0x4af   : >> { %v1805_v18 = vpop.xlane.xlu1 %1804 }
 0x4b0   : >> { %v1851_v33 = vsub.f32 %v6732_v57, %v1805_v18 }
 0x4b1   : >> { %v1808_v17 = vpop.xlane.xlu0 %1807 }
 0x4b2   : >> { %v1852_v15 = vsub.f32 %v6743_v16, %v1808_v17 }
 0x4b3   : >> { %v1814_v19 = vpop.xlane.xlu1 %1813 }
 0x4b4   : >> { %v1867_v52 = vpack.c.bf16 %v1852_v15, %v1851_v33  ;;  %v1854_v54 = vsub.f32 %v6735_v5, %v1814_v19 }
 0x4b5   : >> { %v1811_v11 = vpop.xlane.xlu0 %1810 }
 0x4b6   : >> { %v1876_v0 = vmul.bf16 1069105081, %v1867_v52  ;;  %v1853_v39 = vsub.f32 %v6738_v1, %v1811_v11 }
 0x4b8   : >> { %5741 = vpow.bf16 %v1876_v0  ;;  %v1868_v7 = vpack.c.bf16 %v1854_v54, %v1853_v39 }
 0x4b9   : >> { %v1817_v43 = vpop.xlane.xlu0 %1816  ;;  %v1820_v37 = vpop.xlane.xlu1 %1819 }
 0x4ba   : >> { %v1879_v58 = vmul.bf16 1069105081, %v1868_v7  ;;  %v1855_v59 = vsub.f32 %v6753_v12, %v1817_v43  ;;  %v1856_v40 = vsub.f32 %v6759_v41, %v1820_v37 }
 0x4bc   : >> { %5743 = vpow.bf16 %v1879_v58  ;;  %v1869_v57 = vpack.c.bf16 %v1856_v40, %v1855_v59 }
 0x4bd   : >> { %v1823_v16 = vpop.xlane.xlu0 %1822  ;;  %v1826_v34 = vpop.xlane.xlu1 %1825 }
 0x4be   : >> { %v1882_v36 = vmul.bf16 1069105081, %v1869_v57  ;;  %v1857_v60 = vsub.f32 %v6764_v29, %v1823_v16  ;;  %v1858_v5 = vsub.f32 %v6767_v4, %v1826_v34  ;;  %v8075_v57 = vld [vmem:[#allocation2_spill] sm:$0xff]  ;;  %v8076_v16 = vmov 0.0   ;;  %v5583_v34 = vld [vmem:[%s7996_s2 + $0x10] sm:$0xff]  }
 0x4bf   : >> { %5255 = vmatprep.subr.bf16.mxu1 %v5583_v34 }
 0x4c0   : >> { %5745 = vpow.bf16 %v1882_v36  ;;  %v1870_v1 = vpack.c.bf16 %v1858_v5, %v1857_v60  ;;  %5256 = vmatpush3.bf16.msra.mxu1 %v5583_v34 }
 0x4c1   : >> { %v1829_v26 = vpop.xlane.xlu0 %1828 }
 0x4c2   : >> { %v1885_v30 = vmul.bf16 1069105081, %v1870_v1  ;;  %v1859_v27 = vsub.f32 %v6780_v23, %v1829_v26  ;;  %v1832_v56 = vpop.xlane.xlu1 %1831 }
 0x4c3   : >> { %v5742_v8 = vpop.eup %5741  ;;  %v1860_v12 = vsub.f32 %v6785_v20, %v1832_v56 }
 0x4c4   : >> { %5747 = vpow.bf16 %v1885_v30  ;;  %5207 = vmatprep.mubr.msk.bf16.mxu0 %vm964_vm3, %v5742_v8 }
 0x4c5   : >> { %v1871_v41 = vpack.c.bf16 %v1860_v12, %v1859_v27  ;;  %v1835_v18 = vpop.xlane.xlu0 %1834 }
 0x4c6   : >> { %v1861_v17 = vsub.f32 %v6790_v9, %v1835_v18  ;;  %v1838_v29 = vpop.xlane.xlu1 %1837 }
 0x4c7   : >> { %v5744_v33 = vpop.eup %5743  ;;  %v1888_v4 = vmul.bf16 1069105081, %v1871_v41  ;;  %v1862_v15 = vsub.f32 %v6795_v51, %v1838_v29 }
 0x4c8   : >> { %5208 = vmatmul.mubr.msk.bf16.vlgmr.msra.gmra.mrb[48].mxu0 %vm964_vm3, %v5744_v33 }
 0x4c9   : >> { %5749 = vpow.bf16 %v1888_v4  ;;  %v1872_v23 = vpack.c.bf16 %v1862_v15, %v1861_v17  ;;  %5224 = vmatpush3.bf16.msra.mxu0 %v8055_v10  ;;  %v1841_v19 = vpop.xlane.xlu0 %1840 }
 0x4ca   : >> { %v1863_v20 = vsub.f32 %v6802_v42, %v1841_v19  ;;  %v1844_v52 = vpop.xlane.xlu1 %1843  ;;  %5225 = vmatprep.subr.bf16.mxu0 %v8055_v10 }
 0x4cb   : >> { %v5746_v11 = vpop.eup %5745  ;;  %v1891_v0 = vmul.bf16 1069105081, %v1872_v23  ;;  %v1864_v9 = vsub.f32 %v6805_v48, %v1844_v52 }
 0x4cc   : >> { %5211 = vmatprep.mubr.msk.bf16.mxu0 %vm964_vm3, %v5746_v11 }
 0x4cd   : >> { %5751 = vpow.bf16 %v1891_v0  ;;  %v1873_v51 = vpack.c.bf16 %v1864_v9, %v1863_v20  ;;  %5226 = vmatpush3.bf16.msra.mxu0 %v8055_v10  ;;  %v1847_v54 = vpop.xlane.xlu0 %1846 }
 0x4ce   : >> { %v1865_v39 = vsub.f32 %v6810_v31, %v1847_v54  ;;  %v1850_v7 = vpop.xlane.xlu1 %1849  ;;  %5227 = vmatprep.subr.bf16.mxu0 %v8055_v10 }
 0x4cf   : >> { %v5748_v42 = vpop.eup %5747  ;;  %v1894_v43 = vmul.bf16 1069105081, %v1873_v51  ;;  %v1866_v37 = vsub.f32 %v6815_v53, %v1850_v7 }
 0x4d0   : >> { %5212 = vmatmul.mubr.msk.bf16.gmra.mrb[52].mxu0 %vm964_vm3, %v5748_v42 }
 0x4d1   : >> { %5753 = vpow.bf16 %v1894_v43  ;;  %v1874_v48 = vpack.c.bf16 %v1866_v37, %v1865_v39  ;;  %5228 = vmatpush3.bf16.msra.mxu0 %v8055_v10 }
 0x4d2   : >> { %5229 = vmatprep.subr.bf16.mxu0 %v8055_v10 }
 0x4d3   : >> { %v1897_v58 = vmul.bf16 1069105081, %v1874_v48 }
 0x4d4   : >> { %v5750_v59 = vpop.eup %5749 }
 0x4d5   : >> { %5755 = vpow.bf16 %v1897_v58  ;;  %5215 = vmatprep.mubr.msk.bf16.mxu0 %vm964_vm3, %v5750_v59  ;;  %5230 = vmatpush3.bf16.msra.mxu0 %v8055_v10 }
 0x4d6   : >> { %5231 = vmatprep.subr.bf16.mxu0 %v8055_v10 }
 0x4d8   : >> { %v5752_v31 = vpop.eup %5751 }
 0x4d9   : >> { %5216 = vmatmul.mubr.msk.bf16.gmra.mrb[56].mxu0 %vm964_vm3, %v5752_v31 }
 0x4da   : >> { %5232 = vmatpush3.bf16.msra.mxu0 %v8055_v10 }
 0x4db   : >> { %5233 = vmatprep.subr.bf16.mxu0 %v8055_v10 }
 0x4dc   : >> { %v5754_v53 = vpop.eup %5753 }
 0x4dd   : >> { %5219 = vmatprep.mubr.msk.bf16.mxu0 %vm964_vm3, %v5754_v53 }
 0x4de   : >> { %5234 = vmatpush3.bf16.msra.mxu0 %v8055_v10 }
 0x4df   : >> { %5235 = vmatprep.subr.bf16.mxu0 %v8055_v10 }
 0x4e0   : >> { %v5756_v40 = vpop.eup %5755 }
 0x4e1   : >> { %5220 = vmatmul.mubr.msk.bf16.gmra.mrb[60].mxu0 %vm964_vm3, %v5756_v40 }
 0x4e2   : >> { %5236 = vmatpush3.bf16.msra.mxu0 %v8055_v10  ;;  %5239 = vmatprep.mubr.msk.bf16.mxu0 %vm964_vm3, %v5742_v8 }
 0x4e3   : >> { %5522 = vmatprep.subr.msk.bf16.mxu0 %vm1086_vm2, %v8055_v10 }
 0x4e6   : >> { %5238 = vmatpush3.bf16.msra.mxu0 %v8075_v57 }
 0x4e7   : >> { %5275 = vmatprep.subr.bf16.mxu0 %v8076_v16 }
 0x4e9   : >> { %5240 = vmatmul.mubr.msk.bf16.vlgmr.msra.gmra.mrb[64].mxu0 %vm964_vm3, %v5744_v33 }
 0x4ea   : >> { %5243 = vmatprep.mubr.msk.bf16.mxu0 %vm964_vm3, %v5746_v11 }
 0x4f1   : >> { %5244 = vmatmul.mubr.msk.bf16.gmra.mrb[68].mxu0 %vm964_vm3, %v5748_v42 }
 0x4f2   : >> { %5247 = vmatprep.mubr.msk.bf16.mxu0 %vm964_vm3, %v5750_v59 }
 0x4f9   : >> { %5248 = vmatmul.mubr.msk.bf16.gmra.mrb[72].mxu0 %vm964_vm3, %v5752_v31 }
 0x4fa   : >> { %5251 = vmatprep.mubr.msk.bf16.mxu0 %vm964_vm3, %v5754_v53 }
 0x501   : >> { %5252 = vmatmul.mubr.msk.bf16.gmra.mrb[76].mxu0 %vm964_vm3, %v5756_v40  ;;  %v5584_v40 = vld [vmem:[%s7996_s2 + $0x18] sm:$0xff]  }
 0x502   : >> { %5291 = vmatprep.mubr.msk.bf16.mxu0 %vm6050_vm0, %v8076_v16  ;;  %5257 = vmatprep.subr.bf16.mxu1 %v5584_v40 }
 0x503   : >> { %5258 = vmatpush3.bf16.msra.mxu1 %v5584_v40 }
 0x59b   : >> { %v6881_v36 = vpop.f32.mrb[48].mxu0 }
 0x59c   : >> { %v6883_v60 = vpop.f32.mrb[49].mxu0 }
 0x59d   : >> { %v6885_v5 = vpop.f32.mrb[50].mxu0 }
 0x59e   : >> { %v6887_v1 = vpop.f32.mrb[51].mxu0 }
 0x5a3   : >> { %v6889_v26 = vpop.f32.mrb[52].mxu0 }
 0x5a4   : >> { %v6891_v30 = vpop.f32.mrb[53].mxu0 }
 0x5a5   : >> { %v6893_v27 = vpop.f32.mrb[54].mxu0 }
 0x5a6   : >> { %v6895_v56 = vpop.f32.mrb[55].mxu0 }
 0x5ac   : >> { %v6897_v8 = vpop.f32.mrb[56].mxu0 }
 0x5ad   : >> { %v6899_v12 = vpop.f32.mrb[57].mxu0 }
 0x5ae   : >> { %v6901_v41 = vpop.f32.mrb[58].mxu0 }
 0x5af   : >> { %v6903_v18 = vpop.f32.mrb[59].mxu0 }
 0x5b4   : >> { %v6905_v17 = vpop.f32.mrb[60].mxu0 }
 0x5b5   : >> { %v6907_v29 = vpop.f32.mrb[61].mxu0 }
 0x5b6   : >> { %v6909_v33 = vpop.f32.mrb[62].mxu0 }
 0x5b7   : >> { %v6911_v4 = vpop.f32.mrb[63].mxu0 }
 0x5bc   : >> { %v5241_v15 = vpop.f32.mrb[64].mxu0 }
 0x5bd   : >> { %5757 = vrcp.f32 %v5241_v15  ;;  %v2063_v23 = vpop.f32.mrb[65].mxu0 }
 0x5be   : >> { %v5242_v19 = vpop.f32.mrb[66].mxu0  ;;  %5759 = vrcp.f32 %v2063_v23 }
 0x5bf   : >> { %v2066_v20 = vpop.f32.mrb[67].mxu0 }
 0x5c0   : >> { %5761 = vrcp.f32 %v2066_v20 }
 0x5c4   : >> { %v5245_v52 = vpop.f32.mrb[68].mxu0 }
 0x5c5   : >> { %v2079_v11 = vpop.f32.mrb[69].mxu0 }
 0x5c6   : >> { %v5246_v0 = vpop.f32.mrb[70].mxu0 }
 0x5c7   : >> { %v5758_v9 = vpop.eup %5757  ;;  %v2082_v51 = vpop.f32.mrb[71].mxu0 }
 0x5c8   : >> { %5763 = vrcp.f32 %v2082_v51  ;;  %2154 = vperm.xlu1 %5574, %v5758_v9   ;;  %v5760_v54 = vpop.eup %5759 }
 0x5c9   : >> { %5765 = vrcp.f32 %v5242_v19 }
 0x5ca   : >> { %5767 = vrcp.f32 %v5246_v0  ;;  %v5762_v43 = vpop.eup %5761 }
 0x5cb   : >> { %5769 = vrcp.f32 %v6660_v3 }
 0x5cc   : >> { %2144 = vperm.xlu1 %5574, %v5760_v54   ;;  %v5249_v39 = vpop.f32.mrb[72].mxu0  ;;  %5771 = vrcp.f32 %v6686_v38 }
 0x5cd   : >> { %v2095_v7 = vpop.f32.mrb[73].mxu0  ;;  %5773 = vrcp.f32 %v6656_v2 }
 0x5ce   : >> { %v5250_v42 = vpop.f32.mrb[74].mxu0  ;;  %5775 = vrcp.f32 %v6682_v46 }
 0x5cf   : >> { %v2098_v37 = vpop.f32.mrb[75].mxu0  ;;  %5777 = vrcp.f32 %v2079_v11 }
 0x5d0   : >> { %2149 = vperm.xlu1 %5574, %v5762_v43   ;;  %5779 = vrcp.f32 %v2098_v37  ;;  %v1305_v37 = vpop.permute.xlu0 %1304 }
 0x5d1   : >> { %5781 = vrcp.f32 %v5245_v52 }
 0x5d2   : >> { %v5764_v48 = vpop.eup %5763  ;;  %5783 = vrcp.f32 %v5250_v42 }
 0x5d3   : >> { %v5766_v58 = vpop.eup %5765  ;;  %2169 = vperm.xlu0 %5573, %v5764_v48   ;;  %5785 = vrcp.f32 %v6678_v6 }
 0x5d4   : >> { %2159 = vperm.xlu1 %5574, %v5766_v58   ;;  %v5253_v59 = vpop.f32.mrb[76].mxu0  ;;  %v5768_v53 = vpop.eup %5767  ;;  %5787 = vrcp.f32 %v6702_v44 }
 0x5d5   : >> { %v2111_v31 = vpop.f32.mrb[77].mxu0  ;;  %v5770_v34 = vpop.eup %5769  ;;  %5789 = vrcp.f32 %v6674_v28 }
 0x5d6   : >> { %v5254_v3 = vpop.f32.mrb[78].mxu0  ;;  %v5772_v2 = vpop.eup %5771  ;;  %5791 = vrcp.f32 %v6698_v45 }
 0x5d7   : >> { %2179 = vperm.xlu0 %5573, %v5768_v53   ;;  %v2114_v38 = vpop.f32.mrb[79].mxu0  ;;  %v5774_v46 = vpop.eup %5773  ;;  %5793 = vrcp.f32 %v2095_v7  ;;  %v8077_v7 = vmov 64  }
 0x5d8   : >> { %1324 = vperm.xlu1 %5574, %v5770_v34   ;;  %v5776_v15 = vpop.eup %5775  ;;  %5795 = vrcp.f32 %v2114_v38  ;;  %v1330_v53 = vpop.permute.xlu0 %1329  ;;  %v1382_v34 = vmul.f32 %v1305_v37, %v6644_v35  ;;  %v6944_v35 = vld [vmem:[%s7999_s5] ss:$0 sm:$0xff] }
 0x5d9   : >> { %v5778_v23 = vpop.eup %5777  ;;  %5797 = vrcp.f32 %v5249_v39 }
 0x5da   : >> { %v5780_v19 = vpop.eup %5779  ;;  %5799 = vrcp.f32 %v5254_v3 }
 0x5db   : >> { %1349 = vperm.xlu0 %5573, %v5772_v2   ;;  %v5782_v20 = vpop.eup %5781  ;;  %5801 = vrcp.f32 %v6694_v55  ;;  %v6935_v2 = vld [vmem:[%s7998_s4] ss:$0 sm:$0xff] }
 0x5dc   : >> { %1334 = vperm.xlu1 %5574, %v5774_v46   ;;  %v5784_v52 = vpop.eup %5783  ;;  %5803 = vrcp.f32 %v6690_v32  ;;  %v1310_v32 = vpop.permute.xlu1 %1309 }
 0x5dd   : >> { %v5786_v11 = vpop.eup %5785  ;;  %5805 = vrcp.f32 %v2111_v31  ;;  %v1340_v46 = vpop.permute.xlu0 %1339 }
 0x5de   : >> { %v5788_v6 = vpop.eup %5787  ;;  %5807 = vrcp.f32 %v5253_v59 }
 0x5df   : >> { %1359 = vperm.xlu0 %5573, %v5776_v15   ;;  %v5790_v0 = vpop.eup %5789 }
 0x5e0   : >> { %2164 = vperm.xlu1 %5574, %v5778_v23   ;;  %v5792_v28 = vpop.eup %5791  ;;  %v1315_v43 = vpop.permute.xlu1 %1314 }
 0x5e1   : >> { %v5794_v44 = vpop.eup %5793  ;;  %v1384_v31 = vmul.f32 %v6640_v13, %v1315_v43 }
 0x5e2   : >> { %v5796_v45 = vpop.eup %5795 }
 0x5e3   : >> { %2189 = vperm.xlu0 %5573, %v5780_v19   ;;  %v5798_v9 = vpop.eup %5797  ;;  %v1383_v19 = vmul.f32 %v1310_v32, %v6652_v24  ;;  %v8080_v32 = vld [vmem:[#allocation15_spill] sm:$0xff] }
 0x5e4   : >> { %2174 = vperm.xlu1 %5574, %v5782_v20   ;;  %v5800_v51 = vpop.eup %5799  ;;  %v1320_v48 = vpop.permute.xlu1 %1319  ;;  %v1389_v43 = vmul.f32 %v8080_v32, %v1340_v46 }
 0x5e5   : >> { %v5802_v54 = vpop.eup %5801 }
 0x5e6   : >> { %v5804_v39 = vpop.eup %5803 }
 0x5e7   : >> { %2199 = vperm.xlu0 %5573, %v5784_v52   ;;  %v5806_v55 = vpop.eup %5805 }
 0x5e8   : >> { %1344 = vperm.xlu1 %5574, %v5786_v11   ;;  %v5808_v42 = vpop.eup %5807 }
 0x5eb   : >> { %1369 = vperm.xlu0 %5573, %v5788_v6   ;;  %v8078_v6 = vld [vmem:[#allocation16_spill] sm:$0xff] }
 0x5ec   : >> { %1354 = vperm.xlu1 %5574, %v5790_v0   ;;  %v1387_v0 = vmul.f32 %v1330_v53, %v8078_v6 }
 0x5ef   : >> { %1379 = vperm.xlu0 %5573, %v5792_v28  }
 0x5f0   : >> { %2184 = vperm.xlu1 %5574, %v5794_v44   ;;  %v8079_v44 = vld [vmem:[#allocation12_spill] sm:$0xff] }
 0x5f3   : >> { %2209 = vperm.xlu0 %5573, %v5796_v45   ;;  %v1385_v45 = vmul.f32 %v8079_v44, %v1320_v48 }
 0x5f4   : >> { %2194 = vperm.xlu1 %5574, %v5798_v9  }
 0x5f7   : >> { %2219 = vperm.xlu0 %5573, %v5800_v51  }
 0x5f8   : >> { %1364 = vperm.xlu1 %5574, %v5802_v54  }
 0x5fb   : >> { %5576 = vset.pattern.permute.xlu0 %v8077_v7 }
 0x5fc   : >> { %1374 = vperm.xlu1 %5574, %v5804_v39  }
 0x600   : >> { %2204 = vperm.xlu1 %5574, %v5806_v55  }
 0x604   : >> { %2214 = vperm.xlu1 %5574, %v5808_v42  }
 0x608   : >> { %5575 = vset.pattern.permute.xlu1 %v8077_v7 }
 0x647   : >> { %v2155_v58 = vpop.permute.xlu1 %2154 }
 0x648   : >> { %v2224_v59 = vmul.f32 %v6881_v36, %v2155_v58 }
 0x64a   : >> { %v2240_v3 = vadd.f32 %v2224_v59, %v1384_v31 }
 0x64b   : >> { %v2145_v40 = vpop.permute.xlu1 %2144 }
 0x64c   : >> { %v2222_v38 = vmul.f32 %v2145_v40, %v6883_v60  ;;  %v2263_v13 = vmul.f32 %v6935_v2, %v2240_v3 }
 0x64e   : >> { %v2238_v15 = vadd.f32 %v2222_v38, %v1382_v34  ;;  %v2286_v9 = vadd.f32 %v6944_v35, %v2263_v13 }
 0x64f   : >> { %v2150_v23 = vpop.permute.xlu1 %2149 }
 0x650   : >> { %v2261_v36 = vmul.f32 %v6935_v2, %v2238_v15  ;;  %v2223_v20 = vmul.f32 %v2150_v23, %v6887_v1  ;;  %v6959_v58 = vmax.f32 %v2286_v9, 0.0 }
 0x652   : >> { %v2284_v60 = vadd.f32 %v6944_v35, %v2261_v36  ;;  %v2239_v52 = vadd.f32 %v2223_v20, %v1383_v19  ;;  %v2170_v11 = vpop.permute.xlu0 %2169  ;;  %v2319_v13 = vsel %vm374_vm1, %v6959_v58, 0.0 }
 0x653   : >> { %v2227_v28 = vmul.f32 %v2170_v11, %v6895_v56  ;;  %v2160_v24 = vpop.permute.xlu1 %2159 }
 0x654   : >> { %v2262_v1 = vmul.f32 %v6935_v2, %v2239_v52  ;;  %v2225_v51 = vmul.f32 %v6885_v5, %v2160_v24  ;;  %v6953_v39 = vmax.f32 %v2284_v60, 0.0 }
 0x655   : >> { %v2243_v54 = vadd.f32 %v2227_v28, %v1387_v0 }
 0x656   : >> { %v2285_v7 = vadd.f32 %v6944_v35, %v2262_v1  ;;  %v2241_v55 = vadd.f32 %v2225_v51, %v1385_v45  ;;  %v2180_v42 = vpop.permute.xlu0 %2179  ;;  %v2316_v3 = vsel %vm374_vm1, %v6953_v39, 0.0  ;;  %v8081_v51 = vld [vmem:[#allocation14_spill] sm:$0xff] }
 0x657   : >> { %v2266_v56 = vmul.f32 %v6935_v2, %v2243_v54  ;;  %v2229_v37 = vmul.f32 %v6893_v27, %v2180_v42  ;;  %v1325_v48 = vpop.permute.xlu1 %1324 }
 0x658   : >> { %v2301_v31 = vmax.f32 %v2285_v7, 0.0  ;;  %v2264_v53 = vmul.f32 %v6935_v2, %v2241_v55  ;;  %v1386_v54 = vmul.f32 %v1325_v48, %v8081_v51 }
 0x659   : >> { %v2289_v5 = vadd.f32 %v6944_v35, %v2266_v56  ;;  %v2245_v59 = vadd.f32 %v2229_v37, %v1389_v43  ;;  %v8082_v37 = vld [vmem:[#allocation20_spill] sm:$0xff] }
 0x65a   : >> { %v2317_v40 = vsel %vm374_vm1, %v2301_v31, 0.0  ;;  %v2287_v34 = vadd.f32 %v6944_v35, %v2264_v53  ;;  %v1350_v38 = vpop.permute.xlu0 %1349  ;;  %v2393_v46 = vpack.c.bf16 %v2301_v31, %v6953_v39  ;;  %v6974_v60 = vsel %vm374_vm1, %v2301_v31, -inf }
 0x65b   : >> { %v2318_v27 = vadd.f32 %v2317_v40, %v2316_v3  ;;  %v2305_v15 = vmax.f32 %v2289_v5, 0.0  ;;  %v2268_v23 = vmul.f32 %v6935_v2, %v2245_v59  ;;  %v1335_v19 = vpop.permute.xlu1 %1334  ;;  %v1391_v31 = vmul.f32 %v1350_v38, %v8082_v37  ;;  %v8083_v59 = vld [vmem:[#allocation13_spill] sm:$0xff]  ;;  %v8084_v38 = vld [vmem:[#allocation19_spill] sm:$0xff] }
 0x65c   : >> { %v2303_v36 = vmax.f32 %v2287_v34, 0.0  ;;  %5259 = vmatprep.mubr.msk.bf16.mxu1 %vm374_vm1, %v2393_v46  ;;  %v2419_v20 = vsel %vm374_vm1, %v2393_v46, 0  ;;  %v1388_v48 = vmul.f32 %v8083_v59, %v1335_v19 }
 0x65d   : >> { %v2362_v52 = vsel %vm374_vm1, %v2305_v15, -inf  ;;  %v2320_v11 = vadd.f32 %v2319_v13, %v2318_v27  ;;  %v2291_v6 = vadd.f32 %v6944_v35, %v2268_v23  ;;  %5276 = vmatpush3.bf16.xpose.msra.mxu0 %v2419_v20 }
 0x65e   : >> { %v2363_v0 = vmax.f32 %v6974_v60, %v2362_v52  ;;  %v2321_v28 = vsel %vm374_vm1, %v2303_v36, 0.0  ;;  %v2394_v24 = vpack.c.bf16 %v2303_v36, %v6959_v58  ;;  %v1360_v44 = vpop.permute.xlu0 %1359  ;;  %5277 = vmatprep.subr.bf16.mxu0 %v8076_v16  ;;  %v6986_v55 = vsel %vm374_vm1, %v2303_v36, -inf }
 0x65f   : >> { %v2322_v45 = vadd.f32 %v2321_v28, %v2320_v11  ;;  %v2307_v9 = vmax.f32 %v2291_v6, 0.0  ;;  %v2165_v1 = vpop.permute.xlu1 %2164  ;;  %v1393_v13 = vmul.f32 %v8084_v38, %v1360_v44  ;;  %v7004_v60 = vsel %vm374_vm1, %v6953_v39, -inf }
 0x660   : >> { %v2226_v7 = vmul.f32 %v2165_v1, %v6891_v30  ;;  %5260 = vmatmul.mubr.msk.bf16.vlgmr.msra.gmra.mrb[36].mxu1 %vm374_vm1, %v2394_v24  ;;  %v2422_v40 = vsel %vm374_vm1, %v2394_v24, 0 }
 0x661   : >> { %v2366_v42 = vsel %vm374_vm1, %v2307_v9, -inf }
 0x662   : >> { %v2367_v32 = vmax.f32 %v6986_v55, %v2366_v42  ;;  %v2242_v43 = vadd.f32 %v2226_v7, %v1386_v54  ;;  %v2190_v56 = vpop.permute.xlu0 %2189  ;;  %v2325_v55 = vsel %vm374_vm1, %v2305_v15, 0.0 }
 0x663   : >> { %v2231_v53 = vmul.f32 %v2190_v56, %v6903_v18  ;;  %v2175_v5 = vpop.permute.xlu1 %2174  ;;  %v7020_v56 = vsel %vm374_vm1, %v6959_v58, -inf }
 0x664   : >> { %v2265_v30 = vmul.f32 %v6935_v2, %v2242_v43  ;;  %v2228_v3 = vmul.f32 %v6889_v26, %v2175_v5 }
 0x665   : >> { %v2247_v34 = vadd.f32 %v2231_v53, %v1391_v31  ;;  %5278 = vmatpush3.bf16.xpose.msra.mxu0 %v2422_v40 }
 0x666   : >> { %v2288_v46 = vadd.f32 %v6944_v35, %v2265_v30  ;;  %v2244_v27 = vadd.f32 %v2228_v3, %v1388_v48  ;;  %v2200_v23 = vpop.permute.xlu0 %2199  ;;  %5279 = vmatprep.subr.bf16.mxu0 %v8076_v16 }
 0x667   : >> { %v2270_v18 = vmul.f32 %v6935_v2, %v2247_v34  ;;  %v2233_v19 = vmul.f32 %v6901_v41, %v2200_v23  ;;  %v1345_v36 = vpop.permute.xlu1 %1344  ;;  %v2329_v34 = vsel %vm374_vm1, %v2307_v9, 0.0 }
 0x668   : >> { %v2304_v20 = vmax.f32 %v2288_v46, 0.0  ;;  %v2267_v26 = vmul.f32 %v6935_v2, %v2244_v27  ;;  %v8085_v46 = vld [vmem:[#allocation18_spill] sm:$0xff] }
 0x669   : >> { %v2293_v52 = vadd.f32 %v6944_v35, %v2270_v18  ;;  %v2249_v11 = vadd.f32 %v2233_v19, %v1393_v13 }
 0x66a   : >> { %v2323_v6 = vsel %vm374_vm1, %v2304_v20, 0.0  ;;  %v7009_v28 = vsel %vm374_vm1, %v2304_v20, -inf  ;;  %v2290_v24 = vadd.f32 %v6944_v35, %v2267_v26  ;;  %v1370_v44 = vpop.permute.xlu0 %1369  ;;  %v2395_v41 = vpack.c.bf16 %v2305_v15, %v2304_v20  ;;  %v8086_v20 = vld [vmem:[#allocation24_spill] sm:$0xff] }
 0x66b   : >> { %v2324_v1 = vadd.f32 %v2323_v6, %v2322_v45  ;;  %v2361_v51 = vmax.f32 %v7004_v60, %v7009_v28  ;;  %v2309_v54 = vmax.f32 %v2293_v52, 0.0  ;;  %v2272_v39 = vmul.f32 %v6935_v2, %v2249_v11  ;;  %v1355_v7 = vpop.permute.xlu1 %1354  ;;  %v8087_v11 = vld [vmem:[#allocation17_spill] sm:$0xff] }
 0x66c   : >> { %v2306_v42 = vmax.f32 %v2290_v24, 0.0  ;;  %5263 = vmatprep.mubr.msk.bf16.mxu1 %vm374_vm1, %v2395_v41  ;;  %v2425_v43 = vsel %vm374_vm1, %v2395_v41, 0  ;;  %v1395_v26 = vmul.f32 %v1370_v44, %v8086_v20  ;;  %v8088_v44 = vld [vmem:[#allocation23_spill] sm:$0xff] }
 0x66d   : >> { %v2370_v45 = vsel %vm374_vm1, %v2309_v54, -inf  ;;  %v2326_v37 = vadd.f32 %v2325_v55, %v2324_v1  ;;  %v2295_v31 = vadd.f32 %v6944_v35, %v2272_v39  ;;  %5280 = vmatpush3.bf16.xpose.msra.mxu0 %v2425_v43 }
 0x66e   : >> { %v7024_v53 = vmax.f32 %v2363_v0, %v2370_v45  ;;  %v2327_v5 = vsel %vm374_vm1, %v2306_v42, 0.0  ;;  %v7028_v15 = vsel %vm374_vm1, %v2306_v42, -inf  ;;  %v1380_v59 = vpop.permute.xlu0 %1379  ;;  %v2396_v48 = vpack.c.bf16 %v2307_v9, %v2306_v42  ;;  %5281 = vmatprep.subr.bf16.mxu0 %v8076_v16 }
 0x66f   : >> { %v2328_v30 = vadd.f32 %v2327_v5, %v2326_v37  ;;  %v2365_v58 = vmax.f32 %v7020_v56, %v7028_v15  ;;  %v2311_v3 = vmax.f32 %v2295_v31, 0.0  ;;  %v2185_v40 = vpop.permute.xlu1 %2184  ;;  %v1390_v0 = vmul.f32 %v1345_v36, %v8085_v46 }
 0x670   : >> { %v2230_v27 = vmul.f32 %v2185_v40, %v6899_v12  ;;  %5264 = vmatmul.mubr.msk.bf16.gmra.mrb[40].mxu1 %vm374_vm1, %v2396_v48  ;;  %v1392_v9 = vmul.f32 %v8087_v11, %v1355_v7  ;;  %v2428_v6 = vsel %vm374_vm1, %v2396_v48, 0  ;;  %v1397_v1 = vmul.f32 %v8088_v44, %v1380_v59 }
 0x671   : >> { %v2374_v23 = vsel %vm374_vm1, %v2311_v3, -inf  ;;  %v2330_v38 = vadd.f32 %v2329_v34, %v2328_v30  ;;  %v2333_v30 = vsel %vm374_vm1, %v2309_v54, 0.0 }
 0x672   : >> { %v7038_v13 = vmax.f32 %v2367_v32, %v2374_v23  ;;  %v2246_v18 = vadd.f32 %v2230_v27, %v1390_v0  ;;  %v2210_v19 = vpop.permute.xlu0 %2209 }
 0x673   : >> { %v2235_v60 = vmul.f32 %v2210_v19, %v6911_v4  ;;  %v2195_v52 = vpop.permute.xlu1 %2194 }
 0x674   : >> { %v2269_v36 = vmul.f32 %v6935_v2, %v2246_v18  ;;  %v2232_v12 = vmul.f32 %v6897_v8, %v2195_v52  ;;  %v8089_v52 = vld [vmem:[#allocation22_spill] sm:$0xff] }
 0x675   : >> { %v2251_v28 = vadd.f32 %v2235_v60, %v1395_v26  ;;  %5282 = vmatpush3.bf16.xpose.msra.mxu0 %v2428_v6  ;;  %v2337_v60 = vsel %vm374_vm1, %v2311_v3, 0.0 }
 0x676   : >> { %v2292_v32 = vadd.f32 %v6944_v35, %v2269_v36  ;;  %v2248_v24 = vadd.f32 %v2232_v12, %v1392_v9  ;;  %v2220_v41 = vpop.permute.xlu0 %2219  ;;  %5283 = vmatprep.subr.bf16.mxu0 %v8076_v16 }
 0x677   : >> { %v2274_v4 = vmul.f32 %v6935_v2, %v2251_v28  ;;  %v2237_v39 = vmul.f32 %v6909_v33, %v2220_v41  ;;  %v1365_v7 = vpop.permute.xlu1 %1364 }
 0x678   : >> { %v2308_v55 = vmax.f32 %v2292_v32, 0.0  ;;  %v2271_v8 = vmul.f32 %v6935_v2, %v2248_v24  ;;  %v1394_v11 = vmul.f32 %v1365_v7, %v8089_v52  ;;  %v8090_v32 = vld [vmem:[#allocation21_spill] sm:$0xff] }
 0x679   : >> { %v2297_v42 = vadd.f32 %v6944_v35, %v2274_v4  ;;  %v2253_v43 = vadd.f32 %v2237_v39, %v1397_v1 }
 0x67a   : >> { %v2331_v56 = vsel %vm374_vm1, %v2308_v55, 0.0  ;;  %v2368_v45 = vsel %vm374_vm1, %v2308_v55, -inf  ;;  %v2294_v37 = vadd.f32 %v6944_v35, %v2271_v8  ;;  %v2397_v31 = vpack.c.bf16 %v2309_v54, %v2308_v55 }
 0x67b   : >> { %v2332_v5 = vadd.f32 %v2331_v56, %v2330_v38  ;;  %v2369_v15 = vmax.f32 %v2361_v51, %v2368_v45  ;;  %v2313_v59 = vmax.f32 %v2297_v42, 0.0  ;;  %v2276_v48 = vmul.f32 %v6935_v2, %v2253_v43  ;;  %v1375_v33 = vpop.permute.xlu1 %1374 }
 0x67c   : >> { %v2310_v40 = vmax.f32 %v2294_v37, 0.0  ;;  %5267 = vmatprep.mubr.msk.bf16.mxu1 %vm374_vm1, %v2397_v31  ;;  %v2431_v34 = vsel %vm374_vm1, %v2397_v31, 0  ;;  %v1396_v24 = vmul.f32 %v8090_v32, %v1375_v33 }
 0x67d   : >> { %v2378_v46 = vsel %vm374_vm1, %v2313_v59, -inf  ;;  %v2334_v0 = vadd.f32 %v2333_v30, %v2332_v5  ;;  %v2299_v27 = vadd.f32 %v6944_v35, %v2276_v48  ;;  %5284 = vmatpush3.bf16.xpose.msra.mxu0 %v2431_v34  ;;  %v2341_v42 = vsel %vm374_vm1, %v2313_v59, 0.0  ;;  %v4667_v34 = vld [vmem:[%s7997_s3 + $0x1] sm:$0x1] }
 0x67e   : >> { %v2379_v51 = vmax.f32 %v7024_v53, %v2378_v46  ;;  %v2335_v23 = vsel %vm374_vm1, %v2310_v40, 0.0  ;;  %v2372_v38 = vsel %vm374_vm1, %v2310_v40, -inf  ;;  %v2398_v18 = vpack.c.bf16 %v2311_v3, %v2310_v40  ;;  %5285 = vmatprep.subr.bf16.mxu0 %v8076_v16 }
 0x67f   : >> { %v2336_v54 = vadd.f32 %v2335_v23, %v2334_v0  ;;  %v2373_v19 = vmax.f32 %v2365_v58, %v2372_v38  ;;  %v2315_v20 = vmax.f32 %v2299_v27, 0.0  ;;  %v2205_v26 = vpop.permute.xlu1 %2204 }
 0x680   : >> { %v2234_v9 = vmul.f32 %v2205_v26, %v6907_v29  ;;  %5268 = vmatmul.mubr.msk.bf16.gmra.mrb[44].mxu1 %vm374_vm1, %v2398_v18  ;;  %v2434_v3 = vsel %vm374_vm1, %v2398_v18, 0 }
 0x681   : >> { %v2382_v53 = vsel %vm2345_vm5, %v2315_v20, -inf  ;;  %v2338_v36 = vadd.f32 %v2337_v60, %v2336_v54 }
 0x682   : >> { %v2383_v12 = vmax.f32 %v7038_v13, %v2382_v53  ;;  %v2250_v6 = vadd.f32 %v2234_v9, %v1394_v11 }
 0x683   : >> { %v2215_v28 = vpop.permute.xlu1 %2214 }
 0x684   : >> { %v2273_v58 = vmul.f32 %v6935_v2, %v2250_v6  ;;  %v2236_v41 = vmul.f32 %v6905_v17, %v2215_v28 }
 0x685   : >> { %5286 = vmatpush3.bf16.xpose.msra.mxu0 %v2434_v3 }
 0x686   : >> { %v2296_v29 = vadd.f32 %v6944_v35, %v2273_v58  ;;  %v2252_v44 = vadd.f32 %v2236_v41, %v1396_v24  ;;  %5287 = vmatprep.subr.bf16.mxu0 %v8076_v16 }
 0x688   : >> { %v2312_v1 = vmax.f32 %v2296_v29, 0.0  ;;  %v2275_v4 = vmul.f32 %v6935_v2, %v2252_v44 }
 0x68a   : >> { %v2339_v13 = vsel %vm374_vm1, %v2312_v1, 0.0  ;;  %v2376_v39 = vsel %vm374_vm1, %v2312_v1, -inf  ;;  %v2298_v7 = vadd.f32 %v6944_v35, %v2275_v4  ;;  %v2399_v55 = vpack.c.bf16 %v2313_v59, %v2312_v1 }
 0x68b   : >> { %v2340_v8 = vadd.f32 %v2339_v13, %v2338_v36  ;;  %v2377_v17 = vmax.f32 %v2369_v15, %v2376_v39  ;;  %v2346_v15 = vsel %vm2345_vm5, %v2315_v20, 0.0  ;;  %v8094_v39 = vmov 65  }
 0x68c   : >> { %v2314_v43 = vmax.f32 %v2298_v7, 0.0  ;;  %5271 = vmatprep.mubr.msk.bf16.mxu1 %vm374_vm1, %v2399_v55  ;;  %v2437_v56 = vsel %vm374_vm1, %v2399_v55, 0 }
 0x68d   : >> { %v2342_v45 = vadd.f32 %v2341_v42, %v2340_v8  ;;  %5288 = vmatpush3.bf16.xpose.msra.mxu0 %v2437_v56  ;;  %v2384_v37 = vmax.f32 %v2377_v17, %v2379_v51 }
 0x68e   : >> { %v2343_v2 = vsel %vm374_vm1, %v2314_v43, 0.0  ;;  %v2380_v31 = vsel %vm374_vm1, %v2314_v43, -inf  ;;  %v2400_v5 = vpack.c.bf16 %v2315_v20, %v2314_v43  ;;  %5289 = vmatprep.subr.bf16.mxu0 %v8076_v16 }
 0x68f   : >> { %v2344_v35 = vadd.f32 %v2343_v2, %v2342_v45  ;;  %v2381_v48 = vmax.f32 %v2373_v19, %v2380_v31 }
 0x690   : >> { %5272 = vmatmul.mubr.msk.bf16.gmra.mrb[48].mxu1 %vm374_vm1, %v2400_v5  ;;  %v2440_v40 = vsel %vm374_vm1, %v2400_v5, 0 }
 0x691   : >> { %v2385_v59 = vmax.f32 %v2381_v48, %v2383_v12  ;;  %v7090_v33 = vadd.f32 %v2346_v15, %v2344_v35 }
 0x693   : >> { %8091 = vst [vmem:[#allocation9_spill] sm:$0xff] %v7090_v33  ;;  %v7092_v30 = vmax.f32 %v2384_v37, %v2385_v59 }
 0x695   : >> { %8092 = vst [vmem:[#allocation8_spill] sm:$0xff] %v7092_v30  ;;  %5290 = vmatpush3.bf16.xpose.msra.mxu0 %v2440_v40 }
 0x69c   : >> { %5292 = vmatmul.mubr.msk.bf16.vlgmr.msra.gmra.mrb[80].mxu0 %vm374_vm1, %v4667_v34 }
 0x733   : >> { %v7099_v16 = vpop.f32.mrb[36].mxu1 }
 0x734   : >> { %2729 = vperm.xlu1 %5575, %v7099_v16   ;;  %v7102_v46 = vpop.f32.mrb[37].mxu1 }
 0x735   : >> { %v7104_v0 = vpop.f32.mrb[38].mxu1 }
 0x736   : >> { %v7108_v27 = vpack.c.bf16 %v7104_v0, %v7099_v16  ;;  %v7110_v51 = vpop.f32.mrb[39].mxu1 }
 0x737   : >> { %v2584_v23 = vpack.c.bf16 %v7110_v51, %v7102_v46  ;;  %2724 = vperm.xlu0 %5576, %v7110_v51  }
 0x738   : >> { %2719 = vperm.xlu1 %5575, %v7102_v46   ;;  %v2596_v18 = vsel %vm374_vm1, %v7108_v27, 0 }
 0x739   : >> { %5523 = vmatprep.subr.msk.bf16.mxu1 %vm374_vm1, %v2584_v23  ;;  %5311 = vmatprep.mubr.msk.bf16.mxu1 %vm374_vm1, %v2584_v23  ;;  %v2593_v38 = vsel %vm374_vm1, %v2584_v23, 0 }
 0x73a   : >> { %5327 = vmatprep.subr.bf16.mxu0 %v2584_v23  ;;  %5296 = vmatpush3.bf16.xpose.msra.mxu1 %v2593_v38 }
 0x73b   : >> { %5328 = vmatpush3.bf16.msra.mxu0 %v2584_v23  ;;  %3427 = vrot.lane.b32.xlu0 %v7108_v27, %s6052_s29 }
 0x73c   : >> { %5524 = vmatprep.subr.msk.bf16.mxu1 %vm374_vm1, %v7108_v27  ;;  %5329 = vmatprep.subr.bf16.mxu0 %v7108_v27 }
 0x73d   : >> { %2734 = vperm.xlu1 %5575, %v7104_v0  }
 0x73f   : >> { %5330 = vmatpush3.bf16.msra.mxu0 %v7108_v27 }
 0x741   : >> { %3425 = vrot.lane.b32.xlu1 %v2584_v23, %s6052_s29 }
 0x742   : >> { %5298 = vmatpush3.bf16.xpose.msra.mxu1 %v2596_v18 }
 0x743   : >> { %v7129_v54 = vpop.f32.mrb[40].mxu1 }
 0x744   : >> { %2749 = vperm.xlu0 %5576, %v7129_v54   ;;  %v7132_v19 = vpop.f32.mrb[41].mxu1 }
 0x745   : >> { %v7134_v20 = vpop.f32.mrb[42].mxu1 }
 0x746   : >> { %v7138_v26 = vpack.c.bf16 %v7134_v20, %v7129_v54  ;;  %2754 = vperm.xlu1 %5575, %v7134_v20   ;;  %v7141_v60 = vpop.f32.mrb[43].mxu1 }
 0x747   : >> { %v7145_v52 = vpack.c.bf16 %v7141_v60, %v7132_v19 }
 0x748   : >> { %2739 = vperm.xlu0 %5576, %v7132_v19   ;;  %v2602_v9 = vsel %vm374_vm1, %v7138_v26, 0 }
 0x749   : >> { %5525 = vmatprep.subr.msk.bf16.mxu1 %vm374_vm1, %v7145_v52  ;;  %5331 = vmatprep.subr.bf16.mxu0 %v7145_v52  ;;  %v2599_v11 = vsel %vm374_vm1, %v7145_v52, 0 }
 0x74a   : >> { %2744 = vperm.xlu1 %5575, %v7141_v60   ;;  %5300 = vmatpush3.bf16.xpose.msra.mxu1 %v2599_v11 }
 0x74b   : >> { %5332 = vmatpush3.bf16.msra.mxu0 %v7145_v52  ;;  %5526 = vmatprep.subr.msk.bf16.mxu1 %vm374_vm1, %v7138_v26 }
 0x74c   : >> { %5333 = vmatprep.subr.bf16.mxu0 %v7138_v26 }
 0x74f   : >> { %5334 = vmatpush3.bf16.msra.mxu0 %v7138_v26 }
 0x752   : >> { %5302 = vmatpush3.bf16.xpose.msra.mxu1 %v2602_v9 }
 0x753   : >> { %v7161_v53 = vpop.f32.mrb[44].mxu1 }
 0x754   : >> { %2769 = vperm.xlu0 %5576, %v7161_v53   ;;  %v7164_v36 = vpop.f32.mrb[45].mxu1 }
 0x755   : >> { %v7166_v12 = vpop.f32.mrb[46].mxu1 }
 0x756   : >> { %v7170_v6 = vpack.c.bf16 %v7166_v12, %v7161_v53  ;;  %2774 = vperm.xlu1 %5575, %v7166_v12   ;;  %v7173_v28 = vpop.f32.mrb[47].mxu1 }
 0x757   : >> { %v7177_v32 = vpack.c.bf16 %v7173_v28, %v7164_v36 }
 0x758   : >> { %2759 = vperm.xlu0 %5576, %v7164_v36   ;;  %v2608_v58 = vsel %vm374_vm1, %v7170_v6, 0 }
 0x759   : >> { %5527 = vmatprep.subr.msk.bf16.mxu1 %vm374_vm1, %v7177_v32  ;;  %5335 = vmatprep.subr.bf16.mxu0 %v7177_v32  ;;  %v2605_v24 = vsel %vm374_vm1, %v7177_v32, 0 }
 0x75a   : >> { %2764 = vperm.xlu1 %5575, %v7173_v28   ;;  %5304 = vmatpush3.bf16.xpose.msra.mxu1 %v2605_v24 }
 0x75b   : >> { %5336 = vmatpush3.bf16.msra.mxu0 %v7177_v32  ;;  %5528 = vmatprep.subr.msk.bf16.mxu1 %vm374_vm1, %v7170_v6 }
 0x75c   : >> { %5337 = vmatprep.subr.bf16.mxu0 %v7170_v6 }
 0x75f   : >> { %5338 = vmatpush3.bf16.msra.mxu0 %v7170_v6 }
 0x762   : >> { %5306 = vmatpush3.bf16.xpose.msra.mxu1 %v2608_v58 }
 0x763   : >> { %v7193_v41 = vpop.f32.mrb[48].mxu1 }
 0x764   : >> { %8093 = vst [vmem:[#allocation16_spill] sm:$0xff] %v7193_v41  ;;  %2789 = vperm.xlu0 %5576, %v7193_v41   ;;  %v7196_v3 = vpop.f32.mrb[49].mxu1 }
 0x765   : >> { %v7198_v29 = vpop.f32.mrb[50].mxu1 }
 0x766   : >> { %v7202_v44 = vpack.c.bf16 %v7198_v29, %v7193_v41  ;;  %2794 = vperm.xlu1 %5575, %v7198_v29   ;;  %v7205_v1 = vpop.f32.mrb[51].mxu1 }
 0x767   : >> { %v7209_v4 = vpack.c.bf16 %v7205_v1, %v7196_v3 }
 0x768   : >> { %2779 = vperm.xlu0 %5576, %v7196_v3   ;;  %v3093_v7 = vsel %vm1086_vm2, %v7202_v44, 0  ;;  %v2614_v17 = vsel %vm374_vm1, %v7202_v44, 0 }
 0x769   : >> { %5529 = vmatprep.subr.msk.bf16.mxu1 %vm374_vm1, %v7209_v4  ;;  %5339 = vmatprep.subr.bf16.mxu0 %v7209_v4  ;;  %v2611_v13 = vsel %vm374_vm1, %v7209_v4, 0 }
 0x76a   : >> { %2784 = vperm.xlu1 %5575, %v7205_v1   ;;  %5308 = vmatpush3.bf16.xpose.msra.mxu1 %v2611_v13 }
 0x76b   : >> { %5340 = vmatpush3.bf16.msra.mxu0 %v7209_v4  ;;  %5530 = vmatprep.subr.msk.bf16.mxu1 %vm374_vm1, %v7202_v44 }
 0x76c   : >> { %5531 = vmatprep.subr.msk.bf16.mxu0 %vm1086_vm2, %v7202_v44  ;;  %5577 = vset.pattern.permute.xlu0 %v8094_v39 }
 0x76e   : >> { %5578 = vset.pattern.permute.xlu1 %v8094_v39 }
 0x76f   : >> { %5342 = vmatpush3.bf16.msra.mxu0 %v3093_v7  ;;  %v7227_v55 = vpop.f32.mrb[80].mxu0 }
 0x770   : >> { %8095 = vst [vmem:[#allocation12_spill] sm:$0xff] %v7227_v55  ;;  %v5293_v8 = vpop.f32.mrb[81].mxu0 }
 0x771   : >> { %v2581_v42 = vpop.f32.mrb[82].mxu0 }
 0x772   : >> { %5310 = vmatpush3.bf16.xpose.msra.mxu1 %v2614_v17  ;;  %v5294_v43 = vpop.f32.mrb[83].mxu0 }
 0x773   : >> { %5359 = vmatprep.subr.bf16.mxu1 %v8055_v10 }
 0x779   : >> { %5312 = vmatmul.mubr.msk.bf16.vlgmr.msra.gmra.mrb[52].mxu1 %vm374_vm1, %v7108_v27 }
 0x77a   : >> { %5315 = vmatprep.mubr.msk.bf16.mxu1 %vm374_vm1, %v7145_v52  ;;  %5360 = vmatpush3.bf16.msra.mxu1 %v8055_v10 }
 0x77b   : >> { %5361 = vmatprep.subr.bf16.mxu1 %v8055_v10 }
 0x77e   : >> { %5362 = vmatpush3.bf16.msra.mxu1 %v8055_v10 }
 0x77f   : >> { %5363 = vmatprep.subr.bf16.mxu1 %v8055_v10 }
 0x781   : >> { %5316 = vmatmul.mubr.msk.bf16.gmra.mrb[56].mxu1 %vm374_vm1, %v7138_v26 }
 0x782   : >> { %5319 = vmatprep.mubr.msk.bf16.mxu1 %vm374_vm1, %v7177_v32  ;;  %5364 = vmatpush3.bf16.msra.mxu1 %v8055_v10 }
 0x783   : >> { %5365 = vmatprep.subr.bf16.mxu1 %v8055_v10 }
 0x786   : >> { %5366 = vmatpush3.bf16.msra.mxu1 %v8055_v10 }
 0x787   : >> { %5367 = vmatprep.subr.bf16.mxu1 %v8055_v10 }
 0x789   : >> { %5320 = vmatmul.mubr.msk.bf16.gmra.mrb[60].mxu1 %vm374_vm1, %v7170_v6 }
 0x78a   : >> { %5323 = vmatprep.mubr.msk.bf16.mxu1 %vm374_vm1, %v7209_v4  ;;  %5368 = vmatpush3.bf16.msra.mxu1 %v8055_v10 }
 0x78b   : >> { %5369 = vmatprep.subr.bf16.mxu1 %v8055_v10 }
 0x78e   : >> { %5370 = vmatpush3.bf16.msra.mxu1 %v8055_v10 }
 0x78f   : >> { %5371 = vmatprep.subr.bf16.mxu1 %v8055_v10 }
 0x791   : >> { %5324 = vmatmul.mubr.msk.bf16.gmra.mrb[64].mxu1 %vm374_vm1, %v7202_v44 }
 0x792   : >> { %5372 = vmatpush3.bf16.msra.mxu1 %v8055_v10 }
 0x793   : >> { %5532 = vmatprep.subr.msk.bf16.mxu1 %vm1086_vm2, %v8055_v10 }
 0x796   : >> { %5374 = vmatpush3.bf16.msra.mxu1 %v8075_v57 }
 0x7b3   : >> { %v7262_v56 = vpop.permute.xlu1 %2729 }
 0x7b6   : >> { %v2725_v58 = vpop.permute.xlu0 %2724 }
 0x7b7   : >> { %v7264_v45 = vpop.permute.xlu1 %2719 }
 0x7bc   : >> { %v7266_v37 = vpop.permute.xlu1 %2734 }
 0x7c0   : >> { %v7268_v2 = vpop.permute.xlu1 %3425 }
 0x7c1   : >> { %8096 = vst [vmem:[#allocation15_spill] sm:$0xff] %v7268_v2  ;;  %5533 = vmatprep.subr.msk.bf16.mxu0 %vm374_vm1, %v7268_v2  ;;  %5423 = vmatprep.subr.bf16.mxu1 %v7268_v2 }
 0x84c   : >> { %v5313_v31 = vpop.f32.mrb[52].mxu1 }
 0x84d   : >> { %v4679_v5 = vmul.f32 -1.442695, %v5313_v31  ;;  %v2650_v35 = vpop.f32.mrb[53].mxu1 }
 0x84e   : >> { %v4677_v48 = vmul.f32 -1.442695, %v2650_v35  ;;  %v5314_v15 = vpop.f32.mrb[54].mxu1 }
 0x84f   : >> { %5809 = vpow2.f32 %v4679_v5  ;;  %v4680_v59 = vmul.f32 -1.442695, %v5314_v15  ;;  %v2653_v40 = vpop.f32.mrb[55].mxu1 }
 0x850   : >> { %5811 = vpow2.f32 %v4677_v48  ;;  %v4678_v34 = vmul.f32 -1.442695, %v2653_v40 }
 0x851   : >> { %5813 = vpow2.f32 %v4680_v59  ;;  %v7273_v59 = vpop.permute.xlu0 %3427 }
 0x852   : >> { %5815 = vpow2.f32 %v4678_v34  ;;  %8097 = vst [vmem:[#allocation14_spill] sm:$0xff] %v7273_v59 }
 0x854   : >> { %v5317_v27 = vpop.f32.mrb[56].mxu1 }
 0x855   : >> { %v4683_v23 = vmul.f32 -1.442695, %v5317_v27  ;;  %v2666_v38 = vpop.f32.mrb[57].mxu1 }
 0x856   : >> { %v4681_v18 = vmul.f32 -1.442695, %v2666_v38  ;;  %v5318_v11 = vpop.f32.mrb[58].mxu1 }
 0x857   : >> { %5817 = vpow2.f32 %v4683_v23  ;;  %v4684_v9 = vmul.f32 -1.442695, %v5318_v11  ;;  %v2669_v24 = vpop.f32.mrb[59].mxu1  ;;  %v8098_v11 = vld [vmem:[#allocation3_spill] sm:$0xff] }
 0x858   : >> { %5819 = vpow2.f32 %v4681_v18  ;;  %v4682_v13 = vmul.f32 -1.442695, %v2669_v24 }
 0x859   : >> { %v5810_v39 = vpop.eup %5809  ;;  %5821 = vpow2.f32 %v4684_v9  ;;  %v8099_v9 = vsub.s32 0, %v8098_v11 }
 0x85a   : >> { %v5812_v7 = vpop.eup %5811  ;;  %v2863_v8 = vadd.f32 1.0, %v5810_v39  ;;  %5823 = vpow2.f32 %v4682_v13  ;;  %v2750_v39 = vpop.permute.xlu0 %2749 }
 0x85b   : >> { %v5814_v17 = vpop.eup %5813  ;;  %v2861_v42 = vadd.f32 1.0, %v5812_v7  ;;  %v7278_v24 = vrot.slane %v7227_v55, %v8099_v9 }
 0x85c   : >> { %v5816_v43 = vpop.eup %5815  ;;  %5825 = vrcp.f32 %v2863_v8  ;;  %v2864_v31 = vadd.f32 1.0, %v5814_v17  ;;  %v5321_v5 = vpop.f32.mrb[60].mxu1 }
 0x85d   : >> { %5827 = vrcp.f32 %v2861_v42  ;;  %v2862_v35 = vadd.f32 1.0, %v5816_v43  ;;  %v4687_v48 = vmul.f32 -1.442695, %v5321_v5  ;;  %v2682_v15 = vpop.f32.mrb[61].mxu1  ;;  %v2755_v43 = vpop.permute.xlu1 %2754  ;;  %v2800_v9 = vadd.f32 %v7266_v37, %v7278_v24 }
 0x85e   : >> { %5829 = vrcp.f32 %v2864_v31  ;;  %v4685_v40 = vmul.f32 -1.442695, %v2682_v15  ;;  %v5322_v34 = vpop.f32.mrb[62].mxu1  ;;  %v2803_v55 = vadd.f32 %v2750_v39, %v7278_v24 }
 0x85f   : >> { %5831 = vrcp.f32 %v2862_v35  ;;  %v4688_v27 = vmul.f32 -1.442695, %v5322_v34  ;;  %v2685_v23 = vpop.f32.mrb[63].mxu1  ;;  %v2799_v35 = vadd.f32 %v7262_v56, %v7278_v24 }
 0x860   : >> { %5833 = vpow2.f32 %v4687_v48  ;;  %v4686_v38 = vmul.f32 -1.442695, %v2685_v23  ;;  %v2797_v23 = vadd.f32 %v7264_v45, %v7278_v24 }
 0x861   : >> { %v5818_v18 = vpop.eup %5817  ;;  %5835 = vpow2.f32 %v4685_v40  ;;  %v2745_v11 = vpop.permute.xlu1 %2744 }
 0x862   : >> { %v5820_v13 = vpop.eup %5819  ;;  %v2867_v7 = vadd.f32 1.0, %v5818_v18  ;;  %5837 = vpow2.f32 %v4688_v27 }
 0x863   : >> { %v5822_v8 = vpop.eup %5821  ;;  %v2865_v17 = vadd.f32 1.0, %v5820_v13  ;;  %5839 = vpow2.f32 %v4686_v38 }
 0x864   : >> { %v5824_v42 = vpop.eup %5823  ;;  %5841 = vrcp.f32 %v2867_v7  ;;  %v2868_v31 = vadd.f32 1.0, %v5822_v8  ;;  %v5325_v5 = vpop.f32.mrb[64].mxu1 }
 0x865   : >> { %5843 = vrcp.f32 %v2865_v17  ;;  %v2866_v48 = vadd.f32 1.0, %v5824_v42  ;;  %v4691_v15 = vmul.f32 -1.442695, %v5325_v5  ;;  %v2698_v34 = vpop.f32.mrb[65].mxu1  ;;  %v2798_v17 = vadd.f32 %v2725_v58, %v7278_v24  ;;  %v2740_v42 = vpop.permute.xlu0 %2739 }
 0x866   : >> { %v5826_v40 = vpop.eup %5825  ;;  %5845 = vrcp.f32 %v2868_v31  ;;  %v4689_v27 = vmul.f32 -1.442695, %v2698_v34  ;;  %v5326_v18 = vpop.f32.mrb[66].mxu1 }
 0x867   : >> { %v5828_v38 = vpop.eup %5827  ;;  %5847 = vrcp.f32 %v2866_v48  ;;  %v4692_v13 = vmul.f32 -1.442695, %v5326_v18  ;;  %v2701_v7 = vpop.f32.mrb[67].mxu1  ;;  %v2911_v8 = vmul.f32 %v5826_v40, %v2799_v35 }
 0x868   : >> { %v5830_v56 = vpop.eup %5829  ;;  %5849 = vpow2.f32 %v4691_v15  ;;  %v4690_v5 = vmul.f32 -1.442695, %v2701_v7  ;;  %v2909_v33 = vmul.f32 %v5828_v38, %v2797_v23  ;;  %v2804_v15 = vadd.f32 %v2755_v43, %v7278_v24 }
 0x869   : >> { %v5832_v30 = vpop.eup %5831  ;;  %5851 = vpow2.f32 %v4689_v27  ;;  %v2927_v45 = vmul.f32 0.2, %v2911_v8  ;;  %v2912_v31 = vmul.f32 %v5830_v56, %v2800_v9  ;;  %v2770_v23 = vpop.permute.xlu0 %2769  ;;  %v2801_v56 = vadd.f32 %v2740_v42, %v7278_v24 }
 0x86a   : >> { %v5834_v34 = vpop.eup %5833  ;;  %5853 = vpow2.f32 %v4692_v13  ;;  %v2910_v37 = vmul.f32 %v5832_v30, %v2798_v17  ;;  %v2925_v48 = vmul.f32 0.2, %v2909_v33  ;;  %v8100_v13 = vld [vmem:[#allocation4_spill] sm:$0xff] }
 0x86b   : >> { %v5836_v18 = vpop.eup %5835  ;;  %v2871_v35 = vadd.f32 1.0, %v5834_v34  ;;  %5855 = vpow2.f32 %v4690_v5  ;;  %v2943_v40 = vmax.f32 %v2911_v8, %v2927_v45  ;;  %v2928_v58 = vmul.f32 0.2, %v2912_v31  ;;  %v2775_v34 = vpop.permute.xlu1 %2774 }
 0x86c   : >> { %v5838_v57 = vpop.eup %5837  ;;  %v2869_v38 = vadd.f32 1.0, %v5836_v18  ;;  %v2926_v27 = vmul.f32 0.2, %v2910_v37  ;;  %v2941_v7 = vmax.f32 %v2909_v33, %v2925_v48  ;;  %v8101_v33 = vld [vmem:[#allocation5_spill] sm:$0xff]  ;;  %v2802_v18 = vadd.f32 %v2745_v11, %v7278_v24 }
 0x86d   : >> { %v5840_v9 = vpop.eup %5839  ;;  %5857 = vrcp.f32 %v2871_v35  ;;  %v2872_v39 = vadd.f32 1.0, %v5838_v57  ;;  %v7291_v30 = vadd.f32 %v8100_v13, %v2943_v40  ;;  %v2944_v45 = vmax.f32 %v2912_v31, %v2928_v58  ;;  %v8102_v35 = vld [vmem:[#allocation6_spill] sm:$0xff] }
 0x86e   : >> { %v5842_v17 = vpop.eup %5841  ;;  %5859 = vrcp.f32 %v2869_v38  ;;  %v2870_v8 = vadd.f32 1.0, %v5840_v9  ;;  %v2942_v5 = vmax.f32 %v2910_v37, %v2926_v27  ;;  %v7296_v48 = vadd.f32 %v8101_v33, %v2941_v7  ;;  %v2760_v27 = vpop.permute.xlu0 %2759 }
 0x86f   : >> { %v5844_v10 = vpop.eup %5843  ;;  %5861 = vrcp.f32 %v2872_v39  ;;  %v2979_v43 = vsel %vm964_vm3, %v7291_v30, -inf  ;;  %v7298_v42 = vmul.f32 %v5842_v17, %v2803_v55  ;;  %v8103_v17 = vld [vmem:[#allocation7_spill] sm:$0xff] }
 0x870   : >> { %v5846_v57 = vpop.eup %5845  ;;  %5863 = vrcp.f32 %v2870_v8  ;;  %2980 = vmax.xlane.f32.xlu0 %v2979_v43  ;;  %v7302_v40 = vadd.f32 %v8102_v35, %v2942_v5  ;;  %v7304_v37 = vmul.f32 %v5844_v10, %v2801_v56  ;;  %v2973_v11 = vsel %vm964_vm3, %v7296_v48, -inf  ;;  %v2765_v56 = vpop.permute.xlu1 %2764 }
 0x871   : >> { %v5848_v31 = vpop.eup %5847  ;;  %v7306_v58 = vmul.f32 %v5846_v57, %v2804_v15  ;;  %v7315_v8 = vadd.f32 %v8103_v17, %v2944_v45  ;;  %v2807_v57 = vadd.f32 %v2770_v23, %v7278_v24  ;;  %v2808_v35 = vadd.f32 %v2775_v34, %v7278_v24 }
 0x872   : >> { %v5850_v38 = vpop.eup %5849  ;;  %v2976_v7 = vsel %vm964_vm3, %v7302_v40, -inf  ;;  %v7310_v55 = vmul.f32 %v5848_v31, %v2802_v18  ;;  %v2790_v18 = vpop.permute.xlu0 %2789  ;;  %v2806_v23 = vadd.f32 %v2765_v56, %v7278_v24 }
 0x873   : >> { %v5852_v9 = vpop.eup %5851  ;;  %v2875_v39 = vadd.f32 1.0, %v5850_v38  ;;  %2977 = vmax.xlane.f32.xlu1 %v2976_v7  ;;  %v2805_v7 = vadd.f32 %v2760_v27, %v7278_v24  ;;  %v2982_v45 = vsel %vm964_vm3, %v7315_v8, -inf  ;;  %v2811_v27 = vadd.f32 %v2790_v18, %v7278_v24 }
 0x874   : >> { %v5854_v10 = vpop.eup %5853  ;;  %v2873_v15 = vadd.f32 1.0, %v5852_v9  ;;  %2974 = vmax.xlane.f32.xlu0 %v2973_v11  ;;  %v2795_v9 = vpop.permute.xlu1 %2794 }
 0x875   : >> { %v5856_v5 = vpop.eup %5855  ;;  %5865 = vrcp.f32 %v2875_v39  ;;  %v2876_v43 = vadd.f32 1.0, %v5854_v10  ;;  %v2812_v34 = vadd.f32 %v2795_v9, %v7278_v24 }
 0x876   : >> { %5867 = vrcp.f32 %v2873_v15  ;;  %v2874_v31 = vadd.f32 1.0, %v5856_v5  ;;  %v2780_v33 = vpop.permute.xlu0 %2779 }
 0x877   : >> { %v5858_v38 = vpop.eup %5857  ;;  %5869 = vrcp.f32 %v2876_v43  ;;  %v2809_v2 = vadd.f32 %v2780_v33, %v7278_v24 }
 0x878   : >> { %v5860_v17 = vpop.eup %5859  ;;  %5871 = vrcp.f32 %v2874_v31  ;;  %2983 = vmax.xlane.f32.xlu0 %v2982_v45  ;;  %v2919_v39 = vmul.f32 %v5858_v38, %v2807_v57  ;;  %v2785_v43 = vpop.permute.xlu1 %2784 }
 0x879   : >> { %v5862_v11 = vpop.eup %5861  ;;  %v2917_v10 = vmul.f32 %v5860_v17, %v2805_v7  ;;  %v2810_v57 = vadd.f32 %v2785_v43, %v7278_v24 }
 0x87a   : >> { %v5864_v15 = vpop.eup %5863  ;;  %v2920_v5 = vmul.f32 %v5862_v11, %v2808_v35 }
 0x87b   : >> { %v2918_v13 = vmul.f32 %v5864_v15, %v2806_v23  ;;  %v2933_v24 = vmul.f32 0.2, %v2917_v10 }
 0x87c   : >> { %v2936_v35 = vmul.f32 0.2, %v2920_v5 }
 0x87f   : >> { %v5866_v59 = vpop.eup %5865 }
 0x880   : >> { %v5868_v41 = vpop.eup %5867  ;;  %v2923_v31 = vmul.f32 %v5866_v59, %v2811_v27  ;;  %v2935_v59 = vmul.f32 0.2, %v2919_v39 }
 0x881   : >> { %v5870_v45 = vpop.eup %5869  ;;  %v2921_v38 = vmul.f32 %v5868_v41, %v2809_v2  ;;  %v2949_v2 = vmax.f32 %v2917_v10, %v2933_v24  ;;  %v2929_v10 = vmul.f32 0.2, %v7304_v37 }
 0x882   : >> { %v5872_v56 = vpop.eup %5871  ;;  %v2924_v17 = vmul.f32 %v5870_v45, %v2812_v34  ;;  %v2951_v33 = vmax.f32 %v2919_v39, %v2935_v59  ;;  %v2932_v34 = vmul.f32 0.2, %v7306_v58  ;;  %v8104_v59 = vld [vmem:[#allocation10_spill] sm:$0xff] }
 0x883   : >> { %v7327_v7 = vmul.f32 %v5872_v56, %v2810_v57  ;;  %v7343_v18 = vadd.f32 %v6492_v14, %v2949_v2  ;;  %v2945_v43 = vmax.f32 %v7304_v37, %v2929_v10  ;;  %v2934_v2 = vmul.f32 0.2, %v2918_v13 }
 0x884   : >> { %3429 = vrot.lane.b32.xlu1 %v7145_v52, %s6052_s29  ;;  %v7338_v41 = vadd.f32 %v6480_v22, %v2951_v33  ;;  %v2940_v9 = vmul.f32 0.2, %v2924_v17  ;;  %v2948_v56 = vmax.f32 %v7306_v58, %v2932_v34 }
 0x885   : >> { %v7368_v57 = vadd.f32 %v8072_v62, %v2945_v43  ;;  %v2950_v58 = vmax.f32 %v2918_v13, %v2934_v2  ;;  %v2938_v13 = vmul.f32 0.2, %v7327_v7 }
 0x886   : >> { %v3003_v52 = vsel %vm964_vm3, %v7338_v41, -inf  ;;  %v2956_v11 = vmax.f32 %v2924_v17, %v2940_v9  ;;  %v2930_v17 = vmul.f32 0.2, %v7310_v55  ;;  %v7375_v33 = vadd.f32 %v8104_v59, %v2948_v56 }
 0x887   : >> { %v2985_v37 = vsel %vm964_vm3, %v7368_v57, -inf  ;;  %v2939_v9 = vmul.f32 0.2, %v2923_v31  ;;  %v2954_v34 = vmax.f32 %v7327_v7, %v2938_v13 }
 0x888   : >> { %v2946_v24 = vmax.f32 %v7310_v55, %v2930_v17 }
 0x88e   : >> { %3431 = vrot.lane.b32.xlu0 %v7138_v26, %s6052_s29  ;;  %v2952_v26 = vmax.f32 %v2920_v5, %v2936_v35  ;;  %v7356_v5 = vadd.f32 %v2956_v11, %v6532_v47  ;;  %v2994_v35 = vsel %vm964_vm3, %v7375_v33, -inf  ;;  %v2955_v11 = vmax.f32 %v2923_v31, %v2939_v9 }
 0x890   : >> { %v7349_v39 = vadd.f32 %v6501_v21, %v2952_v26  ;;  %v3018_v45 = vsel %vm1010_vm4, %v7356_v5, -inf  ;;  %v7391_v10 = vadd.f32 %v2955_v11, %v6478_v49 }
 0x892   : >> { %3433 = vrot.lane.b32.xlu0 %v7177_v32, %s6052_s29  ;;  %v2931_v32 = vmul.f32 0.2, %v7298_v42  ;;  %v3006_v15 = vsel %vm964_vm3, %v7349_v39, -inf  ;;  %v3015_v43 = vsel %vm964_vm3, %v7391_v10, -inf }
 0x894   : >> { %v2947_v23 = vmax.f32 %v7298_v42, %v2931_v32 }
 0x896   : >> { %3435 = vrot.lane.b32.xlu0 %v7170_v6, %s6052_s29  ;;  %v2997_v6 = vsel %vm964_vm3, %v7343_v18, -inf  ;;  %v7359_v27 = vadd.f32 %v8073_v61, %v2947_v23  ;;  %v2937_v23 = vmul.f32 0.2, %v2921_v38 }
 0x898   : >> { %v2991_v42 = vsel %vm964_vm3, %v7359_v27, -inf }
 0x8a8   : >> { %3004 = vmax.xlane.f32.xlu1 %v3003_v52  ;;  %v8105_v52 = vld [vmem:[#allocation11_spill] sm:$0xff] }
 0x8a9   : >> { %v7381_v26 = vadd.f32 %v8105_v52, %v2946_v24 }
 0x8ab   : >> { %v2988_v32 = vsel %vm964_vm3, %v7381_v26, -inf }
 0x8ac   : >> { %2998 = vmax.xlane.f32.xlu1 %v2997_v6  ;;  %v7386_v6 = vadd.f32 %v6459_v50, %v2950_v58 }
 0x8ae   : >> { %v3000_v55 = vsel %vm964_vm3, %v7386_v6, -inf }
 0x8b0   : >> { %3007 = vmax.xlane.f32.xlu1 %v3006_v15  ;;  %v2953_v15 = vmax.f32 %v2921_v38, %v2937_v23 }
 0x8b2   : >> { %v7399_v31 = vadd.f32 %v6514_v25, %v2953_v15 }
 0x8b4   : >> { %3019 = vmax.xlane.f32.xlu1 %v3018_v45  ;;  %v3009_v38 = vsel %vm964_vm3, %v7399_v31, -inf  ;;  %v7406_v45 = vadd.f32 %v6538_v63, %v2954_v34 }
 0x8b5   : >> { %2992 = vmax.xlane.f32.xlu0 %v2991_v42 }
 0x8b9   : >> { %2986 = vmax.xlane.f32.xlu0 %v2985_v37 }
 0x8bd   : >> { %2995 = vmax.xlane.f32.xlu0 %v2994_v35 }
 0x8c1   : >> { %2989 = vmax.xlane.f32.xlu0 %v2988_v32 }
 0x8c5   : >> { %3001 = vmax.xlane.f32.xlu0 %v3000_v55  ;;  %3439 = vrot.lane.b32.xlu1 %v7202_v44, %s6052_s29  ;;  %v3012_v44 = vsel %vm964_vm3, %v7406_v45, -inf }
 0x8c9   : >> { %3016 = vmax.xlane.f32.xlu0 %v3015_v43  ;;  %3579 = vperm.xlu1 %5578, %v7104_v0   ;;  %v8106_v0 = vmov 0  }
 0x8cd   : >> { %3010 = vmax.xlane.f32.xlu0 %v3009_v38  ;;  %3587 = vperm.xlu1 %5578, %v7141_v60  }
 0x8d1   : >> { %3595 = vperm.xlu1 %5578, %v7134_v20   ;;  %3013 = vmax.xlane.f32.xlu0 %v3012_v44 }
 0x8d5   : >> { %3603 = vperm.xlu1 %5578, %v7173_v28  }
 0x8d9   : >> { %3611 = vperm.xlu1 %5578, %v7166_v12  }
 0x8dd   : >> { %3619 = vperm.xlu1 %5578, %v7205_v1  }
 0x8e1   : >> { %3627 = vperm.xlu1 %5578, %v7198_v29  }
 0x8e5   : >> { %5580 = vset.pattern.permute.xlu1 %v8106_v0 }
 0x8e7   : >> { %3437 = vrot.lane.b32.xlu0 %v7209_v4, %s6052_s29  ;;  %v8107_v4 = vld [vmem:[#allocation16_spill] sm:$0xff] }
 0x8eb   : >> { %3567 = vperm.xlu0 %5577, %v7102_v46  }
 0x8ef   : >> { %3571 = vperm.xlu0 %5577, %v7110_v51  }
 0x8f3   : >> { %3575 = vperm.xlu0 %5577, %v7099_v16  }
 0x8f7   : >> { %3583 = vperm.xlu0 %5577, %v7132_v19  }
 0x8fb   : >> { %3591 = vperm.xlu0 %5577, %v7129_v54  }
 0x8fd   : >> { %v2981_v20 = vpop.xlane.xlu0 %2980 }
 0x8fe   : >> { %v3023_v51 = vsub.f32 %v7291_v30, %v2981_v20  ;;  %v8108_v30 = vld [vmem:[#allocation15_spill] sm:$0xff] }
 0x8ff   : >> { %3599 = vperm.xlu0 %5577, %v7164_v36  }
 0x900   : >> { %v2978_v60 = vpop.xlane.xlu1 %2977 }
 0x901   : >> { %v3022_v12 = vsub.f32 %v7302_v40, %v2978_v60  ;;  %v2975_v28 = vpop.xlane.xlu0 %2974  ;;  %v8109_v40 = vld [vmem:[#allocation14_spill] sm:$0xff] }
 0x902   : >> { %v3021_v29 = vsub.f32 %v7296_v48, %v2975_v28  ;;  %v3445_v42 = vsel %vm374_vm1, %v8109_v40, 0 }
 0x903   : >> { %3607 = vperm.xlu0 %5577, %v7161_v53  }
 0x904   : >> { %v3037_v46 = vpack.c.bf16 %v3022_v12, %v3021_v29 }
 0x905   : >> { %v2984_v1 = vpop.xlane.xlu0 %2983 }
 0x906   : >> { %v3046_v16 = vmul.bf16 1069105081, %v3037_v46  ;;  %v3024_v19 = vsub.f32 %v7315_v8, %v2984_v1  ;;  %v7443_v8 = vpop.permute.xlu1 %3429 }
 0x907   : >> { %3615 = vperm.xlu0 %5577, %v7196_v3   ;;  %v3442_v3 = vsel %vm374_vm1, %v8108_v30, 0  ;;  %v3448_v17 = vsel %vm374_vm1, %v7443_v8, 0 }
 0x908   : >> { %5873 = vpow.bf16 %v3046_v16  ;;  %v3038_v54 = vpack.c.bf16 %v3024_v19, %v3023_v51 }
 0x909   : >> { %v7445_v7 = vpop.permute.xlu0 %3431 }
 0x90a   : >> { %v3049_v36 = vmul.bf16 1069105081, %v3038_v54  ;;  %v3451_v24 = vsel %vm374_vm1, %v7445_v7, 0 }
 0x90b   : >> { %3623 = vperm.xlu0 %5577, %v8107_v4  }
 0x90c   : >> { %5875 = vpow.bf16 %v3049_v36 }
 0x90d   : >> { %v7455_v56 = vpop.permute.xlu0 %3433 }
 0x90e   : >> { %v3454_v2 = vsel %vm374_vm1, %v7455_v56, 0 }
 0x90f   : >> { %5579 = vset.pattern.permute.xlu0 %v8106_v0 }
 0x911   : >> { %v7461_v37 = vpop.permute.xlu0 %3435 }
 0x912   : >> { %v3457_v35 = vsel %vm374_vm1, %v7461_v37, 0 }
 0x913   : >> { %v5874_v48 = vpop.eup %5873 }
 0x914   : >> { %5343 = vmatprep.mubr.msk.bf16.mxu0 %vm964_vm3, %v5874_v48  ;;  %5375 = vmatprep.mubr.msk.bf16.mxu1 %vm964_vm3, %v5874_v48 }
 0x917   : >> { %v5876_v53 = vpop.eup %5875 }
 0x918   : >> { %5344 = vmatmul.mubr.msk.bf16.vlgmr.msra.gmra.mrb[84].mxu0 %vm964_vm3, %v5876_v53  ;;  %5376 = vmatmul.mubr.msk.bf16.vlgmr.msra.gmra.mrb[68].mxu1 %vm964_vm3, %v5876_v53 }
 0x919   : >> { %5392 = vmatpush3.bf16.xpose.msra.mxu0 %v3442_v3  ;;  %5424 = vmatpush3.bf16.msra.mxu1 %v8108_v30 }
 0x91a   : >> { %5534 = vmatprep.subr.msk.bf16.mxu0 %vm374_vm1, %v8109_v40  ;;  %5425 = vmatprep.subr.bf16.mxu1 %v8109_v40 }
 0x91d   : >> { %5426 = vmatpush3.bf16.msra.mxu1 %v8109_v40 }
 0x91e   : >> { %5427 = vmatprep.subr.bf16.mxu1 %v7443_v8 }
 0x921   : >> { %5394 = vmatpush3.bf16.xpose.msra.mxu0 %v3445_v42  ;;  %5428 = vmatpush3.bf16.msra.mxu1 %v7443_v8 }
 0x922   : >> { %5535 = vmatprep.subr.msk.bf16.mxu0 %vm374_vm1, %v7443_v8  ;;  %5429 = vmatprep.subr.bf16.mxu1 %v7445_v7 }
 0x925   : >> { %5430 = vmatpush3.bf16.msra.mxu1 %v7445_v7 }
 0x926   : >> { %5431 = vmatprep.subr.bf16.mxu1 %v7455_v56 }
 0x929   : >> { %5396 = vmatpush3.bf16.xpose.msra.mxu0 %v3448_v17  ;;  %5432 = vmatpush3.bf16.msra.mxu1 %v7455_v56 }
 0x92a   : >> { %5536 = vmatprep.subr.msk.bf16.mxu0 %vm374_vm1, %v7445_v7  ;;  %5433 = vmatprep.subr.bf16.mxu1 %v7461_v37 }
 0x92d   : >> { %5434 = vmatpush3.bf16.msra.mxu1 %v7461_v37 }
 0x931   : >> { %5398 = vmatpush3.bf16.xpose.msra.mxu0 %v3451_v24 }
 0x932   : >> { %5537 = vmatprep.subr.msk.bf16.mxu0 %vm374_vm1, %v7455_v56 }
 0x935   : >> { %v3005_v9 = vpop.xlane.xlu1 %3004 }
 0x939   : >> { %5400 = vmatpush3.bf16.xpose.msra.mxu0 %v3454_v2  ;;  %v2999_v11 = vpop.xlane.xlu1 %2998  ;;  %v8110_v2 = vmov 1065369472  }
 0x93a   : >> { %5538 = vmatprep.subr.msk.bf16.mxu0 %vm374_vm1, %v7461_v37  ;;  %v3029_v28 = vsub.f32 %v7343_v18, %v2999_v11 }
 0x93d   : >> { %v3008_v34 = vpop.xlane.xlu1 %3007 }
 0x93e   : >> { %v3032_v20 = vsub.f32 %v7349_v39, %v3008_v34 }
 0x941   : >> { %5402 = vmatpush3.bf16.xpose.msra.mxu0 %v3457_v35  ;;  %v3020_v16 = vpop.xlane.xlu1 %3019 }
 0x942   : >> { %v2993_v58 = vpop.xlane.xlu0 %2992  ;;  %v3036_v54 = vsub.f32 %v7356_v5, %v3020_v16 }
 0x943   : >> { %v3027_v15 = vsub.f32 %v7359_v27, %v2993_v58 }
 0x946   : >> { %v2987_v32 = vpop.xlane.xlu0 %2986 }
 0x947   : >> { %v3025_v38 = vsub.f32 %v7368_v57, %v2987_v32 }
 0x94a   : >> { %v2996_v23 = vpop.xlane.xlu0 %2995 }
 0x94b   : >> { %v3028_v55 = vsub.f32 %v7375_v33, %v2996_v23  ;;  %v3031_v33 = vsub.f32 %v7338_v41, %v3005_v9 }
 0x94d   : >> { %v3040_v13 = vpack.c.bf16 %v3028_v55, %v3027_v15  ;;  %v3042_v1 = vpack.c.bf16 %v3032_v20, %v3031_v33 }
 0x94e   : >> { %v2990_v43 = vpop.xlane.xlu0 %2989 }
 0x94f   : >> { %v3026_v44 = vsub.f32 %v7381_v26, %v2990_v43  ;;  %v3055_v60 = vmul.bf16 1069105081, %v3040_v13  ;;  %v3061_v26 = vmul.bf16 1069105081, %v3042_v1 }
 0x951   : >> { %v3039_v0 = vpack.c.bf16 %v3026_v44, %v3025_v38 }
 0x952   : >> { %v3002_v12 = vpop.xlane.xlu0 %3001 }
 0x953   : >> { %v3052_v29 = vmul.bf16 1069105081, %v3039_v0  ;;  %v3030_v46 = vsub.f32 %v7386_v6, %v3002_v12 }
 0x955   : >> { %5877 = vpow.bf16 %v3052_v29  ;;  %v3041_v27 = vpack.c.bf16 %v3030_v46, %v3029_v28 }
 0x956   : >> { %5879 = vpow.bf16 %v3055_v60  ;;  %v3017_v51 = vpop.xlane.xlu0 %3016 }
 0x957   : >> { %v3058_v57 = vmul.bf16 1069105081, %v3041_v27  ;;  %v3035_v39 = vsub.f32 %v7391_v10, %v3017_v51 }
 0x959   : >> { %5881 = vpow.bf16 %v3058_v57  ;;  %v3044_v18 = vpack.c.bf16 %v3036_v54, %v3035_v39 }
 0x95a   : >> { %v3011_v19 = vpop.xlane.xlu0 %3010  ;;  %5883 = vpow.bf16 %v3061_v26 }
 0x95b   : >> { %v3033_v6 = vsub.f32 %v7399_v31, %v3011_v19  ;;  %v3067_v3 = vmul.bf16 1069105081, %v3044_v18 }
 0x95e   : >> { %v3014_v36 = vpop.xlane.xlu0 %3013 }
 0x95f   : >> { %v3034_v41 = vsub.f32 %v7406_v45, %v3014_v36  ;;  %v3440_v45 = vpop.permute.xlu1 %3439 }
 0x960   : >> { %v5878_v4 = vpop.eup %5877  ;;  %v3933_v17 = vsel %vm1086_vm2, %v3440_v45, 0  ;;  %v3463_v35 = vsel %vm374_vm1, %v3440_v45, 0 }
 0x961   : >> { %v5880_v48 = vpop.eup %5879  ;;  %v3043_v53 = vpack.c.bf16 %v3034_v41, %v3033_v6  ;;  %5347 = vmatprep.mubr.msk.bf16.mxu0 %vm964_vm3, %v5878_v4  ;;  %5379 = vmatprep.mubr.msk.bf16.mxu1 %vm964_vm3, %v5878_v4 }
 0x962   : >> { %v3438_v42 = vpop.permute.xlu0 %3437  ;;  %5348 = vmatmul.mubr.msk.bf16.gmra.mrb[88].mxu0 %vm964_vm3, %v5880_v48  ;;  %5380 = vmatmul.mubr.msk.bf16.gmra.mrb[72].mxu1 %vm964_vm3, %v5880_v48 }
 0x963   : >> { %v3064_v5 = vmul.bf16 1069105081, %v3043_v53  ;;  %5539 = vmatprep.subr.msk.bf16.mxu0 %vm374_vm1, %v3438_v42  ;;  %5435 = vmatprep.subr.bf16.mxu1 %v3438_v42  ;;  %v3460_v10 = vsel %vm374_vm1, %v3438_v42, 0 }
 0x964   : >> { %v5882_v31 = vpop.eup %5881  ;;  %5404 = vmatpush3.bf16.xpose.msra.mxu0 %v3460_v10  ;;  %5436 = vmatpush3.bf16.msra.mxu1 %v3438_v42 }
 0x965   : >> { %5885 = vpow.bf16 %v3064_v5  ;;  %5351 = vmatprep.mubr.msk.bf16.mxu0 %vm964_vm3, %v5882_v31  ;;  %5383 = vmatprep.mubr.msk.bf16.mxu1 %vm964_vm3, %v5882_v31  ;;  %v5884_v24 = vpop.eup %5883 }
 0x966   : >> { %5887 = vpow.bf16 %v3067_v3  ;;  %5540 = vmatprep.subr.msk.bf16.mxu0 %vm374_vm1, %v3440_v45  ;;  %5541 = vmatprep.subr.msk.bf16.mxu1 %vm1086_vm2, %v3440_v45 }
 0x968   : >> { %5438 = vmatpush3.bf16.msra.mxu1 %v3933_v17 }
 0x969   : >> { %5487 = vmatprep.subr.bf16.mxu1 %v8110_v2 }
 0x96a   : >> { %5352 = vmatmul.mubr.msk.bf16.gmra.mrb[92].mxu0 %vm964_vm3, %v5884_v24  ;;  %5384 = vmatmul.mubr.msk.bf16.gmra.mrb[76].mxu1 %vm964_vm3, %v5884_v24  ;;  %v7604_v18 = vpop.permute.xlu0 %3567 }
 0x96c   : >> { %5406 = vmatpush3.bf16.xpose.msra.mxu0 %v3463_v35 }
 0x96d   : >> { %5455 = vmatprep.subr.bf16.mxu0 %v8110_v2 }
 0x96e   : >> { %v7606_v5 = vpop.permute.xlu0 %3571 }
 0x970   : >> { %v5886_v58 = vpop.eup %5885 }
 0x971   : >> { %v5888_v9 = vpop.eup %5887  ;;  %5355 = vmatprep.mubr.msk.bf16.mxu0 %vm964_vm3, %v5886_v58  ;;  %5387 = vmatprep.mubr.msk.bf16.mxu1 %vm964_vm3, %v5886_v58 }
 0x972   : >> { %5356 = vmatmul.mubr.msk.bf16.gmra.mrb[96].mxu0 %vm964_vm3, %v5888_v9  ;;  %5388 = vmatmul.mubr.msk.bf16.gmra.mrb[80].mxu1 %vm964_vm3, %v5888_v9  ;;  %v3576_v35 = vpop.permute.xlu0 %3575 }
 0x973   : >> { %5407 = vmatprep.mubr.msk.bf16.mxu0 %vm374_vm1, %v8108_v30  ;;  %v8111_v30 = vld [vmem:[#allocation2_spill] sm:$0xff] }
 0x97a   : >> { %5408 = vmatmul.mubr.msk.bf16.vlgmr.msra.gmra.mrb[100].mxu0 %vm374_vm1, %v8109_v40 }
 0x97b   : >> { %5411 = vmatprep.mubr.msk.bf16.mxu0 %vm374_vm1, %v7443_v8  ;;  %5456 = vmatpush3.bf16.msra.mxu0 %v8110_v2 }
 0x97c   : >> { %5457 = vmatprep.subr.bf16.mxu0 %v8110_v2 }
 0x97f   : >> { %5458 = vmatpush3.bf16.msra.mxu0 %v8110_v2 }
 0x980   : >> { %5459 = vmatprep.subr.bf16.mxu0 %v8110_v2 }
 0x982   : >> { %5412 = vmatmul.mubr.msk.bf16.gmra.mrb[104].mxu0 %vm374_vm1, %v7445_v7 }
 0x983   : >> { %5415 = vmatprep.mubr.msk.bf16.mxu0 %vm374_vm1, %v7455_v56  ;;  %5460 = vmatpush3.bf16.msra.mxu0 %v8110_v2 }
 0x984   : >> { %5461 = vmatprep.subr.bf16.mxu0 %v8110_v2 }
 0x987   : >> { %5462 = vmatpush3.bf16.msra.mxu0 %v8110_v2 }
 0x988   : >> { %5463 = vmatprep.subr.bf16.mxu0 %v8110_v2 }
 0x98a   : >> { %5416 = vmatmul.mubr.msk.bf16.gmra.mrb[108].mxu0 %vm374_vm1, %v7461_v37 }
 0x98b   : >> { %5419 = vmatprep.mubr.msk.bf16.mxu0 %vm374_vm1, %v3438_v42  ;;  %5464 = vmatpush3.bf16.msra.mxu0 %v8110_v2 }
 0x98c   : >> { %5465 = vmatprep.subr.bf16.mxu0 %v8110_v2 }
 0x98f   : >> { %5466 = vmatpush3.bf16.msra.mxu0 %v8110_v2 }
 0x990   : >> { %5467 = vmatprep.subr.bf16.mxu0 %v8110_v2 }
 0x992   : >> { %5420 = vmatmul.mubr.msk.bf16.gmra.mrb[112].mxu0 %vm374_vm1, %v3440_v45 }
 0x993   : >> { %5468 = vmatpush3.bf16.msra.mxu0 %v8110_v2 }
 0x994   : >> { %5542 = vmatprep.subr.msk.bf16.mxu0 %vm1086_vm2, %v8110_v2 }
 0x997   : >> { %5470 = vmatpush3.bf16.msra.mxu0 %v8111_v30 }
 0x9eb   : >> { %v7540_v40 = vpop.f32.mrb[84].mxu0  ;;  %v7542_v8 = vpop.f32.mrb[68].mxu1 }
 0x9ec   : >> { %v7544_v7 = vpop.f32.mrb[85].mxu0  ;;  %v7546_v56 = vpop.f32.mrb[69].mxu1 }
 0x9ed   : >> { %8112 = vst [vmem:[#allocation20_spill] sm:$0xff] %v7544_v7  ;;  %v7548_v37 = vpop.f32.mrb[86].mxu0  ;;  %v7550_v32 = vpop.f32.mrb[70].mxu1 }
 0x9ee   : >> { %8113 = vst [vmem:[#allocation13_spill] sm:$0xff] %v7548_v37  ;;  %v7552_v11 = vpop.f32.mrb[87].mxu0  ;;  %v7554_v23 = vpop.f32.mrb[71].mxu1 }
 0x9ef   : >> { %8114 = vst [vmem:[#allocation19_spill] sm:$0xff] %v7552_v11 }
 0xa35   : >> { %v7556_v55 = vpop.f32.mrb[88].mxu0  ;;  %v7558_v15 = vpop.f32.mrb[72].mxu1 }
 0xa36   : >> { %8115 = vst [vmem:[#allocation18_spill] sm:$0xff] %v7556_v55  ;;  %v7560_v13 = vpop.f32.mrb[89].mxu0  ;;  %v7562_v43 = vpop.f32.mrb[73].mxu1 }
 0xa37   : >> { %8116 = vst [vmem:[#allocation24_spill] sm:$0xff] %v7560_v13  ;;  %v7564_v34 = vpop.f32.mrb[90].mxu0  ;;  %v7566_v38 = vpop.f32.mrb[74].mxu1 }
 0xa38   : >> { %8117 = vst [vmem:[#allocation17_spill] sm:$0xff] %v7564_v34  ;;  %v7568_v44 = vpop.f32.mrb[91].mxu0  ;;  %v7570_v0 = vpop.f32.mrb[75].mxu1 }
 0xa39   : >> { %8118 = vst [vmem:[#allocation23_spill] sm:$0xff] %v7568_v44 }
 0xa3d   : >> { %v7572_v20 = vpop.f32.mrb[92].mxu0  ;;  %v7574_v60 = vpop.f32.mrb[76].mxu1 }
 0xa3e   : >> { %8119 = vst [vmem:[#allocation22_spill] sm:$0xff] %v7572_v20  ;;  %v7576_v12 = vpop.f32.mrb[93].mxu0  ;;  %v7578_v28 = vpop.f32.mrb[77].mxu1 }
 0xa3f   : >> { %8120 = vst [vmem:[#allocation21_spill] sm:$0xff] %v7576_v12  ;;  %v7580_v29 = vpop.f32.mrb[94].mxu0  ;;  %v7582_v46 = vpop.f32.mrb[78].mxu1 }
 0xa40   : >> { %8121 = vst [vmem:[#allocation10_spill] sm:$0xff] %v7580_v29  ;;  %v7584_v33 = vpop.f32.mrb[95].mxu0  ;;  %v7586_v27 = vpop.f32.mrb[79].mxu1 }
 0xa41   : >> { %8122 = vst [vmem:[#allocation11_spill] sm:$0xff] %v7584_v33  ;;  %v8127_v33 = vld [vmem:[#allocation3_spill] sm:$0xff] }
 0xa45   : >> { %v7588_v1 = vpop.f32.mrb[96].mxu0  ;;  %v7590_v51 = vpop.f32.mrb[80].mxu1 }
 0xa46   : >> { %8123 = vst [vmem:[#allocation16_spill] sm:$0xff] %v7588_v1  ;;  %v7592_v57 = vpop.f32.mrb[97].mxu0  ;;  %v7594_v16 = vpop.f32.mrb[81].mxu1 }
 0xa47   : >> { %8124 = vst [vmem:[#allocation15_spill] sm:$0xff] %v7592_v57  ;;  %v7596_v26 = vpop.f32.mrb[98].mxu0  ;;  %v7598_v39 = vpop.f32.mrb[82].mxu1 }
 0xa48   : >> { %8125 = vst [vmem:[#allocation14_spill] sm:$0xff] %v7596_v26  ;;  %v7600_v19 = vpop.f32.mrb[99].mxu0  ;;  %v7602_v54 = vpop.f32.mrb[83].mxu1 }
 0xa49   : >> { %8126 = vst [vmem:[#allocation2_spill] sm:$0xff] %v7600_v19 }
 0xa4d   : >> { %v5409_v36 = vpop.f32.mrb[100].mxu0 }
 0xa4e   : >> { %v4719_v6 = vmul.f32 -1.442695, %v5409_v36  ;;  %v3499_v41 = vpop.f32.mrb[101].mxu0  ;;  %v3580_v36 = vpop.permute.xlu1 %3579 }
 0xa4f   : >> { %v4717_v4 = vmul.f32 -1.442695, %v3499_v41  ;;  %v5410_v48 = vpop.f32.mrb[102].mxu0 }
 0xa50   : >> { %5889 = vpow2.f32 %v4719_v6  ;;  %v4720_v53 = vmul.f32 -1.442695, %v5410_v48  ;;  %v3502_v3 = vpop.f32.mrb[103].mxu0 }
 0xa51   : >> { %5891 = vpow2.f32 %v4717_v4  ;;  %v4718_v42 = vmul.f32 -1.442695, %v3502_v3 }
 0xa52   : >> { %5893 = vpow2.f32 %v4720_v53  ;;  %v3588_v57 = vpop.permute.xlu1 %3587 }
 0xa53   : >> { %5895 = vpow2.f32 %v4718_v42 }
 0xa55   : >> { %v5413_v10 = vpop.f32.mrb[104].mxu0 }
 0xa56   : >> { %v4723_v31 = vmul.f32 -1.442695, %v5413_v10  ;;  %v3515_v45 = vpop.f32.mrb[105].mxu0 }
 0xa57   : >> { %v4721_v17 = vmul.f32 -1.442695, %v3515_v45  ;;  %v5414_v24 = vpop.f32.mrb[106].mxu0  ;;  %v7608_v45 = vpop.permute.xlu0 %3583 }
 0xa58   : >> { %5897 = vpow2.f32 %v4723_v31  ;;  %v4724_v58 = vmul.f32 -1.442695, %v5414_v24  ;;  %v3518_v9 = vpop.f32.mrb[107].mxu0 }
 0xa59   : >> { %5899 = vpow2.f32 %v4721_v17  ;;  %v4722_v6 = vmul.f32 -1.442695, %v3518_v9 }
 0xa5a   : >> { %v5890_v41 = vpop.eup %5889  ;;  %5901 = vpow2.f32 %v4724_v58 }
 0xa5b   : >> { %v5892_v4 = vpop.eup %5891  ;;  %v3696_v48 = vadd.f32 1.0, %v5890_v41  ;;  %5903 = vpow2.f32 %v4722_v6  ;;  %v3592_v29 = vpop.permute.xlu0 %3591 }
 0xa5c   : >> { %v5894_v3 = vpop.eup %5893  ;;  %v3694_v53 = vadd.f32 1.0, %v5892_v4 }
 0xa5d   : >> { %v5896_v42 = vpop.eup %5895  ;;  %5905 = vrcp.f32 %v3696_v48  ;;  %v3697_v10 = vadd.f32 1.0, %v5894_v3  ;;  %v5417_v26 = vpop.f32.mrb[108].mxu0 }
 0xa5e   : >> { %5907 = vrcp.f32 %v3694_v53  ;;  %v3695_v31 = vadd.f32 1.0, %v5896_v42  ;;  %v4727_v24 = vmul.f32 -1.442695, %v5417_v26  ;;  %v3531_v19 = vpop.f32.mrb[109].mxu0  ;;  %v8128_v53 = vsub.s32 1, %v8127_v33  ;;  %v8129_v42 = vld [vmem:[#allocation12_spill] sm:$0xff] }
 0xa5f   : >> { %5909 = vrcp.f32 %v3697_v10  ;;  %v4725_v17 = vmul.f32 -1.442695, %v3531_v19  ;;  %v5418_v9 = vpop.f32.mrb[110].mxu0  ;;  %v7621_v34 = vpop.permute.xlu0 %3599 }
 0xa60   : >> { %5911 = vrcp.f32 %v3695_v31  ;;  %v4728_v58 = vmul.f32 -1.442695, %v5418_v9  ;;  %v3534_v41 = vpop.f32.mrb[111].mxu0  ;;  %v7613_v26 = vrot.slane %v8129_v42, %v8128_v53  ;;  %v3596_v31 = vpop.permute.xlu1 %3595 }
 0xa61   : >> { %5913 = vpow2.f32 %v4727_v24  ;;  %v4726_v6 = vmul.f32 -1.442695, %v3534_v41 }
 0xa62   : >> { %v5898_v4 = vpop.eup %5897  ;;  %5915 = vpow2.f32 %v4725_v17  ;;  %v3632_v41 = vadd.f32 %v3576_v35, %v7613_v26  ;;  %v3630_v33 = vadd.f32 %v7604_v18, %v7613_v26  ;;  %v3631_v35 = vadd.f32 %v7606_v5, %v7613_v26 }
 0xa63   : >> { %v5900_v48 = vpop.eup %5899  ;;  %v3700_v3 = vadd.f32 1.0, %v5898_v4  ;;  %5917 = vpow2.f32 %v4728_v58  ;;  %v3638_v7 = vadd.f32 %v7621_v34, %v7613_v26 }
 0xa64   : >> { %v5902_v1 = vpop.eup %5901  ;;  %v3698_v10 = vadd.f32 1.0, %v5900_v48  ;;  %5919 = vpow2.f32 %v4726_v6  ;;  %v3633_v6 = vadd.f32 %v3580_v36, %v7613_v26  ;;  %v3635_v36 = vadd.f32 %v3588_v57, %v7613_v26 }
 0xa65   : >> { %v5904_v19 = vpop.eup %5903  ;;  %5921 = vrcp.f32 %v3700_v3  ;;  %v3701_v9 = vadd.f32 1.0, %v5902_v1  ;;  %v5421_v24 = vpop.f32.mrb[112].mxu0  ;;  %v3634_v57 = vadd.f32 %v7608_v45, %v7613_v26 }
 0xa66   : >> { %5923 = vrcp.f32 %v3698_v10  ;;  %v3699_v17 = vadd.f32 1.0, %v5904_v19  ;;  %v4731_v4 = vmul.f32 -1.442695, %v5421_v24  ;;  %v3547_v58 = vpop.f32.mrb[113].mxu0 }
 0xa67   : >> { %v5906_v12 = vpop.eup %5905  ;;  %5925 = vrcp.f32 %v3701_v9  ;;  %v4729_v53 = vmul.f32 -1.442695, %v3547_v58  ;;  %v5422_v42 = vpop.f32.mrb[114].mxu0 }
 0xa68   : >> { %v5908_v48 = vpop.eup %5907  ;;  %5927 = vrcp.f32 %v3699_v17  ;;  %v4732_v3 = vmul.f32 -1.442695, %v5422_v42  ;;  %v3550_v1 = vpop.f32.mrb[115].mxu0  ;;  %v3744_v20 = vmul.f32 %v5906_v12, %v3632_v41 }
 0xa69   : >> { %v5910_v44 = vpop.eup %5909  ;;  %5929 = vpow2.f32 %v4731_v4  ;;  %v4730_v10 = vmul.f32 -1.442695, %v3550_v1  ;;  %v3742_v19 = vmul.f32 %v5908_v48, %v3630_v33  ;;  %v7624_v17 = vpop.permute.xlu1 %3603  ;;  %v3637_v48 = vadd.f32 %v3596_v31, %v7613_v26 }
 0xa6a   : >> { %v5912_v24 = vpop.eup %5911  ;;  %5931 = vpow2.f32 %v4729_v53  ;;  %v3760_v18 = vmul.f32 0.2, %v3744_v20  ;;  %v3745_v9 = vmul.f32 %v5910_v44, %v3633_v6  ;;  %v3636_v6 = vadd.f32 %v3592_v29, %v7613_v26  ;;  %v3608_v31 = vpop.permute.xlu0 %3607  ;;  %v8132_v29 = vld [vmem:[#allocation6_spill] sm:$0xff] }
 0xa6b   : >> { %v5914_v58 = vpop.eup %5913  ;;  %5933 = vpow2.f32 %v4732_v3  ;;  %v3758_v12 = vmul.f32 0.2, %v3742_v19  ;;  %v3743_v41 = vmul.f32 %v5912_v24, %v3631_v35 }
 0xa6c   : >> { %v5916_v42 = vpop.eup %5915  ;;  %v3704_v13 = vadd.f32 1.0, %v5914_v58  ;;  %5935 = vpow2.f32 %v4730_v10  ;;  %v3776_v5 = vmax.f32 %v3744_v20, %v3760_v18  ;;  %v3761_v4 = vmul.f32 0.2, %v3745_v9  ;;  %v8130_v10 = vld [vmem:[#allocation5_spill] sm:$0xff] }
 0xa6d   : >> { %v5918_v33 = vpop.eup %5917  ;;  %v3702_v1 = vadd.f32 1.0, %v5916_v42  ;;  %v3774_v53 = vmax.f32 %v3742_v19, %v3758_v12  ;;  %v3759_v55 = vmul.f32 0.2, %v3743_v41  ;;  %v8131_v19 = vld [vmem:[#allocation4_spill] sm:$0xff]  ;;  %v3612_v37 = vpop.permute.xlu1 %3611 }
 0xa6e   : >> { %v5920_v44 = vpop.eup %5919  ;;  %5937 = vrcp.f32 %v3704_v13  ;;  %v3705_v3 = vadd.f32 1.0, %v5918_v33  ;;  %v7634_v12 = vadd.f32 %v8131_v19, %v3776_v5  ;;  %v3777_v42 = vmax.f32 %v3745_v9, %v3761_v4 }
 0xa6f   : >> { %v5922_v35 = vpop.eup %5921  ;;  %5939 = vrcp.f32 %v3702_v1  ;;  %v3703_v24 = vadd.f32 1.0, %v5920_v44  ;;  %v7631_v20 = vadd.f32 %v8130_v10, %v3774_v53  ;;  %v3775_v18 = vmax.f32 %v3743_v41, %v3759_v55 }
 0xa70   : >> { %v5924_v58 = vpop.eup %5923  ;;  %5941 = vrcp.f32 %v3705_v3  ;;  %v3748_v11 = vmul.f32 %v5922_v35, %v3636_v6  ;;  %v8133_v3 = vld [vmem:[#allocation7_spill] sm:$0xff] }
 0xa71   : >> { %v5926_v45 = vpop.eup %5925  ;;  %5943 = vrcp.f32 %v3703_v24  ;;  %v3806_v13 = vsel %vm964_vm3, %v7631_v20, -inf  ;;  %v7639_v33 = vadd.f32 %v8132_v29, %v3775_v18  ;;  %v3746_v1 = vmul.f32 %v5924_v58, %v3634_v57  ;;  %v3616_v29 = vpop.permute.xlu0 %3615 }
 0xa72   : >> { %v5928_v53 = vpop.eup %5927  ;;  %3807 = vmax.xlane.f32.xlu0 %v3806_v13  ;;  %v3749_v55 = vmul.f32 %v5926_v45, %v3637_v48  ;;  %v7644_v35 = vadd.f32 %v8133_v3, %v3777_v42  ;;  %v3764_v10 = vmul.f32 0.2, %v3748_v11  ;;  %v3812_v57 = vsel %vm964_vm3, %v7634_v12, -inf  ;;  %v3620_v42 = vpop.permute.xlu1 %3619 }
 0xa73   : >> { %v5930_v41 = vpop.eup %5929  ;;  %v3809_v5 = vsel %vm964_vm3, %v7639_v33, -inf  ;;  %v3747_v44 = vmul.f32 %v5928_v53, %v3635_v36  ;;  %v3762_v9 = vmul.f32 0.2, %v3746_v1  ;;  %v3641_v13 = vadd.f32 %v3612_v37, %v7613_v26 }
 0xa74   : >> { %v5932_v4 = vpop.eup %5931  ;;  %v3708_v6 = vadd.f32 1.0, %v5930_v41  ;;  %3810 = vmax.xlane.f32.xlu1 %v3809_v5  ;;  %v3765_v24 = vmul.f32 0.2, %v3749_v55  ;;  %v3640_v36 = vadd.f32 %v3608_v31, %v7613_v26  ;;  %v3780_v37 = vmax.f32 %v3748_v11, %v3764_v10 }
 0xa75   : >> { %v5934_v18 = vpop.eup %5933  ;;  %v3706_v19 = vadd.f32 1.0, %v5932_v4  ;;  %v3763_v48 = vmul.f32 0.2, %v3747_v44  ;;  %v3778_v58 = vmax.f32 %v3746_v1, %v3762_v9  ;;  %v3815_v1 = vsel %vm964_vm3, %v7644_v35, -inf }
 0xa76   : >> { %v5936_v45 = vpop.eup %5935  ;;  %5945 = vrcp.f32 %v3708_v6  ;;  %v3709_v53 = vadd.f32 1.0, %v5934_v18  ;;  %3813 = vmax.xlane.f32.xlu0 %v3812_v57  ;;  %v3781_v3 = vmax.f32 %v3749_v55, %v3765_v24  ;;  %v3639_v55 = vadd.f32 %v7624_v17, %v7613_v26 }
 0xa77   : >> { %5947 = vrcp.f32 %v3706_v19  ;;  %v3707_v41 = vadd.f32 1.0, %v5936_v45  ;;  %v3779_v5 = vmax.f32 %v3747_v44, %v3763_v48  ;;  %v7658_v6 = vadd.f32 %v8072_v62, %v3778_v58  ;;  %v3628_v48 = vpop.permute.xlu1 %3627 }
 0xa78   : >> { %v5938_v4 = vpop.eup %5937  ;;  %5949 = vrcp.f32 %v3709_v53  ;;  %v7665_v11 = vadd.f32 %v8104_v59, %v3781_v3  ;;  %v7670_v17 = vadd.f32 %v8073_v61, %v3780_v37  ;;  %v3642_v3 = vadd.f32 %v3616_v29, %v7613_v26 }
 0xa79   : >> { %v5940_v9 = vpop.eup %5939  ;;  %5951 = vrcp.f32 %v3707_v41  ;;  %v7655_v31 = vadd.f32 %v8105_v52, %v3779_v5  ;;  %v3752_v18 = vmul.f32 %v5938_v4, %v3640_v36  ;;  %v3624_v52 = vpop.permute.xlu0 %3623  ;;  %v3818_v58 = vsel %vm964_vm3, %v7658_v6, -inf }
 0xa7a   : >> { %v5942_v44 = vpop.eup %5941  ;;  %3816 = vmax.xlane.f32.xlu0 %v3815_v1  ;;  %v3750_v34 = vmul.f32 %v5940_v9, %v3638_v7  ;;  %v3644_v59 = vadd.f32 %v3624_v52, %v7613_v26  ;;  %v3645_v5 = vadd.f32 %v3628_v48, %v7613_v26  ;;  %v3824_v37 = vsel %vm964_vm3, %v7670_v17, -inf }
 0xa7b   : >> { %v5944_v24 = vpop.eup %5943  ;;  %v3821_v19 = vsel %vm964_vm3, %v7655_v31, -inf  ;;  %v3753_v10 = vmul.f32 %v5942_v44, %v3641_v13  ;;  %v3768_v45 = vmul.f32 0.2, %v3752_v18  ;;  %v3827_v13 = vsel %vm964_vm3, %v7665_v11, -inf }
 0xa7c   : >> { %3822 = vmax.xlane.f32.xlu1 %v3821_v19  ;;  %v3751_v57 = vmul.f32 %v5944_v24, %v3639_v55  ;;  %v3766_v62 = vmul.f32 0.2, %v3750_v34  ;;  %v3643_v24 = vadd.f32 %v3620_v42, %v7613_v26  ;;  %5953 = vrcp.f32 %v7554_v23 }
 0xa7d   : >> { %v3769_v7 = vmul.f32 0.2, %v3753_v10  ;;  %v3784_v44 = vmax.f32 %v3752_v18, %v3768_v45  ;;  %5955 = vrcp.f32 %v7542_v8 }
 0xa7e   : >> { %3819 = vmax.xlane.f32.xlu0 %v3818_v58  ;;  %v3767_v36 = vmul.f32 0.2, %v3751_v57  ;;  %v3782_v53 = vmax.f32 %v3750_v34, %v3766_v62  ;;  %5957 = vrcp.f32 %v7546_v56 }
 0xa7f   : >> { %v3785_v1 = vmax.f32 %v3753_v10, %v3769_v7  ;;  %v7694_v26 = vadd.f32 %v6480_v22, %v3784_v44  ;;  %5959 = vrcp.f32 %v7550_v32 }
 0xa80   : >> { %v5946_v41 = vpop.eup %5945  ;;  %3828 = vmax.xlane.f32.xlu1 %v3827_v13  ;;  %v3783_v4 = vmax.f32 %v3751_v57, %v3767_v36  ;;  %v7680_v9 = vadd.f32 %v6492_v14, %v3782_v53  ;;  %5961 = vrcp.f32 %v7562_v43 }
 0xa81   : >> { %v5948_v61 = vpop.eup %5947  ;;  %v3756_v55 = vmul.f32 %v5946_v41, %v3644_v59  ;;  %v7689_v62 = vadd.f32 %v6501_v21, %v3785_v1  ;;  %v3836_v53 = vsel %vm964_vm3, %v7694_v26, -inf  ;;  %5963 = vrcp.f32 %v7570_v0 }
 0xa82   : >> { %v5950_v34 = vpop.eup %5949  ;;  %3825 = vmax.xlane.f32.xlu0 %v3824_v37  ;;  %v7684_v19 = vadd.f32 %v6459_v50, %v3783_v4  ;;  %v3754_v29 = vmul.f32 %v5948_v61, %v3642_v3  ;;  %v3830_v18 = vsel %vm964_vm3, %v7680_v9, -inf  ;;  %5965 = vrcp.f32 %v7558_v15 }
 0xa83   : >> { %v5952_v52 = vpop.eup %5951  ;;  %v3757_v57 = vmul.f32 %v5950_v34, %v3645_v5  ;;  %v3772_v42 = vmul.f32 0.2, %v3756_v55  ;;  %v3839_v45 = vsel %vm964_vm3, %v7689_v62, -inf  ;;  %5967 = vrcp.f32 %v7566_v38 }
 0xa84   : >> { %v3833_v10 = vsel %vm964_vm3, %v7684_v19, -inf  ;;  %v3755_v14 = vmul.f32 %v5952_v52, %v3643_v24  ;;  %v3770_v48 = vmul.f32 0.2, %v3754_v29  ;;  %5969 = vrcp.f32 %v7578_v28 }
 0xa85   : >> { %3834 = vmax.xlane.f32.xlu1 %v3833_v10  ;;  %v3773_v50 = vmul.f32 0.2, %v3757_v57  ;;  %v3788_v13 = vmax.f32 %v3756_v55, %v3772_v42 }
 0xa86   : >> { %3831 = vmax.xlane.f32.xlu0 %v3830_v18  ;;  %v3771_v58 = vmul.f32 0.2, %v3755_v14  ;;  %v3786_v7 = vmax.f32 %v3754_v29, %v3770_v48 }
 0xa87   : >> { %v3789_v21 = vmax.f32 %v3757_v57, %v3773_v50  ;;  %v7714_v4 = vadd.f32 %v3788_v13, %v6478_v49 }
 0xa88   : >> { %v3787_v36 = vmax.f32 %v3755_v14, %v3771_v58  ;;  %v7701_v59 = vadd.f32 %v6514_v25, %v3786_v7 }
 0xa89   : >> { %3840 = vmax.xlane.f32.xlu1 %v3839_v45  ;;  %v7709_v5 = vadd.f32 %v3789_v21, %v6532_v47  ;;  %v5954_v47 = vpop.eup %5953 }
 0xa8a   : >> { %3837 = vmax.xlane.f32.xlu0 %v3836_v53  ;;  %v7704_v22 = vadd.f32 %v6538_v63, %v3787_v36  ;;  %v3842_v3 = vsel %vm964_vm3, %v7701_v59, -inf  ;;  %v3848_v63 = vsel %vm964_vm3, %v7714_v4, -inf  ;;  %v5956_v49 = vpop.eup %5955 }
 0xa8b   : >> { %v3851_v25 = vsel %vm1010_vm4, %v7709_v5, -inf  ;;  %v5958_v1 = vpop.eup %5957 }
 0xa8c   : >> { %v3845_v41 = vsel %vm964_vm3, %v7704_v22, -inf  ;;  %v5960_v61 = vpop.eup %5959 }
 0xa8d   : >> { %3846 = vmax.xlane.f32.xlu1 %v3845_v41  ;;  %v5962_v23 = vpop.eup %5961 }
 0xa8e   : >> { %3843 = vmax.xlane.f32.xlu0 %v3842_v3  ;;  %v5964_v8 = vpop.eup %5963 }
 0xa8f   : >> { %v5966_v56 = vpop.eup %5965 }
 0xa90   : >> { %v5968_v32 = vpop.eup %5967 }
 0xa91   : >> { %3852 = vmax.xlane.f32.xlu1 %v3851_v25  ;;  %v5970_v43 = vpop.eup %5969 }
 0xa92   : >> { %3849 = vmax.xlane.f32.xlu0 %v3848_v63 }
 0xaa2   : >> { %3312 = vperm.xlu1 %5580, %v5954_v47  }
 0xaa6   : >> { %3317 = vperm.xlu1 %5580, %v5956_v49  }
 0xaa8   : >> { %3307 = vperm.xlu0 %5579, %v5958_v1  }
 0xaaa   : >> { %3322 = vperm.xlu1 %5580, %v5960_v61  }
 0xaae   : >> { %3327 = vperm.xlu1 %5580, %v5962_v23  }
 0xab2   : >> { %3332 = vperm.xlu1 %5580, %v5964_v8  }
 0xab6   : >> { %3337 = vperm.xlu1 %5580, %v5966_v56  }
 0xaba   : >> { %3342 = vperm.xlu1 %5580, %v5968_v32  }
 0xabe   : >> { %3347 = vperm.xlu1 %5580, %v5970_v43  }
 0xaff   : >> { %v3808_v0 = vpop.xlane.xlu0 %3807 }
 0xb00   : >> { %v3854_v44 = vsub.f32 %v7631_v20, %v3808_v0 }
 0xb01   : >> { %v3811_v37 = vpop.xlane.xlu1 %3810 }
 0xb02   : >> { %v3855_v15 = vsub.f32 %v7639_v33, %v3811_v37 }
 0xb03   : >> { %v3814_v55 = vpop.xlane.xlu0 %3813 }
 0xb04   : >> { %v3870_v34 = vpack.c.bf16 %v3855_v15, %v3854_v44  ;;  %v3856_v29 = vsub.f32 %v7634_v12, %v3814_v55 }
 0xb06   : >> { %v3879_v24 = vmul.bf16 1069105081, %v3870_v34 }
 0xb07   : >> { %v3817_v38 = vpop.xlane.xlu0 %3816 }
 0xb08   : >> { %5971 = vpow.bf16 %v3879_v24  ;;  %v3857_v28 = vsub.f32 %v7644_v35, %v3817_v38 }
 0xb09   : >> { %v3823_v52 = vpop.xlane.xlu1 %3822 }
 0xb0a   : >> { %v3871_v57 = vpack.c.bf16 %v3857_v28, %v3856_v29  ;;  %v3859_v48 = vsub.f32 %v7655_v31, %v3823_v52 }
 0xb0b   : >> { %v3820_v10 = vpop.xlane.xlu0 %3819 }
 0xb0c   : >> { %v3882_v14 = vmul.bf16 1069105081, %v3871_v57  ;;  %v3858_v18 = vsub.f32 %v7658_v6, %v3820_v10 }
 0xb0d   : >> { %v3829_v20 = vpop.xlane.xlu1 %3828 }
 0xb0e   : >> { %5973 = vpow.bf16 %v3882_v14  ;;  %v3872_v33 = vpack.c.bf16 %v3859_v48, %v3858_v18  ;;  %v3861_v58 = vsub.f32 %v7665_v11, %v3829_v20 }
 0xb0f   : >> { %v3826_v50 = vpop.xlane.xlu0 %3825 }
 0xb10   : >> { %v3885_v42 = vmul.bf16 1069105081, %v3872_v33  ;;  %v3860_v7 = vsub.f32 %v7670_v17, %v3826_v50 }
 0xb12   : >> { %5975 = vpow.bf16 %v3885_v42  ;;  %v3873_v12 = vpack.c.bf16 %v3861_v58, %v3860_v7  ;;  %v3835_v35 = vpop.xlane.xlu1 %3834 }
 0xb13   : >> { %v5972_v45 = vpop.eup %5971  ;;  %v3832_v36 = vpop.xlane.xlu0 %3831  ;;  %v3863_v53 = vsub.f32 %v7684_v19, %v3835_v35 }
 0xb14   : >> { %v3888_v21 = vmul.bf16 1069105081, %v3873_v12  ;;  %v3862_v31 = vsub.f32 %v7680_v9, %v3832_v36  ;;  %5439 = vmatprep.mubr.msk.bf16.mxu1 %vm964_vm3, %v5972_v45  ;;  %5471 = vmatprep.mubr.msk.bf16.mxu0 %vm964_vm3, %v5972_v45 }
 0xb16   : >> { %5977 = vpow.bf16 %v3888_v21  ;;  %v3874_v6 = vpack.c.bf16 %v3863_v53, %v3862_v31  ;;  %v3841_v13 = vpop.xlane.xlu1 %3840  ;;  %v8134_v53 = vld [vmem:[#allocation8_spill] sm:$0xff] }
 0xb17   : >> { %v3838_v11 = vpop.xlane.xlu0 %3837  ;;  %v3865_v17 = vsub.f32 %v7689_v62, %v3841_v13 }
 0xb18   : >> { %v3891_v41 = vmul.bf16 1069105081, %v3874_v6  ;;  %v3864_v3 = vsub.f32 %v7694_v26, %v3838_v11 }
 0xb19   : >> { %v5974_v25 = vpop.eup %5973 }
 0xb1a   : >> { %5979 = vpow.bf16 %v3891_v41  ;;  %v3875_v63 = vpack.c.bf16 %v3865_v17, %v3864_v3  ;;  %v3847_v47 = vpop.xlane.xlu1 %3846  ;;  %5440 = vmatmul.mubr.msk.bf16.vlgmr.msra.gmra.mrb[84].mxu1 %vm964_vm3, %v5974_v25  ;;  %5472 = vmatmul.mubr.msk.bf16.vlgmr.msra.gmra.mrb[116].mxu0 %vm964_vm3, %v5974_v25 }
 0xb1b   : >> { %5495 = vmatpush3.bf16.msra.mxu1 %v8110_v2  ;;  %v3844_v9 = vpop.xlane.xlu0 %3843  ;;  %v3867_v49 = vsub.f32 %v7704_v22, %v3847_v47 }
 0xb1c   : >> { %v3894_v19 = vmul.bf16 1069105081, %v3875_v63  ;;  %v3866_v1 = vsub.f32 %v7701_v59, %v3844_v9  ;;  %5488 = vmatprep.subr.bf16.mxu1 %v8110_v2 }
 0xb1d   : >> { %v5976_v62 = vpop.eup %5975 }
 0xb1e   : >> { %5981 = vpow.bf16 %v3894_v19  ;;  %v3876_v26 = vpack.c.bf16 %v3867_v49, %v3866_v1  ;;  %v3853_v61 = vpop.xlane.xlu1 %3852  ;;  %5443 = vmatprep.mubr.msk.bf16.mxu1 %vm964_vm3, %v5976_v62 }
 0xb1f   : >> { %5496 = vmatpush3.bf16.msra.mxu1 %v8110_v2  ;;  %v3850_v23 = vpop.xlane.xlu0 %3849  ;;  %v3869_v56 = vsub.f32 %v7709_v5, %v3853_v61 }
 0xb20   : >> { %v3897_v8 = vmul.bf16 1069105081, %v3876_v26  ;;  %v3868_v32 = vsub.f32 %v7714_v4, %v3850_v23  ;;  %5489 = vmatprep.subr.bf16.mxu1 %v8110_v2 }
 0xb21   : >> { %v5978_v22 = vpop.eup %5977 }
 0xb22   : >> { %5983 = vpow.bf16 %v3897_v8  ;;  %v3877_v59 = vpack.c.bf16 %v3869_v56, %v3868_v32  ;;  %5444 = vmatmul.mubr.msk.bf16.gmra.mrb[88].mxu1 %vm964_vm3, %v5978_v22 }
 0xb23   : >> { %5497 = vmatpush3.bf16.msra.mxu1 %v8110_v2 }
 0xb24   : >> { %v3900_v43 = vmul.bf16 1069105081, %v3877_v59  ;;  %5490 = vmatprep.subr.bf16.mxu1 %v8110_v2 }
 0xb25   : >> { %v5980_v0 = vpop.eup %5979 }
 0xb26   : >> { %5985 = vpow.bf16 %v3900_v43  ;;  %5447 = vmatprep.mubr.msk.bf16.mxu1 %vm964_vm3, %v5980_v0 }
 0xb27   : >> { %5498 = vmatpush3.bf16.msra.mxu1 %v8110_v2 }
 0xb28   : >> { %5491 = vmatprep.subr.bf16.mxu1 %v8110_v2 }
 0xb29   : >> { %v5982_v5 = vpop.eup %5981 }
 0xb2a   : >> { %5448 = vmatmul.mubr.msk.bf16.gmra.mrb[92].mxu1 %vm964_vm3, %v5982_v5 }
 0xb2b   : >> { %5499 = vmatpush3.bf16.msra.mxu1 %v8110_v2 }
 0xb2c   : >> { %5492 = vmatprep.subr.bf16.mxu1 %v8110_v2 }
 0xb2d   : >> { %v5984_v4 = vpop.eup %5983 }
 0xb2e   : >> { %5451 = vmatprep.mubr.msk.bf16.mxu1 %vm964_vm3, %v5984_v4 }
 0xb2f   : >> { %5500 = vmatpush3.bf16.msra.mxu1 %v8110_v2 }
 0xb30   : >> { %5493 = vmatprep.subr.bf16.mxu1 %v8110_v2 }
 0xb31   : >> { %v5986_v37 = vpop.eup %5985 }
 0xb32   : >> { %5452 = vmatmul.mubr.msk.bf16.gmra.mrb[96].mxu1 %vm964_vm3, %v5986_v37 }
 0xb33   : >> { %5501 = vmatpush3.bf16.msra.mxu1 %v8110_v2  ;;  %5475 = vmatprep.mubr.msk.bf16.mxu1 %vm964_vm3, %v5976_v62 }
 0xb34   : >> { %5543 = vmatprep.subr.msk.bf16.mxu1 %vm1086_vm2, %v8110_v2 }
 0xb37   : >> { %5502 = vmatpush3.bf16.msra.mxu1 %v8111_v30 }
 0xb3a   : >> { %5476 = vmatmul.mubr.msk.bf16.vlgmr.msra.gmra.mrb[100].mxu1 %vm964_vm3, %v5978_v22 }
 0xb3b   : >> { %5479 = vmatprep.mubr.msk.bf16.mxu1 %vm964_vm3, %v5980_v0 }
 0xb42   : >> { %5480 = vmatmul.mubr.msk.bf16.gmra.mrb[104].mxu1 %vm964_vm3, %v5982_v5 }
 0xb43   : >> { %5483 = vmatprep.mubr.msk.bf16.mxu1 %vm964_vm3, %v5984_v4 }
 0xb4a   : >> { %5484 = vmatmul.mubr.msk.bf16.gmra.mrb[108].mxu1 %vm964_vm3, %v5986_v37  ;;  %v3313_v37 = vpop.permute.xlu1 %3312 }
 0xbed   : >> { %v7777_v44 = vpop.f32.mrb[84].mxu1  ;;  %v5473_v15 = vpop.f32.mrb[116].mxu0 }
 0xbee   : >> { %5987 = vrcp.f32 %v5473_v15  ;;  %v7779_v55 = vpop.f32.mrb[85].mxu1  ;;  %v4066_v34 = vpop.f32.mrb[117].mxu0 }
 0xbef   : >> { %v7781_v2 = vpop.f32.mrb[86].mxu1  ;;  %v5474_v30 = vpop.f32.mrb[118].mxu0  ;;  %5989 = vrcp.f32 %v4066_v34 }
 0xbf0   : >> { %v7783_v24 = vpop.f32.mrb[87].mxu1  ;;  %v4069_v38 = vpop.f32.mrb[119].mxu0  ;;  %5991 = vrcp.f32 %v5474_v30 }
 0xbf1   : >> { %5993 = vrcp.f32 %v4069_v38  ;;  %v3318_v15 = vpop.permute.xlu1 %3317 }
 0xbf2   : >> { %5995 = vrcp.f32 %v7586_v27 }
 0xbf3   : >> { %5997 = vrcp.f32 %v7574_v60 }
 0xbf4   : >> { %5999 = vrcp.f32 %v7582_v46  ;;  %v2387_v46 = vrot.slane %v8134_v53, 4 }
 0xbf5   : >> { %v7785_v29 = vpop.f32.mrb[88].mxu1  ;;  %6001 = vrcp.f32 %v7594_v16  ;;  %v3323_v34 = vpop.permute.xlu1 %3322 }
 0xbf6   : >> { %v7787_v28 = vpop.f32.mrb[89].mxu1  ;;  %6003 = vrcp.f32 %v7602_v54  ;;  %v2388_v13 = vmax.f32 %v8134_v53, %v2387_v46  ;;  %v7832_v53 = vld [vmem:[%s7999_s5 + $0x1] ss:$0 sm:$0xff] }
 0xbf7   : >> { %v7789_v52 = vpop.f32.mrb[90].mxu1 }
 0xbf8   : >> { %v5988_v57 = vpop.eup %5987  ;;  %v7791_v10 = vpop.f32.mrb[91].mxu1  ;;  %v2389_v3 = vrot.slane %v2388_v13, 2 }
 0xbf9   : >> { %4157 = vperm.xlu1 %5580, %v5988_v57   ;;  %v5990_v14 = vpop.eup %5989  ;;  %v3328_v30 = vpop.permute.xlu1 %3327 }
 0xbfa   : >> { %v5992_v33 = vpop.eup %5991  ;;  %v2390_v47 = vmax.f32 %v2388_v13, %v2389_v3 }
 0xbfb   : >> { %v5994_v42 = vpop.eup %5993 }
 0xbfc   : >> { %v5996_v27 = vpop.eup %5995  ;;  %v2391_v62 = vrot.slane %v2390_v47, 1 }
 0xbfd   : >> { %4147 = vperm.xlu1 %5580, %v5990_v14   ;;  %v7793_v48 = vpop.f32.mrb[92].mxu1  ;;  %v5998_v45 = vpop.eup %5997 }
 0xbfe   : >> { %v7796_v18 = vpop.f32.mrb[93].mxu1  ;;  %v6000_v31 = vpop.eup %5999  ;;  %v2392_v23 = vmax.f32 %v2390_v47, %v2391_v62  ;;  %v8137_v47 = vld [vmem:[#allocation19_spill] sm:$0xff] }
 0xbff   : >> { %v7798_v20 = vpop.f32.mrb[94].mxu1  ;;  %v6002_v11 = vpop.eup %6001 }
 0xc00   : >> { %v7800_v50 = vpop.f32.mrb[95].mxu1  ;;  %v6004_v41 = vpop.eup %6003 }
 0xc01   : >> { %4162 = vperm.xlu1 %5580, %v5992_v33   ;;  %v7818_v38 = vpop.permute.xlu1 %3332 }
 0xc05   : >> { %4152 = vperm.xlu1 %5580, %v5994_v42   ;;  %v7803_v58 = vpop.f32.mrb[96].mxu1  ;;  %v3338_v57 = vpop.permute.xlu1 %3337 }
 0xc06   : >> { %v7806_v7 = vpop.f32.mrb[97].mxu1 }
 0xc07   : >> { %v7808_v12 = vpop.f32.mrb[98].mxu1 }
 0xc08   : >> { %v7810_v35 = vpop.f32.mrb[99].mxu1 }
 0xc09   : >> { %3352 = vperm.xlu1 %5580, %v5996_v27   ;;  %v3343_v14 = vpop.permute.xlu1 %3342  ;;  %v3387_v27 = vmul.f32 %v7540_v40, %v3318_v15 }
 0xc0d   : >> { %3357 = vperm.xlu1 %5580, %v5998_v45   ;;  %v5477_v60 = vpop.f32.mrb[100].mxu1  ;;  %v7820_v33 = vpop.permute.xlu1 %3347 }
 0xc0e   : >> { %6005 = vrcp.f32 %v5477_v60  ;;  %v4082_v36 = vpop.f32.mrb[101].mxu1  ;;  %v3308_v60 = vpop.permute.xlu0 %3307 }
 0xc0f   : >> { %v5478_v21 = vpop.f32.mrb[102].mxu1  ;;  %6007 = vrcp.f32 %v7590_v51 }
 0xc10   : >> { %v4085_v6 = vpop.f32.mrb[103].mxu1  ;;  %6009 = vrcp.f32 %v4082_v36  ;;  %v7827_v36 = vld [vmem:[%s7998_s4 + $0x1] ss:$0 sm:$0xff] }
 0xc11   : >> { %3362 = vperm.xlu1 %5580, %v6000_v31   ;;  %6011 = vrcp.f32 %v7598_v39  ;;  %v8135_v31 = vld [vmem:[#allocation20_spill] sm:$0xff] }
 0xc12   : >> { %6013 = vrcp.f32 %v5478_v21 }
 0xc13   : >> { %6015 = vrcp.f32 %v4085_v6  ;;  %v3385_v6 = vmul.f32 %v3308_v60, %v8135_v31 }
 0xc15   : >> { %3367 = vperm.xlu1 %5580, %v6002_v11   ;;  %v5481_v16 = vpop.f32.mrb[104].mxu1 }
 0xc16   : >> { %v4098_v54 = vpop.f32.mrb[105].mxu1  ;;  %6017 = vrcp.f32 %v5481_v16 }
 0xc17   : >> { %v5482_v17 = vpop.f32.mrb[106].mxu1  ;;  %6019 = vrcp.f32 %v4098_v54  ;;  %v8136_v54 = vld [vmem:[#allocation13_spill] sm:$0xff] }
 0xc18   : >> { %v6006_v25 = vpop.eup %6005  ;;  %v4101_v63 = vpop.f32.mrb[107].mxu1  ;;  %6021 = vrcp.f32 %v5482_v17 }
 0xc19   : >> { %3372 = vperm.xlu1 %5580, %v6004_v41   ;;  %4177 = vperm.xlu0 %5579, %v6006_v25   ;;  %v6008_v51 = vpop.eup %6007  ;;  %6023 = vrcp.f32 %v4101_v63  ;;  %v3388_v41 = vmul.f32 %v8136_v54, %v3323_v34 }
 0xc1a   : >> { %v6010_v9 = vpop.eup %6009 }
 0xc1b   : >> { %v6012_v49 = vpop.eup %6011 }
 0xc1c   : >> { %v6014_v26 = vpop.eup %6013 }
 0xc1d   : >> { %3377 = vperm.xlu1 %5580, %v6008_v51   ;;  %4167 = vperm.xlu0 %5579, %v6010_v9   ;;  %v5485_v19 = vpop.f32.mrb[108].mxu1  ;;  %v6016_v8 = vpop.eup %6015  ;;  %v3386_v9 = vmul.f32 %v3313_v37, %v8137_v47 }
 0xc1e   : >> { %v4114_v39 = vpop.f32.mrb[109].mxu1  ;;  %6025 = vrcp.f32 %v5485_v19 }
 0xc1f   : >> { %v5486_v1 = vpop.f32.mrb[110].mxu1  ;;  %6027 = vrcp.f32 %v4114_v39 }
 0xc20   : >> { %v4117_v61 = vpop.f32.mrb[111].mxu1  ;;  %v6018_v56 = vpop.eup %6017 }
 0xc21   : >> { %3382 = vperm.xlu1 %5580, %v6012_v49   ;;  %4182 = vperm.xlu0 %5579, %v6014_v26   ;;  %v6020_v32 = vpop.eup %6019  ;;  %6029 = vrcp.f32 %v4117_v61 }
 0xc22   : >> { %v6022_v22 = vpop.eup %6021  ;;  %6031 = vrcp.f32 %v5486_v1 }
 0xc23   : >> { %v6024_v59 = vpop.eup %6023 }
 0xc25   : >> { %4414 = vrot.lane.b32.xlu1 %v2392_v23, %s6056_s27  ;;  %4172 = vperm.xlu0 %5579, %v6016_v8  }
 0xc28   : >> { %v6026_v43 = vpop.eup %6025 }
 0xc29   : >> { %4197 = vperm.xlu0 %5579, %v6018_v56   ;;  %v6028_v0 = vpop.eup %6027 }
 0xc2b   : >> { %v6030_v5 = vpop.eup %6029 }
 0xc2c   : >> { %v6032_v4 = vpop.eup %6031 }
 0xc2d   : >> { %4187 = vperm.xlu0 %5579, %v6020_v32  }
 0xc31   : >> { %4202 = vperm.xlu0 %5579, %v6022_v22  }
 0xc35   : >> { %4192 = vperm.xlu0 %5579, %v6024_v59  }
 0xc39   : >> { %4217 = vperm.xlu0 %5579, %v6026_v43  }
 0xc3d   : >> { %4207 = vperm.xlu0 %5579, %v6028_v0  }
 0xc41   : >> { %4212 = vperm.xlu0 %5579, %v6030_v5  }
 0xc45   : >> { %4222 = vperm.xlu0 %5579, %v6032_v4   ;;  %v8138_v4 = vld [vmem:[#allocation18_spill] sm:$0xff] }
 0xc46   : >> { %v3391_v37 = vmul.f32 %v8138_v4, %v3338_v57  ;;  %v8143_v4 = vld [vmem:[#allocation21_spill] sm:$0xff] }
 0xc78   : >> { %v4158_v42 = vpop.permute.xlu1 %4157 }
 0xc79   : >> { %v4227_v45 = vmul.f32 %v7777_v44, %v4158_v42 }
 0xc7b   : >> { %v4243_v21 = vadd.f32 %v4227_v45, %v3387_v27  ;;  %v8139_v27 = vld [vmem:[#allocation24_spill] sm:$0xff] }
 0xc7c   : >> { %v4148_v46 = vpop.permute.xlu1 %4147  ;;  %v3389_v45 = vmul.f32 %v3328_v30, %v8139_v27 }
 0xc7d   : >> { %v4267_v13 = vmul.f32 %v7827_v36, %v4243_v21  ;;  %v4225_v40 = vmul.f32 %v4148_v46, %v7779_v55 }
 0xc7f   : >> { %v4291_v44 = vadd.f32 %v7832_v53, %v4267_v13  ;;  %v4241_v11 = vadd.f32 %v4225_v40, %v3385_v6  ;;  %v8140_v40 = vld [vmem:[#allocation17_spill] sm:$0xff] }
 0xc80   : >> { %v4163_v16 = vpop.permute.xlu1 %4162 }
 0xc81   : >> { %v4307_v17 = vmax.f32 %v4291_v44, 0.0  ;;  %v4265_v3 = vmul.f32 %v7827_v36, %v4241_v11  ;;  %v4228_v25 = vmul.f32 %v7781_v2, %v4163_v16  ;;  %v3392_v44 = vmul.f32 %v8140_v40, %v3343_v14 }
 0xc83   : >> { %4399 = vst.msk [vmem:[%s7841_s12 + $0x10] sm:$0xff] %vm374_vm1, %v4307_v17  ;;  %v4289_v55 = vadd.f32 %v7832_v53, %v4265_v3  ;;  %v4244_v63 = vadd.f32 %v4228_v25, %v3388_v41  ;;  %v4324_v32 = vsel %vm374_vm1, %v4307_v17, 0.0  ;;  %v4361_v16 = vsel %vm374_vm1, %v4307_v17, -inf }
 0xc84   : >> { %v4153_v51 = vpop.permute.xlu1 %4152 }
 0xc85   : >> { %v4305_v19 = vmax.f32 %v4289_v55, 0.0  ;;  %v4268_v39 = vmul.f32 %v7827_v36, %v4244_v63  ;;  %v4226_v49 = vmul.f32 %v4153_v51, %v7783_v24  ;;  %v8141_v55 = vld [vmem:[#allocation23_spill] sm:$0xff] }
 0xc86   : >> { %v3390_v14 = vmul.f32 %v7818_v38, %v8141_v55 }
 0xc87   : >> { %4397 = vst.msk [vmem:[%s7841_s12] sm:$0xff] %vm374_vm1, %v4305_v19  ;;  %v4292_v1 = vadd.f32 %v7832_v53, %v4268_v39  ;;  %v4242_v62 = vadd.f32 %v4226_v49, %v3386_v9  ;;  %v4321_v8 = vsel %vm374_vm1, %v4305_v19, 0.0  ;;  %v4359_v17 = vsel %vm374_vm1, %v4305_v19, -inf }
 0xc88   : >> { %v7869_v0 = vpop.permute.xlu1 %3352 }
 0xc89   : >> { %v4308_v2 = vmax.f32 %v4292_v1, 0.0  ;;  %v4266_v26 = vmul.f32 %v7827_v36, %v4242_v62 }
 0xc8b   : >> { %4400 = vst.msk [vmem:[%s7841_s12 + $0x18] sm:$0xff] %vm374_vm1, %v4308_v2  ;;  %v4290_v61 = vadd.f32 %v7832_v53, %v4266_v26  ;;  %v4326_v59 = vsel %vm374_vm1, %v4308_v2, 0.0  ;;  %v8142_v26 = vld [vmem:[#allocation22_spill] sm:$0xff] }
 0xc8c   : >> { %v3358_v46 = vpop.permute.xlu1 %3357 }
 0xc8d   : >> { %v7859_v23 = vmax.f32 %v4290_v61, 0.0  ;;  %v3395_v61 = vmul.f32 %v8142_v26, %v3358_v46 }
 0xc8f   : >> { %v4322_v56 = vsel %vm374_vm1, %v7859_v23, 0.0  ;;  %4398 = vst.msk [vmem:[%s7841_s12 + $0x8] sm:$0xff] %vm374_vm1, %v7859_v23 }
 0xc90   : >> { %v4323_v24 = vadd.f32 %v4322_v56, %v4321_v8  ;;  %v3363_v41 = vpop.permute.xlu1 %3362 }
 0xc92   : >> { %v4325_v22 = vadd.f32 %v4324_v32, %v4323_v24  ;;  %v4362_v24 = vsel %vm374_vm1, %v4308_v2, -inf  ;;  %v4360_v2 = vsel %vm374_vm1, %v7859_v23, -inf }
 0xc94   : >> { %v4327_v43 = vadd.f32 %v4326_v59, %v4325_v22  ;;  %v3368_v56 = vpop.permute.xlu1 %3367 }
 0xc98   : >> { %v4178_v5 = vpop.permute.xlu0 %4177  ;;  %v3373_v46 = vpop.permute.xlu1 %3372 }
 0xc99   : >> { %v4231_v15 = vmul.f32 %v7785_v29, %v4178_v5 }
 0xc9b   : >> { %v4247_v34 = vadd.f32 %v4231_v15, %v3391_v37  ;;  %v3393_v37 = vmul.f32 %v7820_v33, %v8143_v4 }
 0xc9c   : >> { %v4168_v42 = vpop.permute.xlu0 %4167 }
 0xc9d   : >> { %v4271_v60 = vmul.f32 %v7827_v36, %v4247_v34  ;;  %v4229_v21 = vmul.f32 %v4168_v42, %v7787_v28 }
 0xc9f   : >> { %v4295_v31 = vadd.f32 %v7832_v53, %v4271_v60  ;;  %v4245_v6 = vadd.f32 %v4229_v21, %v3389_v45  ;;  %v8144_v21 = vld [vmem:[#allocation10_spill] sm:$0xff] }
 0xca0   : >> { %v4183_v13 = vpop.permute.xlu0 %4182  ;;  %v3396_v33 = vmul.f32 %v8144_v21, %v3363_v41 }
 0xca1   : >> { %v4311_v11 = vmax.f32 %v4295_v31, 0.0  ;;  %v4269_v57 = vmul.f32 %v7827_v36, %v4245_v6  ;;  %v4232_v29 = vmul.f32 %v7789_v52, %v4183_v13 }
 0xca3   : >> { %v4367_v30 = vsel %vm374_vm1, %v4311_v11, -inf  ;;  %4403 = vst.msk [vmem:[%s7841_s12 + $0x30] sm:$0xff] %vm374_vm1, %v4311_v11  ;;  %v4293_v28 = vadd.f32 %v7832_v53, %v4269_v57  ;;  %v4248_v54 = vadd.f32 %v4232_v29, %v3392_v44 }
 0xca4   : >> { %v4368_v3 = vmax.f32 %v4361_v16, %v4367_v30  ;;  %v4173_v25 = vpop.permute.xlu0 %4172 }
 0xca5   : >> { %v4309_v63 = vmax.f32 %v4293_v28, 0.0  ;;  %v4272_v51 = vmul.f32 %v7827_v36, %v4248_v54  ;;  %v4230_v52 = vmul.f32 %v4173_v25, %v7791_v10  ;;  %v8145_v25 = vld [vmem:[#allocation11_spill] sm:$0xff] }
 0xca6   : >> { %v3394_v55 = vmul.f32 %v7869_v0, %v8145_v25  ;;  %v8146_v0 = vld [vmem:[#allocation16_spill] sm:$0xff] }
 0xca7   : >> { %v4328_v47 = vsel %vm374_vm1, %v4309_v63, 0.0  ;;  %v4363_v9 = vsel %vm374_vm1, %v4309_v63, -inf  ;;  %4401 = vst.msk [vmem:[%s7841_s12 + $0x20] sm:$0xff] %vm374_vm1, %v4309_v63  ;;  %v4296_v39 = vadd.f32 %v7832_v53, %v4272_v51  ;;  %v4246_v49 = vadd.f32 %v4230_v52, %v3390_v14  ;;  %v3378_v51 = vpop.permute.xlu1 %3377 }
 0xca8   : >> { %v4329_v1 = vadd.f32 %v4328_v47, %v4327_v43  ;;  %v4364_v62 = vmax.f32 %v4359_v17, %v4363_v9  ;;  %v4198_v38 = vpop.permute.xlu0 %4197 }
 0xca9   : >> { %v4312_v8 = vmax.f32 %v4296_v39, 0.0  ;;  %v4270_v10 = vmul.f32 %v7827_v36, %v4246_v49  ;;  %v4235_v19 = vmul.f32 %v7793_v48, %v4198_v38 }
 0xcab   : >> { %v4369_v32 = vsel %vm374_vm1, %v4312_v8, -inf  ;;  %4404 = vst.msk [vmem:[%s7841_s12 + $0x38] sm:$0xff] %vm374_vm1, %v4312_v8  ;;  %v4294_v22 = vadd.f32 %v7832_v53, %v4270_v10  ;;  %v4251_v59 = vadd.f32 %v4235_v19, %v3395_v61  ;;  %v4334_v29 = vsel %vm374_vm1, %v4312_v8, 0.0 }
 0xcac   : >> { %v4370_v43 = vmax.f32 %v4362_v24, %v4369_v32  ;;  %v4188_v5 = vpop.permute.xlu0 %4187  ;;  %v8147_v32 = vld [vmem:[#allocation15_spill] sm:$0xff] }
 0xcad   : >> { %v4310_v15 = vmax.f32 %v4294_v22, 0.0  ;;  %v4275_v34 = vmul.f32 %v7827_v36, %v4251_v59  ;;  %v4233_v48 = vmul.f32 %v4188_v5, %v7796_v18  ;;  %v4332_v18 = vsel %vm374_vm1, %v4311_v11, 0.0 }
 0xcaf   : >> { %v4330_v42 = vsel %vm374_vm1, %v4310_v15, 0.0  ;;  %v4365_v27 = vsel %vm374_vm1, %v4310_v15, -inf  ;;  %4402 = vst.msk [vmem:[%s7841_s12 + $0x28] sm:$0xff] %vm374_vm1, %v4310_v15  ;;  %v4299_v45 = vadd.f32 %v7832_v53, %v4275_v34  ;;  %v4249_v60 = vadd.f32 %v4233_v48, %v3393_v37  ;;  %v8148_v34 = vld [vmem:[#allocation2_spill] sm:$0xff] }
 0xcb0   : >> { %v4331_v31 = vadd.f32 %v4330_v42, %v4329_v1  ;;  %v4366_v6 = vmax.f32 %v4360_v2, %v4365_v27  ;;  %v4203_v13 = vpop.permute.xlu0 %4202  ;;  %v3399_v1 = vmul.f32 %v8146_v0, %v3378_v51 }
 0xcb1   : >> { %v4315_v40 = vmax.f32 %v4299_v45, 0.0  ;;  %v4273_v23 = vmul.f32 %v7827_v36, %v4249_v60  ;;  %v4236_v44 = vmul.f32 %v7798_v20, %v4203_v13  ;;  %v3383_v60 = vpop.permute.xlu1 %3382 }
 0xcb2   : >> { %v4333_v57 = vadd.f32 %v4332_v18, %v4331_v31 }
 0xcb3   : >> { %v4375_v16 = vsel %vm374_vm1, %v4315_v40, -inf  ;;  %4407 = vst.msk [vmem:[%s7841_s12 + $0x50] sm:$0xff] %vm374_vm1, %v4315_v40  ;;  %v4297_v30 = vadd.f32 %v7832_v53, %v4273_v23  ;;  %v4252_v28 = vadd.f32 %v4236_v44, %v3396_v33  ;;  %v4340_v42 = vsel %vm374_vm1, %v4315_v40, 0.0  ;;  %v8149_v23 = vld [vmem:[#allocation14_spill] sm:$0xff] }
 0xcb4   : >> { %v7923_v54 = vmax.f32 %v4368_v3, %v4375_v16  ;;  %v4335_v41 = vadd.f32 %v4334_v29, %v4333_v57  ;;  %v4193_v11 = vpop.permute.xlu0 %4192  ;;  %v3400_v44 = vmul.f32 %v8149_v23, %v3383_v60 }
 0xcb5   : >> { %v4313_v14 = vmax.f32 %v4297_v30, 0.0  ;;  %v4276_v20 = vmul.f32 %v7827_v36, %v4252_v28  ;;  %v4234_v63 = vmul.f32 %v4193_v11, %v7800_v50 }
 0xcb7   : >> { %v4336_v52 = vsel %vm374_vm1, %v4313_v14, 0.0  ;;  %v4371_v17 = vsel %vm374_vm1, %v4313_v14, -inf  ;;  %4405 = vst.msk [vmem:[%s7841_s12 + $0x40] sm:$0xff] %vm374_vm1, %v4313_v14  ;;  %v4300_v3 = vadd.f32 %v7832_v53, %v4276_v20  ;;  %v4250_v47 = vadd.f32 %v4234_v63, %v3394_v55 }
 0xcb8   : >> { %v4337_v9 = vadd.f32 %v4336_v52, %v4335_v41  ;;  %v4372_v39 = vmax.f32 %v4364_v62, %v4371_v17  ;;  %v4218_v49 = vpop.permute.xlu0 %4217  ;;  %v3397_v62 = vmul.f32 %v3368_v56, %v8147_v32 }
 0xcb9   : >> { %v4316_v38 = vmax.f32 %v4300_v3, 0.0  ;;  %v4274_v26 = vmul.f32 %v7827_v36, %v4250_v47  ;;  %v4239_v50 = vmul.f32 %v7803_v58, %v4218_v49 }
 0xcbb   : >> { %v4377_v61 = vsel %vm374_vm1, %v4316_v38, -inf  ;;  %4408 = vst.msk [vmem:[%s7841_s12 + $0x58] sm:$0xff] %vm374_vm1, %v4316_v38  ;;  %v4298_v8 = vadd.f32 %v7832_v53, %v4274_v26  ;;  %v4255_v10 = vadd.f32 %v4239_v50, %v3399_v1  ;;  %v4342_v33 = vsel %vm374_vm1, %v4316_v38, 0.0 }
 0xcbc   : >> { %v4378_v19 = vmax.f32 %v4370_v43, %v4377_v61  ;;  %v4208_v24 = vpop.permute.xlu0 %4207  ;;  %v3398_v43 = vmul.f32 %v3373_v46, %v8148_v34 }
 0xcbd   : >> { %v4314_v22 = vmax.f32 %v4298_v8, 0.0  ;;  %v4279_v59 = vmul.f32 %v7827_v36, %v4255_v10  ;;  %v4237_v5 = vmul.f32 %v4208_v24, %v7806_v7 }
 0xcbf   : >> { %v4338_v4 = vsel %vm374_vm1, %v4314_v22, 0.0  ;;  %v4373_v58 = vsel %vm374_vm1, %v4314_v22, -inf  ;;  %4406 = vst.msk [vmem:[%s7841_s12 + $0x48] sm:$0xff] %vm374_vm1, %v4314_v22  ;;  %v4303_v37 = vadd.f32 %v7832_v53, %v4279_v59  ;;  %v4253_v15 = vadd.f32 %v4237_v5, %v3397_v62 }
 0xcc0   : >> { %v4339_v48 = vadd.f32 %v4338_v4, %v4337_v9  ;;  %v4374_v2 = vmax.f32 %v4366_v6, %v4373_v58  ;;  %v4213_v56 = vpop.permute.xlu0 %4212 }
 0xcc1   : >> { %v4319_v27 = vmax.f32 %v4303_v37, 0.0  ;;  %v4277_v7 = vmul.f32 %v7827_v36, %v4253_v15  ;;  %v4238_v45 = vmul.f32 %v4213_v56, %v7810_v35 }
 0xcc2   : >> { %v4341_v21 = vadd.f32 %v4340_v42, %v4339_v48  ;;  %v4415_v48 = vpop.permute.xlu1 %4414 }
 0xcc3   : >> { %v4383_v31 = vsel %vm374_vm1, %v4319_v27, -inf  ;;  %4411 = vst.msk [vmem:[%s7841_s12 + $0x70] sm:$0xff] %vm374_vm1, %v4319_v27  ;;  %v4301_v46 = vadd.f32 %v7832_v53, %v4277_v7  ;;  %v4254_v6 = vadd.f32 %v4238_v45, %v3398_v43  ;;  %v4348_v52 = vsel %vm374_vm1, %v4319_v27, 0.0 }
 0xcc4   : >> { %v4384_v13 = vmax.f32 %v7923_v54, %v4383_v31  ;;  %v4343_v18 = vadd.f32 %v4342_v33, %v4341_v21  ;;  %v4223_v40 = vpop.permute.xlu0 %4222 }
 0xcc5   : >> { %v4317_v35 = vmax.f32 %v4301_v46, 0.0  ;;  %v4278_v57 = vmul.f32 %v7827_v36, %v4254_v6  ;;  %v4240_v29 = vmul.f32 %v7808_v12, %v4223_v40 }
 0xcc7   : >> { %v4344_v16 = vsel %vm374_vm1, %v4317_v35, 0.0  ;;  %v4379_v30 = vsel %vm374_vm1, %v4317_v35, -inf  ;;  %4409 = vst.msk [vmem:[%s7841_s12 + $0x60] sm:$0xff] %vm374_vm1, %v4317_v35  ;;  %v4302_v28 = vadd.f32 %v7832_v53, %v4278_v57  ;;  %v4256_v41 = vadd.f32 %v4240_v29, %v3400_v44 }
 0xcc8   : >> { %v4345_v54 = vadd.f32 %v4344_v16, %v4343_v18  ;;  %v4380_v11 = vmax.f32 %v4372_v39, %v4379_v30 }
 0xcc9   : >> { %v4318_v25 = vmax.f32 %v4302_v28, 0.0  ;;  %v4280_v55 = vmul.f32 %v7827_v36, %v4256_v41 }
 0xccb   : >> { %v4346_v14 = vsel %vm374_vm1, %v4318_v25, 0.0  ;;  %v4381_v20 = vsel %vm374_vm1, %v4318_v25, -inf  ;;  %4410 = vst.msk [vmem:[%s7841_s12 + $0x68] sm:$0xff] %vm374_vm1, %v4318_v25  ;;  %v4304_v12 = vadd.f32 %v7832_v53, %v4280_v55 }
 0xccc   : >> { %v4347_v63 = vadd.f32 %v4346_v14, %v4345_v54  ;;  %v4382_v51 = vmax.f32 %v4374_v2, %v4381_v20 }
 0xccd   : >> { %v4320_v17 = vmax.f32 %v4304_v12, 0.0 }
 0xcce   : >> { %v4387_v3 = vmax.f32 %v4380_v11, %v4382_v51  ;;  %v4349_v47 = vadd.f32 %v4348_v52, %v4347_v63 }
 0xccf   : >> { %v4350_v9 = vsel %vm2345_vm5, %v4320_v17, 0.0  ;;  %v4385_v39 = vsel %vm2345_vm5, %v4320_v17, -inf  ;;  %4412 = vst.msk [vmem:[%s7841_s12 + $0x78] sm:$0xf] %vm2345_vm5, %v4320_v17 }
 0xcd0   : >> { %v4351_v36 = vadd.f32 %v4350_v9, %v4349_v47  ;;  %v4386_v49 = vmax.f32 %v4378_v19, %v4385_v39  ;;  %v8150_v19 = vld [vmem:[#allocation9_spill] sm:$0xff] }
 0xcd1   : >> { %v2348_v4 = vrot.slane %v8150_v19, 4 }
 0xcd2   : >> { %v4388_v0 = vmax.f32 %v4384_v13, %v4386_v49  ;;  %v4352_v1 = vrot.slane %v4351_v36, 4 }
 0xcd3   : >> { %v2349_v58 = vadd.f32 %v2348_v4, %v8150_v19 }
 0xcd4   : >> { %v4353_v38 = vadd.f32 %v4352_v1, %v4351_v36  ;;  %v4389_v26 = vmax.f32 %v4387_v3, %v4388_v0 }
 0xcd5   : >> { %v2350_v37 = vrot.slane %v2349_v58, 2 }
 0xcd6   : >> { %v4354_v53 = vrot.slane %v4353_v38, 2  ;;  %v4390_v50 = vrot.slane %v4389_v26, 4 }
 0xcd7   : >> { %v2351_v15 = vadd.f32 %v2350_v37, %v2349_v58 }
 0xcd8   : >> { %v4355_v61 = vadd.f32 %v4354_v53, %v4353_v38  ;;  %v4391_v8 = vmax.f32 %v4389_v26, %v4390_v50 }
 0xcd9   : >> { %v2352_v34 = vrot.slane %v2351_v15, 1 }
 0xcda   : >> { %v4356_v10 = vrot.slane %v4355_v61, 1  ;;  %v4392_v24 = vrot.slane %v4391_v8, 2 }
 0xcdb   : >> { %v2353_v43 = vadd.f32 %v2352_v34, %v2351_v15 }
 0xcdc   : >> { %v4357_v32 = vadd.f32 %v4356_v10, %v4355_v61  ;;  %v4393_v62 = vmax.f32 %v4391_v8, %v4392_v24 }
 0xcdd   : >> { %v2355_v2 = vmul.f32 0.008064516, %v2353_v43 }
 0xcde   : >> { %v4358_v22 = vmul.f32 0.008064516, %v4357_v32  ;;  %v4394_v59 = vrot.slane %v4393_v62, 1 }
 0xcdf   : >> { %v4425_v56 = vsel %vm374_vm1, %v2355_v2, %v4415_v48 }
 0xce0   : >> { %4418 = vrot.lane.b32.xlu0 %v4358_v22, %s6057_s23  ;;  %v4395_v5 = vmax.f32 %v4393_v62, %v4394_v59 }
 0xce2   : >> { %4422 = vrot.lane.b32.xlu1 %v4395_v5, %s6052_s29  ;;  %s4430_s29 = scalar_lea.vmem %s322_s17, %s6047_s18  ;;  %s331_s18 = sadd.s32 1, %s6047_s18  }
 0xce3   : >> { %p328_p4 = scmp.ge.s32.totalorder %s331_s18, 2  }
 0xd50   : > { %330 = sbr.rel (!%p328_p4) target bundleno = 17 (0x11), region = 104 }
 0xd52   : >> { %v4419_v42 = vpop.permute.xlu0 %4418 }
 0xd53   : >> { %v4427_v27 = vsel %vm4426_vm6, %v4425_v56, %v4419_v42 }
 0xd54   : >> { %v4423_v7 = vpop.permute.xlu1 %4422 }
 0xd55   : >> { %v4429_v45 = vsel %vm4428_vm7, %v4427_v27, %v4423_v7 }
 0xd56   : >> { %4431 = vst [vmem:[%s4430_s29] sm:$0x1] %v4429_v45 }
 0xd57 PF: > { %s18_s24 = sadd.s32 1, %s6043_s24  }
 0xd58   : > { %p15_p5 = scmp.ge.s32.totalorder %s18_s24, 4  }
 0xd5a   :  { %17 = sbr.rel (!%p15_p5) target bundleno = 1 (0x1), region = 115 }

// kernel: xai_model_forward.3
= control target key start
LH: loop header
LB: loop body
LE: loop exit
PB: predicated region body
PF: predicated region fallthrough
CT: control target
= control target key end

     0   :  { %vm3985_vm0 = vmmov 0   ;;  %s4918_s0 = inlined_call_operand.vmem [shape: f32[4,3968], index: 0, kind: input, shape index: {}]   ;;  %s4919_s1 = inlined_call_operand.vmem [shape: f32[4,128], index: 1, kind: input, shape index: {}]   ;;  %s4920_s2 = inlined_call_operand.vmem [shape: bf16[3968,124], index: 2, kind: input, shape index: {}]   ;;  %s4921_s3 = inlined_call_operand.vmem [shape: f32[1,124], index: 3, kind: input, shape index: {}]   ;;  %s4922_s4 = inlined_call_operand.vmem [shape: bf16[124,128], index: 4, kind: input, shape index: {}]   ;;  %s4923_s5 = inlined_call_operand.vmem [shape: bf16[128,128], index: 5, kind: input, shape index: {}]   ;;  %s4924_s6 = inlined_call_operand.vmem [shape: f32[1,128], index: 6, kind: input, shape index: {}]   ;;  %s4925_s7 = inlined_call_operand.hbm [shape: f32[4,128], index: 7, kind: output, shape index: {}]  }
   0x1   :  { %v3681_v0 = vld [vmem:[%s4920_s2 + $0x40] sm:$0xff]   ;;  %v3685_v4 = vld [vmem:[%s4920_s2 + $0x48] sm:$0xff]   ;;  %v3689_v8 = vld [vmem:[%s4920_s2 + $0x50] sm:$0xff]  }
   0x2   :  { %v3682_v1 = vld [vmem:[%s4920_s2] sm:$0xff]   ;;  %3261 = vmatprep.subr.bf16.mxu0 %v3681_v0  ;;  %v3686_v5 = vld [vmem:[%s4920_s2 + $0x8] sm:$0xff]   ;;  %v3690_v9 = vld [vmem:[%s4920_s2 + $0x10] sm:$0xff]  }
   0x3   :  { %v3683_v2 = vld [vmem:[%s4920_s2 + $0xc0] sm:$0xff]   ;;  %3262 = vmatpush3.bf16.msra.mxu0 %v3682_v1  ;;  %v3687_v6 = vld [vmem:[%s4920_s2 + $0xc8] sm:$0xff]   ;;  %v3691_v10 = vld [vmem:[%s4920_s2 + $0xd0] sm:$0xff]  }
   0x4   :  { %v3684_v3 = vld [vmem:[%s4920_s2 + $0x80] sm:$0xff]   ;;  %3283 = vmatprep.subr.bf16.mxu1 %v3683_v2  ;;  %3263 = vmatprep.subr.bf16.mxu0 %v3685_v4  ;;  %v3688_v7 = vld [vmem:[%s4920_s2 + $0x88] sm:$0xff]   ;;  %v3692_v11 = vld [vmem:[%s4920_s2 + $0x90] sm:$0xff]  }
   0x5   :  { %3284 = vmatpush3.bf16.msra.mxu1 %v3684_v3  ;;  %v3693_v12 = vld [vmem:[%s4920_s2 + $0x58] sm:$0xff]   ;;  %v3697_v16 = vld [vmem:[%s4920_s2 + $0x60] sm:$0xff]   ;;  %v3701_v20 = vld [vmem:[%s4920_s2 + $0x68] sm:$0xff]  }
   0x6   :  { %3285 = vmatprep.subr.bf16.mxu1 %v3687_v6  ;;  %v3694_v13 = vld [vmem:[%s4920_s2 + $0x18] sm:$0xff]   ;;  %v3698_v17 = vld [vmem:[%s4920_s2 + $0x20] sm:$0xff]   ;;  %v3702_v21 = vld [vmem:[%s4920_s2 + $0x28] sm:$0xff]  }
   0x7   :  { %3264 = vmatpush3.bf16.msra.mxu0 %v3686_v5  ;;  %v3695_v14 = vld [vmem:[%s4920_s2 + $0xd8] sm:$0xff]   ;;  %v3699_v18 = vld [vmem:[%s4920_s2 + $0xe0] sm:$0xff]   ;;  %v3703_v22 = vld [vmem:[%s4920_s2 + $0xe8] sm:$0xff]  }
   0x8   :  { %3265 = vmatprep.subr.bf16.mxu0 %v3689_v8  ;;  %v3696_v15 = vld [vmem:[%s4920_s2 + $0x98] sm:$0xff]   ;;  %v3700_v19 = vld [vmem:[%s4920_s2 + $0xa0] sm:$0xff]   ;;  %v3704_v23 = vld [vmem:[%s4920_s2 + $0xa8] sm:$0xff]  }
   0x9   :  { %3286 = vmatpush3.bf16.msra.mxu1 %v3688_v7  ;;  %v3705_v24 = vld [vmem:[%s4920_s2 + $0x70] sm:$0xff]   ;;  %v3709_v28 = vld [vmem:[%s4920_s2 + $0x78] sm:$0xff]   ;;  %v28_v31 = vld [vmem:[%s4918_s0] sm:$0xff] }
   0xa   :  { %3287 = vmatprep.subr.bf16.mxu1 %v3691_v10  ;;  %v3706_v25 = vld [vmem:[%s4920_s2 + $0x30] sm:$0xff]   ;;  %v3710_v29 = vld [vmem:[%s4920_s2 + $0x38] sm:$0xff]   ;;  %v59_v32 = vcombine.high %v28_v31, %v28_v31  ;;  %v89_v34 = vpack.c.bf16 %v28_v31, %v28_v31  ;;  %v3714_v35 = vld [vmem:[%s4920_s2 + $0x140] sm:$0xff]  }
   0xb   :  { %3266 = vmatpush3.bf16.msra.mxu0 %v3690_v9  ;;  %v3707_v26 = vld [vmem:[%s4920_s2 + $0xf0] sm:$0xff]   ;;  %v3711_v30 = vld [vmem:[%s4920_s2 + $0xf8] sm:$0xff]   ;;  %v29_v36 = vld [vmem:[%s4918_s0 + $0x8] sm:$0xff] }
   0xc   :  { %3267 = vmatprep.subr.bf16.mxu0 %v3693_v12  ;;  %v3708_v27 = vld [vmem:[%s4920_s2 + $0xb0] sm:$0xff]   ;;  %v3713_v33 = vld [vmem:[%s4920_s2 + $0xb8] sm:$0xff]   ;;  %v90_v37 = vpack.c.bf16 %v59_v32, %v59_v32  ;;  %v60_v38 = vcombine.high %v29_v36, %v29_v36  ;;  %v3716_v39 = vld [vmem:[%s4920_s2 + $0x100] sm:$0xff]   ;;  %v91_v40 = vpack.c.bf16 %v29_v36, %v29_v36 }
   0xd   :  { %3288 = vmatpush3.bf16.msra.mxu1 %v3692_v11  ;;  %v3717_v41 = vld [vmem:[%s4920_s2 + $0x1c0] sm:$0xff]   ;;  %v3719_v44 = vld [vmem:[%s4920_s2 + $0x148] sm:$0xff]   ;;  %v3723_v48 = vld [vmem:[%s4920_s2 + $0x150] sm:$0xff]  }
   0xe   :  { %3289 = vmatprep.subr.bf16.mxu1 %v3695_v14  ;;  %2143 = vmatprep.mubr.bf16.mxu0 %v90_v37  ;;  %v92_v42 = vpack.c.bf16 %v60_v38, %v60_v38  ;;  %v3718_v43 = vld [vmem:[%s4920_s2 + $0x180] sm:$0xff]   ;;  %v3720_v45 = vld [vmem:[%s4920_s2 + $0x108] sm:$0xff]   ;;  %v3724_v49 = vld [vmem:[%s4920_s2 + $0x110] sm:$0xff]  }
   0xf   :  { %3268 = vmatpush3.bf16.msra.mxu0 %v3694_v13  ;;  %v3721_v46 = vld [vmem:[%s4920_s2 + $0x1c8] sm:$0xff]   ;;  %v3725_v50 = vld [vmem:[%s4920_s2 + $0x1d0] sm:$0xff]   ;;  %v3727_v52 = vld [vmem:[%s4920_s2 + $0x158] sm:$0xff]  }
  0x10   :  { %3269 = vmatprep.subr.bf16.mxu0 %v3697_v16  ;;  %2183 = vmatprep.mubr.bf16.mxu1 %v92_v42  ;;  %v3722_v47 = vld [vmem:[%s4920_s2 + $0x188] sm:$0xff]   ;;  %v3726_v51 = vld [vmem:[%s4920_s2 + $0x190] sm:$0xff]   ;;  %v3728_v53 = vld [vmem:[%s4920_s2 + $0x118] sm:$0xff]  }
  0x11   :  { %3290 = vmatpush3.bf16.msra.mxu1 %v3696_v15  ;;  %v3729_v54 = vld [vmem:[%s4920_s2 + $0x1d8] sm:$0xff]   ;;  %v3731_v56 = vld [vmem:[%s4920_s2 + $0x160] sm:$0xff]   ;;  %v3735_v60 = vld [vmem:[%s4920_s2 + $0x168] sm:$0xff]  }
  0x12   :  { %3291 = vmatprep.subr.bf16.mxu1 %v3699_v18  ;;  %v3730_v55 = vld [vmem:[%s4920_s2 + $0x198] sm:$0xff]   ;;  %v3732_v57 = vld [vmem:[%s4920_s2 + $0x120] sm:$0xff]   ;;  %v3736_v61 = vld [vmem:[%s4920_s2 + $0x128] sm:$0xff]  }
  0x13   :  { %3270 = vmatpush3.bf16.msra.mxu0 %v3698_v17  ;;  %v3733_v58 = vld [vmem:[%s4920_s2 + $0x1e0] sm:$0xff]   ;;  %v3737_v62 = vld [vmem:[%s4920_s2 + $0x1e8] sm:$0xff]   ;;  %v3739_v0 = vld [vmem:[%s4920_s2 + $0x170] sm:$0xff]  }
  0x14   :  { %3271 = vmatprep.subr.bf16.mxu0 %v3701_v20  ;;  %v3734_v59 = vld [vmem:[%s4920_s2 + $0x1a0] sm:$0xff]   ;;  %v3738_v63 = vld [vmem:[%s4920_s2 + $0x1a8] sm:$0xff]   ;;  %v3740_v1 = vld [vmem:[%s4920_s2 + $0x130] sm:$0xff]  }
  0x15   :  { %3292 = vmatpush3.bf16.msra.mxu1 %v3700_v19  ;;  %v3741_v2 = vld [vmem:[%s4920_s2 + $0x1f0] sm:$0xff]   ;;  %v3743_v4 = vld [vmem:[%s4920_s2 + $0x178] sm:$0xff]   ;;  %v3748_v11 = vld [vmem:[%s4920_s2 + $0x240] sm:$0xff]  }
  0x16   :  { %3293 = vmatprep.subr.bf16.mxu1 %v3703_v22  ;;  %v3742_v3 = vld [vmem:[%s4920_s2 + $0x1b0] sm:$0xff]   ;;  %v3744_v5 = vld [vmem:[%s4920_s2 + $0x138] sm:$0xff]   ;;  %v3750_v15 = vld [vmem:[%s4920_s2 + $0x200] sm:$0xff]  }
  0x17   :  { %3272 = vmatpush3.bf16.msra.mxu0 %v3702_v21  ;;  %v3745_v6 = vld [vmem:[%s4920_s2 + $0x1f8] sm:$0xff]   ;;  %v30_v7 = vld [vmem:[%s4918_s0 + $0x10] sm:$0xff]  ;;  %v3751_v17 = vld [vmem:[%s4920_s2 + $0x2c0] sm:$0xff]  }
  0x18   :  { %3273 = vmatprep.subr.bf16.mxu0 %v3705_v24  ;;  %v61_v8 = vcombine.high %v30_v7, %v30_v7  ;;  %v3747_v9 = vld [vmem:[%s4920_s2 + $0x1b8] sm:$0xff]   ;;  %v93_v10 = vpack.c.bf16 %v30_v7, %v30_v7  ;;  %v3752_v19 = vld [vmem:[%s4920_s2 + $0x280] sm:$0xff]   ;;  %v3753_v20 = vld [vmem:[%s4920_s2 + $0x248] sm:$0xff]  }
  0x19   :  { %3294 = vmatpush3.bf16.msra.mxu1 %v3704_v23  ;;  %v31_v13 = vld [vmem:[%s4918_s0 + $0x18] sm:$0xff]  ;;  %v3754_v21 = vld [vmem:[%s4920_s2 + $0x208] sm:$0xff]   ;;  %v3757_v24 = vld [vmem:[%s4920_s2 + $0x250] sm:$0xff]  }
  0x1a   :  { %3295 = vmatprep.subr.bf16.mxu1 %v3707_v26  ;;  %v94_v12 = vpack.c.bf16 %v61_v8, %v61_v8  ;;  %v62_v14 = vcombine.high %v31_v13, %v31_v13  ;;  %v95_v16 = vpack.c.bf16 %v31_v13, %v31_v13  ;;  %v3755_v22 = vld [vmem:[%s4920_s2 + $0x2c8] sm:$0xff]   ;;  %v3759_v26 = vld [vmem:[%s4920_s2 + $0x2d0] sm:$0xff]   ;;  %v3764_v31 = vld [vmem:[%s4920_s2 + $0x298] sm:$0xff]  }
  0x1b   :  { %3274 = vmatpush3.bf16.msra.mxu0 %v3706_v25  ;;  %v3756_v23 = vld [vmem:[%s4920_s2 + $0x288] sm:$0xff]   ;;  %v3758_v25 = vld [vmem:[%s4920_s2 + $0x210] sm:$0xff]   ;;  %v3765_v32 = vld [vmem:[%s4920_s2 + $0x260] sm:$0xff]  }
  0x1c   :  { %3275 = vmatprep.subr.bf16.mxu0 %v3709_v28  ;;  %v96_v18 = vpack.c.bf16 %v62_v14, %v62_v14  ;;  %v3761_v28 = vld [vmem:[%s4920_s2 + $0x258] sm:$0xff]   ;;  %v3769_v36 = vld [vmem:[%s4920_s2 + $0x268] sm:$0xff]   ;;  %v3775_v42 = vld [vmem:[%s4920_s2 + $0x2f0] sm:$0xff]  }
  0x1d   :  { %3296 = vmatpush3.bf16.msra.mxu1 %v3708_v27  ;;  %v3760_v27 = vld [vmem:[%s4920_s2 + $0x290] sm:$0xff]   ;;  %v3770_v37 = vld [vmem:[%s4920_s2 + $0x228] sm:$0xff]   ;;  %v3798_v7 = vld [vmem:[%s4920_s2 + $0x398] sm:$0xff]  }
  0x1e   :  { %3297 = vmatprep.subr.bf16.mxu1 %v3711_v30  ;;  %v3763_v30 = vld [vmem:[%s4920_s2 + $0x2d8] sm:$0xff]   ;;  %v3771_v38 = vld [vmem:[%s4920_s2 + $0x2e8] sm:$0xff]   ;;  %v3799_v8 = vld [vmem:[%s4920_s2 + $0x360] sm:$0xff]  }
  0x1f   :  { %3276 = vmatpush3.bf16.msra.mxu0 %v3710_v29  ;;  %v3762_v29 = vld [vmem:[%s4920_s2 + $0x218] sm:$0xff]   ;;  %v3804_v13 = vld [vmem:[%s4920_s2 + $0x328] sm:$0xff]  }
  0x20   :  { %3305 = vmatprep.subr.bf16.mxu0 %v3714_v35  ;;  %v3768_v35 = vld [vmem:[%s4920_s2 + $0x2a0] sm:$0xff]   ;;  %v3805_v14 = vld [vmem:[%s4920_s2 + $0x3e8] sm:$0xff]  }
  0x21   :  { %3298 = vmatpush3.bf16.msra.mxu1 %v3713_v33  ;;  %v3766_v33 = vld [vmem:[%s4920_s2 + $0x220] sm:$0xff]  }
  0x22   :  { %2144 = vmatmul.mubr.bf16.vlgmr.msra.gmra.mrb[0].mxu0 %v89_v34  ;;  %3327 = vmatprep.subr.bf16.mxu1 %v3717_v41  ;;  %v3767_v34 = vld [vmem:[%s4920_s2 + $0x2e0] sm:$0xff]   ;;  %v3774_v41 = vld [vmem:[%s4920_s2 + $0x230] sm:$0xff]  }
  0x23   :  { %3306 = vmatpush3.bf16.msra.mxu0 %v3716_v39  ;;  %2223 = vmatprep.mubr.bf16.mxu0 %v94_v12  ;;  %v3772_v39 = vld [vmem:[%s4920_s2 + $0x2a8] sm:$0xff]  }
  0x24   :  { %2184 = vmatmul.mubr.bf16.vlgmr.msra.gmra.mrb[0].mxu1 %v91_v40  ;;  %3307 = vmatprep.subr.bf16.mxu0 %v3719_v44  ;;  %v3773_v40 = vld [vmem:[%s4920_s2 + $0x270] sm:$0xff]   ;;  %v3777_v44 = vld [vmem:[%s4920_s2 + $0x278] sm:$0xff]   ;;  %v3803_v12 = vld [vmem:[%s4920_s2 + $0x368] sm:$0xff]  }
  0x25   :  { %3328 = vmatpush3.bf16.msra.mxu1 %v3718_v43  ;;  %2263 = vmatprep.mubr.bf16.mxu1 %v96_v18  ;;  %v3776_v43 = vld [vmem:[%s4920_s2 + $0x2b0] sm:$0xff]  }
  0x26   :  { %3329 = vmatprep.subr.bf16.mxu1 %v3721_v46  ;;  %v3779_v46 = vld [vmem:[%s4920_s2 + $0x2f8] sm:$0xff]   ;;  %v3809_v18 = vld [vmem:[%s4920_s2 + $0x3f0] sm:$0xff]  }
  0x27   :  { %3308 = vmatpush3.bf16.msra.mxu0 %v3720_v45  ;;  %v3778_v45 = vld [vmem:[%s4920_s2 + $0x238] sm:$0xff]  }
  0x28   :  { %3309 = vmatprep.subr.bf16.mxu0 %v3723_v48 }
  0x29   :  { %3330 = vmatpush3.bf16.msra.mxu1 %v3722_v47  ;;  %v32_v47 = vld [vmem:[%s4918_s0 + $0x20] sm:$0xff] }
  0x2a   :  { %3331 = vmatprep.subr.bf16.mxu1 %v3725_v50  ;;  %v63_v48 = vcombine.high %v32_v47, %v32_v47  ;;  %v97_v50 = vpack.c.bf16 %v32_v47, %v32_v47  ;;  %v3832_v47 = vld [vmem:[%s4920_s2 + $0x498] sm:$0xff]  }
  0x2b   :  { %3310 = vmatpush3.bf16.msra.mxu0 %v3724_v49  ;;  %v3781_v49 = vld [vmem:[%s4920_s2 + $0x2b8] sm:$0xff]  }
  0x2c   :  { %3311 = vmatprep.subr.bf16.mxu0 %v3727_v52  ;;  %v33_v52 = vld [vmem:[%s4918_s0 + $0x28] sm:$0xff] }
  0x2d   :  { %3332 = vmatpush3.bf16.msra.mxu1 %v3726_v51  ;;  %v3782_v51 = vld [vmem:[%s4920_s2 + $0x340] sm:$0xff]  }
  0x2e   :  { %3333 = vmatprep.subr.bf16.mxu1 %v3729_v54  ;;  %v64_v54 = vcombine.high %v33_v52, %v33_v52 }
  0x2f   :  { %3312 = vmatpush3.bf16.msra.mxu0 %v3728_v53  ;;  %v98_v53 = vpack.c.bf16 %v63_v48, %v63_v48  ;;  %v3833_v48 = vld [vmem:[%s4920_s2 + $0x460] sm:$0xff]  }
  0x30   :  { %3313 = vmatprep.subr.bf16.mxu0 %v3731_v56  ;;  %v99_v56 = vpack.c.bf16 %v33_v52, %v33_v52  ;;  %v3837_v52 = vld [vmem:[%s4920_s2 + $0x468] sm:$0xff]  }
  0x31   :  { %3334 = vmatpush3.bf16.msra.mxu1 %v3730_v55  ;;  %v3784_v55 = vld [vmem:[%s4920_s2 + $0x300] sm:$0xff]  }
  0x32   :  { %3335 = vmatprep.subr.bf16.mxu1 %v3733_v58  ;;  %v100_v58 = vpack.c.bf16 %v64_v54, %v64_v54  ;;  %v3839_v54 = vld [vmem:[%s4920_s2 + $0x4e8] sm:$0xff]  }
  0x33   :  { %3314 = vmatpush3.bf16.msra.mxu0 %v3732_v57  ;;  %v3785_v57 = vld [vmem:[%s4920_s2 + $0x3c0] sm:$0xff]  }
  0x34   :  { %3315 = vmatprep.subr.bf16.mxu0 %v3735_v60  ;;  %v3787_v60 = vld [vmem:[%s4920_s2 + $0x348] sm:$0xff]  }
  0x35   :  { %3336 = vmatpush3.bf16.msra.mxu1 %v3734_v59  ;;  %v3786_v59 = vld [vmem:[%s4920_s2 + $0x380] sm:$0xff]  }
  0x36   :  { %3337 = vmatprep.subr.bf16.mxu1 %v3737_v62  ;;  %v3789_v62 = vld [vmem:[%s4920_s2 + $0x3c8] sm:$0xff]  }
  0x37   :  { %3316 = vmatpush3.bf16.msra.mxu0 %v3736_v61  ;;  %v3788_v61 = vld [vmem:[%s4920_s2 + $0x308] sm:$0xff]  }
  0x38   :  { %3317 = vmatprep.subr.bf16.mxu0 %v3739_v0  ;;  %v3791_v0 = vld [vmem:[%s4920_s2 + $0x350] sm:$0xff]  }
  0x39   :  { %3338 = vmatpush3.bf16.msra.mxu1 %v3738_v63  ;;  %v3790_v63 = vld [vmem:[%s4920_s2 + $0x388] sm:$0xff]  }
  0x3a   :  { %3339 = vmatprep.subr.bf16.mxu1 %v3741_v2  ;;  %v3793_v2 = vld [vmem:[%s4920_s2 + $0x3d0] sm:$0xff]  }
  0x3b   :  { %3318 = vmatpush3.bf16.msra.mxu0 %v3740_v1  ;;  %v3792_v1 = vld [vmem:[%s4920_s2 + $0x310] sm:$0xff]  }
  0x3c   :  { %3319 = vmatprep.subr.bf16.mxu0 %v3743_v4  ;;  %v3795_v4 = vld [vmem:[%s4920_s2 + $0x358] sm:$0xff]  }
  0x3d   :  { %3340 = vmatpush3.bf16.msra.mxu1 %v3742_v3  ;;  %v3794_v3 = vld [vmem:[%s4920_s2 + $0x390] sm:$0xff]  }
  0x3e   :  { %3341 = vmatprep.subr.bf16.mxu1 %v3745_v6  ;;  %v3797_v6 = vld [vmem:[%s4920_s2 + $0x3d8] sm:$0xff]  }
  0x3f   :  { %3320 = vmatpush3.bf16.msra.mxu0 %v3744_v5  ;;  %v3796_v5 = vld [vmem:[%s4920_s2 + $0x318] sm:$0xff]  }
  0x40   :  { %3349 = vmatprep.subr.bf16.mxu0 %v3748_v11  ;;  %v3802_v11 = vld [vmem:[%s4920_s2 + $0x3a0] sm:$0xff]  }
  0x41   :  { %3342 = vmatpush3.bf16.msra.mxu1 %v3747_v9  ;;  %v3800_v9 = vld [vmem:[%s4920_s2 + $0x320] sm:$0xff]  }
  0x42   :  { %2224 = vmatmul.mubr.bf16.vlgmr.msra.gmra.mrb[4].mxu0 %v93_v10  ;;  %3371 = vmatprep.subr.bf16.mxu1 %v3751_v17  ;;  %v3801_v10 = vld [vmem:[%s4920_s2 + $0x3e0] sm:$0xff]   ;;  %v3808_v17 = vld [vmem:[%s4920_s2 + $0x330] sm:$0xff]  }
  0x43   :  { %3350 = vmatpush3.bf16.msra.mxu0 %v3750_v15  ;;  %2303 = vmatprep.mubr.bf16.mxu0 %v98_v53  ;;  %v3806_v15 = vld [vmem:[%s4920_s2 + $0x3a8] sm:$0xff]  }
  0x44   :  { %2264 = vmatmul.mubr.bf16.vlgmr.msra.gmra.mrb[4].mxu1 %v95_v16  ;;  %3351 = vmatprep.subr.bf16.mxu0 %v3753_v20  ;;  %v3807_v16 = vld [vmem:[%s4920_s2 + $0x370] sm:$0xff]   ;;  %v3811_v20 = vld [vmem:[%s4920_s2 + $0x378] sm:$0xff]   ;;  %v3838_v53 = vld [vmem:[%s4920_s2 + $0x428] sm:$0xff]  }
  0x45   :  { %3372 = vmatpush3.bf16.msra.mxu1 %v3752_v19  ;;  %2343 = vmatprep.mubr.bf16.mxu1 %v100_v58  ;;  %v3810_v19 = vld [vmem:[%s4920_s2 + $0x3b0] sm:$0xff]  }
  0x46   :  { %3373 = vmatprep.subr.bf16.mxu1 %v3755_v22  ;;  %v3813_v22 = vld [vmem:[%s4920_s2 + $0x3f8] sm:$0xff]   ;;  %v3843_v58 = vld [vmem:[%s4920_s2 + $0x4f0] sm:$0xff]  }
  0x47   :  { %3352 = vmatpush3.bf16.msra.mxu0 %v3754_v21  ;;  %v3812_v21 = vld [vmem:[%s4920_s2 + $0x338] sm:$0xff]  }
  0x48   :  { %3353 = vmatprep.subr.bf16.mxu0 %v3757_v24 }
  0x49   :  { %3374 = vmatpush3.bf16.msra.mxu1 %v3756_v23  ;;  %v34_v23 = vld [vmem:[%s4918_s0 + $0x30] sm:$0xff] }
  0x4a   :  { %3375 = vmatprep.subr.bf16.mxu1 %v3759_v26  ;;  %v65_v24 = vcombine.high %v34_v23, %v34_v23  ;;  %v101_v26 = vpack.c.bf16 %v34_v23, %v34_v23  ;;  %v3866_v23 = vld [vmem:[%s4920_s2 + $0x598] sm:$0xff]  }
  0x4b   :  { %3354 = vmatpush3.bf16.msra.mxu0 %v3758_v25  ;;  %v3815_v25 = vld [vmem:[%s4920_s2 + $0x3b8] sm:$0xff]  }
  0x4c   :  { %3355 = vmatprep.subr.bf16.mxu0 %v3761_v28  ;;  %v35_v28 = vld [vmem:[%s4918_s0 + $0x38] sm:$0xff] }
  0x4d   :  { %3376 = vmatpush3.bf16.msra.mxu1 %v3760_v27  ;;  %v3816_v27 = vld [vmem:[%s4920_s2 + $0x440] sm:$0xff]  }
  0x4e   :  { %3377 = vmatprep.subr.bf16.mxu1 %v3763_v30  ;;  %v66_v30 = vcombine.high %v35_v28, %v35_v28 }
  0x4f   :  { %3356 = vmatpush3.bf16.msra.mxu0 %v3762_v29  ;;  %v102_v29 = vpack.c.bf16 %v65_v24, %v65_v24  ;;  %v3867_v24 = vld [vmem:[%s4920_s2 + $0x560] sm:$0xff]  }
  0x50   :  { %3357 = vmatprep.subr.bf16.mxu0 %v3765_v32  ;;  %v103_v32 = vpack.c.bf16 %v35_v28, %v35_v28  ;;  %v3871_v28 = vld [vmem:[%s4920_s2 + $0x568] sm:$0xff]  }
  0x51   :  { %3378 = vmatpush3.bf16.msra.mxu1 %v3764_v31  ;;  %v3818_v31 = vld [vmem:[%s4920_s2 + $0x400] sm:$0xff]  }
  0x52   :  { %3379 = vmatprep.subr.bf16.mxu1 %v3767_v34  ;;  %v104_v34 = vpack.c.bf16 %v66_v30, %v66_v30  ;;  %v3873_v30 = vld [vmem:[%s4920_s2 + $0x5e8] sm:$0xff]  }
  0x53   :  { %3358 = vmatpush3.bf16.msra.mxu0 %v3766_v33  ;;  %v3819_v33 = vld [vmem:[%s4920_s2 + $0x4c0] sm:$0xff]  }
  0x54   :  { %3359 = vmatprep.subr.bf16.mxu0 %v3769_v36  ;;  %v3821_v36 = vld [vmem:[%s4920_s2 + $0x448] sm:$0xff]  }
  0x55   :  { %3380 = vmatpush3.bf16.msra.mxu1 %v3768_v35  ;;  %v3820_v35 = vld [vmem:[%s4920_s2 + $0x480] sm:$0xff]  }
  0x56   :  { %3381 = vmatprep.subr.bf16.mxu1 %v3771_v38  ;;  %v3823_v38 = vld [vmem:[%s4920_s2 + $0x4c8] sm:$0xff]  }
  0x57   :  { %3360 = vmatpush3.bf16.msra.mxu0 %v3770_v37  ;;  %v3822_v37 = vld [vmem:[%s4920_s2 + $0x408] sm:$0xff]  }
  0x58   :  { %3361 = vmatprep.subr.bf16.mxu0 %v3773_v40  ;;  %v3825_v40 = vld [vmem:[%s4920_s2 + $0x450] sm:$0xff]  }
  0x59   :  { %3382 = vmatpush3.bf16.msra.mxu1 %v3772_v39  ;;  %v3824_v39 = vld [vmem:[%s4920_s2 + $0x488] sm:$0xff]  }
  0x5a   :  { %3383 = vmatprep.subr.bf16.mxu1 %v3775_v42  ;;  %v3827_v42 = vld [vmem:[%s4920_s2 + $0x4d0] sm:$0xff]  }
  0x5b   :  { %3362 = vmatpush3.bf16.msra.mxu0 %v3774_v41  ;;  %v3826_v41 = vld [vmem:[%s4920_s2 + $0x410] sm:$0xff]  }
  0x5c   :  { %3363 = vmatprep.subr.bf16.mxu0 %v3777_v44  ;;  %v3829_v44 = vld [vmem:[%s4920_s2 + $0x458] sm:$0xff]  }
  0x5d   :  { %3384 = vmatpush3.bf16.msra.mxu1 %v3776_v43  ;;  %v3828_v43 = vld [vmem:[%s4920_s2 + $0x490] sm:$0xff]  }
  0x5e   :  { %3385 = vmatprep.subr.bf16.mxu1 %v3779_v46  ;;  %v3831_v46 = vld [vmem:[%s4920_s2 + $0x4d8] sm:$0xff]  }
  0x5f   :  { %3364 = vmatpush3.bf16.msra.mxu0 %v3778_v45  ;;  %v3830_v45 = vld [vmem:[%s4920_s2 + $0x418] sm:$0xff]  }
  0x60   :  { %3393 = vmatprep.subr.bf16.mxu0 %v3782_v51  ;;  %v3836_v51 = vld [vmem:[%s4920_s2 + $0x4a0] sm:$0xff]  }
  0x61   :  { %3386 = vmatpush3.bf16.msra.mxu1 %v3781_v49  ;;  %v3834_v49 = vld [vmem:[%s4920_s2 + $0x420] sm:$0xff]  }
  0x62   :  { %2304 = vmatmul.mubr.bf16.vlgmr.msra.gmra.mrb[8].mxu0 %v97_v50  ;;  %3415 = vmatprep.subr.bf16.mxu1 %v3785_v57  ;;  %v3835_v50 = vld [vmem:[%s4920_s2 + $0x4e0] sm:$0xff]   ;;  %v3842_v57 = vld [vmem:[%s4920_s2 + $0x430] sm:$0xff]  }
  0x63   :  { %3394 = vmatpush3.bf16.msra.mxu0 %v3784_v55  ;;  %2383 = vmatprep.mubr.bf16.mxu0 %v102_v29  ;;  %v3840_v55 = vld [vmem:[%s4920_s2 + $0x4a8] sm:$0xff]  }
  0x64   :  { %2344 = vmatmul.mubr.bf16.vlgmr.msra.gmra.mrb[8].mxu1 %v99_v56  ;;  %3395 = vmatprep.subr.bf16.mxu0 %v3787_v60  ;;  %v3841_v56 = vld [vmem:[%s4920_s2 + $0x470] sm:$0xff]   ;;  %v3845_v60 = vld [vmem:[%s4920_s2 + $0x478] sm:$0xff]   ;;  %v3872_v29 = vld [vmem:[%s4920_s2 + $0x528] sm:$0xff]  }
  0x65   :  { %3416 = vmatpush3.bf16.msra.mxu1 %v3786_v59  ;;  %2423 = vmatprep.mubr.bf16.mxu1 %v104_v34  ;;  %v3844_v59 = vld [vmem:[%s4920_s2 + $0x4b0] sm:$0xff]  }
  0x66   :  { %3417 = vmatprep.subr.bf16.mxu1 %v3789_v62  ;;  %v3847_v62 = vld [vmem:[%s4920_s2 + $0x4f8] sm:$0xff]   ;;  %v3877_v34 = vld [vmem:[%s4920_s2 + $0x5f0] sm:$0xff]  }
  0x67   :  { %3396 = vmatpush3.bf16.msra.mxu0 %v3788_v61  ;;  %v3846_v61 = vld [vmem:[%s4920_s2 + $0x438] sm:$0xff]  }
  0x68   :  { %3397 = vmatprep.subr.bf16.mxu0 %v3791_v0 }
  0x69   :  { %3418 = vmatpush3.bf16.msra.mxu1 %v3790_v63  ;;  %v36_v63 = vld [vmem:[%s4918_s0 + $0x40] sm:$0xff] }
  0x6a   :  { %3419 = vmatprep.subr.bf16.mxu1 %v3793_v2  ;;  %v67_v0 = vcombine.high %v36_v63, %v36_v63  ;;  %v105_v2 = vpack.c.bf16 %v36_v63, %v36_v63  ;;  %v3900_v63 = vld [vmem:[%s4920_s2 + $0x698] sm:$0xff]  }
  0x6b   :  { %3398 = vmatpush3.bf16.msra.mxu0 %v3792_v1  ;;  %v3849_v1 = vld [vmem:[%s4920_s2 + $0x4b8] sm:$0xff]  }
  0x6c   :  { %3399 = vmatprep.subr.bf16.mxu0 %v3795_v4  ;;  %v106_v4 = vpack.c.bf16 %v67_v0, %v67_v0  ;;  %v3901_v0 = vld [vmem:[%s4920_s2 + $0x660] sm:$0xff]  }
  0x6d   :  { %3420 = vmatpush3.bf16.msra.mxu1 %v3794_v3  ;;  %v3850_v3 = vld [vmem:[%s4920_s2 + $0x540] sm:$0xff]  }
  0x6e   :  { %3421 = vmatprep.subr.bf16.mxu1 %v3797_v6 }
  0x6f   :  { %3400 = vmatpush3.bf16.msra.mxu0 %v3796_v5  ;;  %v37_v5 = vld [vmem:[%s4918_s0 + $0x48] sm:$0xff] }
  0x70   :  { %3401 = vmatprep.subr.bf16.mxu0 %v3799_v8  ;;  %v68_v6 = vcombine.high %v37_v5, %v37_v5  ;;  %v107_v8 = vpack.c.bf16 %v37_v5, %v37_v5  ;;  %v3906_v5 = vld [vmem:[%s4920_s2 + $0x628] sm:$0xff]  }
  0x71   :  { %3422 = vmatpush3.bf16.msra.mxu1 %v3798_v7  ;;  %v3852_v7 = vld [vmem:[%s4920_s2 + $0x500] sm:$0xff]  }
  0x72   :  { %3423 = vmatprep.subr.bf16.mxu1 %v3801_v10  ;;  %v108_v10 = vpack.c.bf16 %v68_v6, %v68_v6  ;;  %v3907_v6 = vld [vmem:[%s4920_s2 + $0x6e8] sm:$0xff]  }
  0x73   :  { %3402 = vmatpush3.bf16.msra.mxu0 %v3800_v9  ;;  %v3853_v9 = vld [vmem:[%s4920_s2 + $0x5c0] sm:$0xff]  }
  0x74   :  { %3403 = vmatprep.subr.bf16.mxu0 %v3803_v12  ;;  %v3855_v12 = vld [vmem:[%s4920_s2 + $0x548] sm:$0xff]  }
  0x75   :  { %3424 = vmatpush3.bf16.msra.mxu1 %v3802_v11  ;;  %v3854_v11 = vld [vmem:[%s4920_s2 + $0x580] sm:$0xff]  }
  0x76   :  { %3425 = vmatprep.subr.bf16.mxu1 %v3805_v14  ;;  %v3857_v14 = vld [vmem:[%s4920_s2 + $0x5c8] sm:$0xff]  }
  0x77   :  { %3404 = vmatpush3.bf16.msra.mxu0 %v3804_v13  ;;  %v3856_v13 = vld [vmem:[%s4920_s2 + $0x508] sm:$0xff]  }
  0x78   :  { %3405 = vmatprep.subr.bf16.mxu0 %v3807_v16  ;;  %v3859_v16 = vld [vmem:[%s4920_s2 + $0x550] sm:$0xff]  }
  0x79   :  { %3426 = vmatpush3.bf16.msra.mxu1 %v3806_v15  ;;  %v3858_v15 = vld [vmem:[%s4920_s2 + $0x588] sm:$0xff]  }
  0x7a   :  { %3427 = vmatprep.subr.bf16.mxu1 %v3809_v18  ;;  %v3861_v18 = vld [vmem:[%s4920_s2 + $0x5d0] sm:$0xff]  }
  0x7b   :  { %3406 = vmatpush3.bf16.msra.mxu0 %v3808_v17  ;;  %v3860_v17 = vld [vmem:[%s4920_s2 + $0x510] sm:$0xff]  }
  0x7c   :  { %3407 = vmatprep.subr.bf16.mxu0 %v3811_v20  ;;  %v3863_v20 = vld [vmem:[%s4920_s2 + $0x558] sm:$0xff]  }
  0x7d   :  { %3428 = vmatpush3.bf16.msra.mxu1 %v3810_v19  ;;  %v3862_v19 = vld [vmem:[%s4920_s2 + $0x590] sm:$0xff]  }
  0x7e   :  { %3429 = vmatprep.subr.bf16.mxu1 %v3813_v22  ;;  %v3865_v22 = vld [vmem:[%s4920_s2 + $0x5d8] sm:$0xff]  }
  0x7f   :  { %3408 = vmatpush3.bf16.msra.mxu0 %v3812_v21  ;;  %v3864_v21 = vld [vmem:[%s4920_s2 + $0x518] sm:$0xff]  }
  0x80   :  { %3437 = vmatprep.subr.bf16.mxu0 %v3816_v27  ;;  %v3870_v27 = vld [vmem:[%s4920_s2 + $0x5a0] sm:$0xff]  }
  0x81   :  { %3430 = vmatpush3.bf16.msra.mxu1 %v3815_v25  ;;  %v3868_v25 = vld [vmem:[%s4920_s2 + $0x520] sm:$0xff]  }
  0x82   :  { %2384 = vmatmul.mubr.bf16.vlgmr.msra.gmra.mrb[12].mxu0 %v101_v26  ;;  %3459 = vmatprep.subr.bf16.mxu1 %v3819_v33  ;;  %v3869_v26 = vld [vmem:[%s4920_s2 + $0x5e0] sm:$0xff]   ;;  %v3876_v33 = vld [vmem:[%s4920_s2 + $0x530] sm:$0xff]  }
  0x83   :  { %3438 = vmatpush3.bf16.msra.mxu0 %v3818_v31  ;;  %2463 = vmatprep.mubr.bf16.mxu0 %v106_v4  ;;  %v3874_v31 = vld [vmem:[%s4920_s2 + $0x5a8] sm:$0xff]  }
  0x84   :  { %2424 = vmatmul.mubr.bf16.vlgmr.msra.gmra.mrb[12].mxu1 %v103_v32  ;;  %3439 = vmatprep.subr.bf16.mxu0 %v3821_v36  ;;  %v3875_v32 = vld [vmem:[%s4920_s2 + $0x570] sm:$0xff]   ;;  %v3879_v36 = vld [vmem:[%s4920_s2 + $0x578] sm:$0xff]   ;;  %v3905_v4 = vld [vmem:[%s4920_s2 + $0x668] sm:$0xff]  }
  0x85   :  { %3460 = vmatpush3.bf16.msra.mxu1 %v3820_v35  ;;  %2503 = vmatprep.mubr.bf16.mxu1 %v108_v10  ;;  %v3878_v35 = vld [vmem:[%s4920_s2 + $0x5b0] sm:$0xff]  }
  0x86   :  { %3461 = vmatprep.subr.bf16.mxu1 %v3823_v38  ;;  %v3881_v38 = vld [vmem:[%s4920_s2 + $0x5f8] sm:$0xff]   ;;  %v3911_v10 = vld [vmem:[%s4920_s2 + $0x6f0] sm:$0xff]  }
  0x87   :  { %3440 = vmatpush3.bf16.msra.mxu0 %v3822_v37  ;;  %v3880_v37 = vld [vmem:[%s4920_s2 + $0x538] sm:$0xff]  }
  0x88   :  { %3441 = vmatprep.subr.bf16.mxu0 %v3825_v40 }
  0x89   :  { %3462 = vmatpush3.bf16.msra.mxu1 %v3824_v39  ;;  %v38_v39 = vld [vmem:[%s4918_s0 + $0x50] sm:$0xff] }
  0x8a   :  { %3463 = vmatprep.subr.bf16.mxu1 %v3827_v42  ;;  %v69_v40 = vcombine.high %v38_v39, %v38_v39  ;;  %v109_v42 = vpack.c.bf16 %v38_v39, %v38_v39  ;;  %v2994_v39 = vld [vmem:[%s4921_s3] ss:$0 sm:$0xff] }
  0x8b   :  { %3442 = vmatpush3.bf16.msra.mxu0 %v3826_v41  ;;  %v3883_v41 = vld [vmem:[%s4920_s2 + $0x5b8] sm:$0xff]  }
  0x8c   :  { %3443 = vmatprep.subr.bf16.mxu0 %v3829_v44  ;;  %v39_v44 = vld [vmem:[%s4918_s0 + $0x58] sm:$0xff] }
  0x8d   :  { %3464 = vmatpush3.bf16.msra.mxu1 %v3828_v43  ;;  %v3884_v43 = vld [vmem:[%s4920_s2 + $0x640] sm:$0xff]  }
  0x8e   :  { %3465 = vmatprep.subr.bf16.mxu1 %v3831_v46  ;;  %v70_v46 = vcombine.high %v39_v44, %v39_v44 }
  0x8f   :  { %3444 = vmatpush3.bf16.msra.mxu0 %v3830_v45  ;;  %v110_v45 = vpack.c.bf16 %v69_v40, %v69_v40  ;;  %v3934_v40 = vld [vmem:[%s4920_s2 + $0x768] sm:$0xff]  }
  0x90   :  { %3445 = vmatprep.subr.bf16.mxu0 %v3833_v48  ;;  %v111_v48 = vpack.c.bf16 %v39_v44, %v39_v44  ;;  %v3935_v44 = vld [vmem:[%s4920_s2 + $0x728] sm:$0xff]  }
  0x91   :  { %3466 = vmatpush3.bf16.msra.mxu1 %v3832_v47  ;;  %v3886_v47 = vld [vmem:[%s4920_s2 + $0x600] sm:$0xff]  }
  0x92   :  { %3467 = vmatprep.subr.bf16.mxu1 %v3835_v50  ;;  %v112_v50 = vpack.c.bf16 %v70_v46, %v70_v46 }
  0x93   :  { %3446 = vmatpush3.bf16.msra.mxu0 %v3834_v49  ;;  %v3887_v49 = vld [vmem:[%s4920_s2 + $0x6c0] sm:$0xff]  }
  0x94   :  { %3447 = vmatprep.subr.bf16.mxu0 %v3837_v52  ;;  %v3889_v52 = vld [vmem:[%s4920_s2 + $0x648] sm:$0xff]  }
  0x95   :  { %3468 = vmatpush3.bf16.msra.mxu1 %v3836_v51  ;;  %v3888_v51 = vld [vmem:[%s4920_s2 + $0x680] sm:$0xff]  }
  0x96   :  { %3469 = vmatprep.subr.bf16.mxu1 %v3839_v54  ;;  %v3891_v54 = vld [vmem:[%s4920_s2 + $0x6c8] sm:$0xff]  }
  0x97   :  { %3448 = vmatpush3.bf16.msra.mxu0 %v3838_v53  ;;  %v3890_v53 = vld [vmem:[%s4920_s2 + $0x608] sm:$0xff]  }
  0x98   :  { %3449 = vmatprep.subr.bf16.mxu0 %v3841_v56  ;;  %v3893_v56 = vld [vmem:[%s4920_s2 + $0x650] sm:$0xff]  }
  0x99   :  { %3470 = vmatpush3.bf16.msra.mxu1 %v3840_v55  ;;  %v3892_v55 = vld [vmem:[%s4920_s2 + $0x688] sm:$0xff]  }
  0x9a   :  { %3471 = vmatprep.subr.bf16.mxu1 %v3843_v58  ;;  %v3895_v58 = vld [vmem:[%s4920_s2 + $0x6d0] sm:$0xff]  }
  0x9b   :  { %3450 = vmatpush3.bf16.msra.mxu0 %v3842_v57  ;;  %v3894_v57 = vld [vmem:[%s4920_s2 + $0x610] sm:$0xff]  }
  0x9c   :  { %3451 = vmatprep.subr.bf16.mxu0 %v3845_v60  ;;  %v3897_v60 = vld [vmem:[%s4920_s2 + $0x658] sm:$0xff]  }
  0x9d   :  { %3472 = vmatpush3.bf16.msra.mxu1 %v3844_v59  ;;  %v3896_v59 = vld [vmem:[%s4920_s2 + $0x690] sm:$0xff]  }
  0x9e   :  { %3473 = vmatprep.subr.bf16.mxu1 %v3847_v62  ;;  %v3899_v62 = vld [vmem:[%s4920_s2 + $0x6d8] sm:$0xff]  }
  0x9f   :  { %3452 = vmatpush3.bf16.msra.mxu0 %v3846_v61  ;;  %v3898_v61 = vld [vmem:[%s4920_s2 + $0x618] sm:$0xff]  }
  0xa0   :  { %3481 = vmatprep.subr.bf16.mxu0 %v3850_v3  ;;  %v3904_v3 = vld [vmem:[%s4920_s2 + $0x6a0] sm:$0xff]  }
  0xa1   :  { %3474 = vmatpush3.bf16.msra.mxu1 %v3849_v1  ;;  %v3902_v1 = vld [vmem:[%s4920_s2 + $0x620] sm:$0xff]  }
  0xa2   :  { %2464 = vmatmul.mubr.bf16.vlgmr.msra.gmra.mrb[16].mxu0 %v105_v2  ;;  %3503 = vmatprep.subr.bf16.mxu1 %v3853_v9  ;;  %v3903_v2 = vld [vmem:[%s4920_s2 + $0x6e0] sm:$0xff]   ;;  %v3910_v9 = vld [vmem:[%s4920_s2 + $0x630] sm:$0xff]  }
  0xa3   :  { %3482 = vmatpush3.bf16.msra.mxu0 %v3852_v7  ;;  %2543 = vmatprep.mubr.bf16.mxu0 %v110_v45  ;;  %v3908_v7 = vld [vmem:[%s4920_s2 + $0x6a8] sm:$0xff]  }
  0xa4   :  { %2504 = vmatmul.mubr.bf16.vlgmr.msra.gmra.mrb[16].mxu1 %v107_v8  ;;  %3483 = vmatprep.subr.bf16.mxu0 %v3855_v12  ;;  %v3909_v8 = vld [vmem:[%s4920_s2 + $0x670] sm:$0xff]   ;;  %v3913_v12 = vld [vmem:[%s4920_s2 + $0x678] sm:$0xff]  }
  0xa5   :  { %3504 = vmatpush3.bf16.msra.mxu1 %v3854_v11  ;;  %2583 = vmatprep.mubr.bf16.mxu1 %v112_v50  ;;  %v3912_v11 = vld [vmem:[%s4920_s2 + $0x6b0] sm:$0xff]   ;;  %v3936_v50 = vld [vmem:[%s4920_s2 + $0x7a8] sm:$0xff]  }
  0xa6   :  { %3505 = vmatprep.subr.bf16.mxu1 %v3857_v14  ;;  %v3915_v14 = vld [vmem:[%s4920_s2 + $0x6f8] sm:$0xff]  }
  0xa7   :  { %3484 = vmatpush3.bf16.msra.mxu0 %v3856_v13  ;;  %v3914_v13 = vld [vmem:[%s4920_s2 + $0x638] sm:$0xff]  }
  0xa8   :  { %3485 = vmatprep.subr.bf16.mxu0 %v3859_v16 }
  0xa9   :  { %3506 = vmatpush3.bf16.msra.mxu1 %v3858_v15  ;;  %v40_v15 = vld [vmem:[%s4918_s0 + $0x60] sm:$0xff] }
  0xaa   :  { %3507 = vmatprep.subr.bf16.mxu1 %v3861_v18  ;;  %v71_v16 = vcombine.high %v40_v15, %v40_v15  ;;  %v113_v18 = vpack.c.bf16 %v40_v15, %v40_v15 }
  0xab   :  { %3486 = vmatpush3.bf16.msra.mxu0 %v3860_v17  ;;  %v3917_v17 = vld [vmem:[%s4920_s2 + $0x6b8] sm:$0xff]  }
  0xac   :  { %3487 = vmatprep.subr.bf16.mxu0 %v3863_v20  ;;  %v41_v20 = vld [vmem:[%s4918_s0 + $0x68] sm:$0xff] }
  0xad   :  { %3508 = vmatpush3.bf16.msra.mxu1 %v3862_v19  ;;  %v3918_v19 = vld [vmem:[%s4920_s2 + $0x740] sm:$0xff]  }
  0xae   :  { %3509 = vmatprep.subr.bf16.mxu1 %v3865_v22  ;;  %v72_v22 = vcombine.high %v41_v20, %v41_v20 }
  0xaf   :  { %3488 = vmatpush3.bf16.msra.mxu0 %v3864_v21  ;;  %v114_v21 = vpack.c.bf16 %v71_v16, %v71_v16 }
  0xb0   :  { %3489 = vmatprep.subr.bf16.mxu0 %v3867_v24  ;;  %v115_v24 = vpack.c.bf16 %v41_v20, %v41_v20 }
  0xb1   :  { %3510 = vmatpush3.bf16.msra.mxu1 %v3866_v23  ;;  %v3920_v23 = vld [vmem:[%s4920_s2 + $0x700] sm:$0xff]  }
  0xb2   :  { %3511 = vmatprep.subr.bf16.mxu1 %v3869_v26  ;;  %v116_v26 = vpack.c.bf16 %v72_v22, %v72_v22 }
  0xb3   :  { %3490 = vmatpush3.bf16.msra.mxu0 %v3868_v25  ;;  %v3921_v25 = vld [vmem:[%s4920_s2 + $0x780] sm:$0xff]  }
  0xb4   :  { %3491 = vmatprep.subr.bf16.mxu0 %v3871_v28  ;;  %v3922_v28 = vld [vmem:[%s4920_s2 + $0x748] sm:$0xff]  }
  0xb5   :  { %3512 = vmatpush3.bf16.msra.mxu1 %v3870_v27  ;;  %v3984_v27 = vmov 0.0  }
  0xb6   :  { %3513 = vmatprep.subr.bf16.mxu1 %v3873_v30  ;;  %v3925_v30 = vld [vmem:[%s4920_s2 + $0x750] sm:$0xff]  }
  0xb7   :  { %3492 = vmatpush3.bf16.msra.mxu0 %v3872_v29  ;;  %v3923_v29 = vld [vmem:[%s4920_s2 + $0x708] sm:$0xff]  }
  0xb8   :  { %3493 = vmatprep.subr.bf16.mxu0 %v3875_v32  ;;  %v3926_v32 = vld [vmem:[%s4920_s2 + $0x710] sm:$0xff]  }
  0xb9   :  { %3514 = vmatpush3.bf16.msra.mxu1 %v3874_v31  ;;  %v3924_v31 = vld [vmem:[%s4920_s2 + $0x788] sm:$0xff]  }
  0xba   :  { %3515 = vmatprep.subr.bf16.mxu1 %v3877_v34  ;;  %v3927_v34 = vld [vmem:[%s4920_s2 + $0x790] sm:$0xff]  }
  0xbb   :  { %3494 = vmatpush3.bf16.msra.mxu0 %v3876_v33  ;;  %v3928_v33 = vld [vmem:[%s4920_s2 + $0x758] sm:$0xff]  }
  0xbc   :  { %3495 = vmatprep.subr.bf16.mxu0 %v3879_v36  ;;  %v3931_v36 = vld [vmem:[%s4920_s2 + $0x760] sm:$0xff]  }
  0xbd   :  { %3516 = vmatpush3.bf16.msra.mxu1 %v3878_v35  ;;  %v3929_v35 = vld [vmem:[%s4920_s2 + $0x718] sm:$0xff]  }
  0xbe   :  { %3517 = vmatprep.subr.bf16.mxu1 %v3881_v38  ;;  %v3932_v38 = vld [vmem:[%s4920_s2 + $0x720] sm:$0xff]  }
  0xbf   :  { %3496 = vmatpush3.bf16.msra.mxu0 %v3880_v37  ;;  %v3930_v37 = vld [vmem:[%s4920_s2 + $0x798] sm:$0xff]  }
  0xc0   :  { %3525 = vmatprep.subr.bf16.mxu0 %v3884_v43 }
  0xc1   :  { %3518 = vmatpush3.bf16.msra.mxu1 %v3883_v41 }
  0xc2   :  { %2544 = vmatmul.mubr.bf16.vlgmr.msra.gmra.mrb[20].mxu0 %v109_v42  ;;  %3547 = vmatprep.subr.bf16.mxu1 %v3887_v49  ;;  %v3933_v42 = vld [vmem:[%s4920_s2 + $0x7a0] sm:$0xff]  }
  0xc3   :  { %3526 = vmatpush3.bf16.msra.mxu0 %v3886_v47  ;;  %2623 = vmatprep.mubr.bf16.mxu0 %v114_v21 }
  0xc4   :  { %2584 = vmatmul.mubr.bf16.vlgmr.msra.gmra.mrb[20].mxu1 %v111_v48  ;;  %3527 = vmatprep.subr.bf16.mxu0 %v3889_v52 }
  0xc5   :  { %3548 = vmatpush3.bf16.msra.mxu1 %v3888_v51  ;;  %2663 = vmatprep.mubr.bf16.mxu1 %v116_v26  ;;  %v3937_v51 = vld [vmem:[%s4920_s2 + $0x770] sm:$0xff]  }
  0xc6   :  { %3549 = vmatprep.subr.bf16.mxu1 %v3891_v54 }
  0xc7   :  { %3528 = vmatpush3.bf16.msra.mxu0 %v3890_v53 }
  0xc8   :  { %3529 = vmatprep.subr.bf16.mxu0 %v3893_v56 }
  0xc9   :  { %3550 = vmatpush3.bf16.msra.mxu1 %v3892_v55  ;;  %v42_v55 = vld [vmem:[%s4918_s0 + $0x70] sm:$0xff] }
  0xca   :  { %3551 = vmatprep.subr.bf16.mxu1 %v3895_v58  ;;  %v3940_v58 = vld [vmem:[%s4920_s2 + $0x778] sm:$0xff]  }
  0xcb   :  { %3530 = vmatpush3.bf16.msra.mxu0 %v3894_v57  ;;  %v3938_v57 = vld [vmem:[%s4920_s2 + $0x730] sm:$0xff]  }
  0xcc   :  { %3531 = vmatprep.subr.bf16.mxu0 %v3897_v60 }
  0xcd   :  { %3552 = vmatpush3.bf16.msra.mxu1 %v3896_v59  ;;  %v73_v59 = vcombine.high %v42_v55, %v42_v55 }
  0xce   :  { %3553 = vmatprep.subr.bf16.mxu1 %v3899_v62 }
  0xcf   :  { %3532 = vmatpush3.bf16.msra.mxu0 %v3898_v61  ;;  %v3939_v61 = vld [vmem:[%s4920_s2 + $0x7b0] sm:$0xff]   ;;  %v118_v62 = vpack.c.bf16 %v73_v59, %v73_v59 }
  0xd0   :  { %3533 = vmatprep.subr.bf16.mxu0 %v3901_v0  ;;  %v3943_v0 = vld [vmem:[%s4920_s2 + $0x7b8] sm:$0xff]  }
  0xd1   :  { %3554 = vmatpush3.bf16.msra.mxu1 %v3900_v63  ;;  %v3941_v63 = vld [vmem:[%s4920_s2 + $0x738] sm:$0xff]  }
  0xd2   :  { %3555 = vmatprep.subr.bf16.mxu1 %v3903_v2  ;;  %v117_v2 = vpack.c.bf16 %v42_v55, %v42_v55 }
  0xd3   :  { %3534 = vmatpush3.bf16.msra.mxu0 %v3902_v1  ;;  %v43_v1 = vld [vmem:[%s4918_s0 + $0x78] sm:$0xf] }
  0xd4   :  { %3535 = vmatprep.subr.bf16.mxu0 %v3905_v4 }
  0xd5   :  { %3556 = vmatpush3.bf16.msra.mxu1 %v3904_v3  ;;  %v119_v3 = vpack.c.bf16 %v43_v1, %v43_v1 }
  0xd6   :  { %3557 = vmatprep.subr.bf16.mxu1 %v3907_v6 }
  0xd7   :  { %3536 = vmatpush3.bf16.msra.mxu0 %v3906_v5 }
  0xd8   :  { %3537 = vmatprep.subr.bf16.mxu0 %v3909_v8 }
  0xd9   :  { %3558 = vmatpush3.bf16.msra.mxu1 %v3908_v7 }
  0xda   :  { %3559 = vmatprep.subr.bf16.mxu1 %v3911_v10 }
  0xdb   :  { %3538 = vmatpush3.bf16.msra.mxu0 %v3910_v9 }
  0xdc   :  { %3539 = vmatprep.subr.bf16.mxu0 %v3913_v12 }
  0xdd   :  { %3560 = vmatpush3.bf16.msra.mxu1 %v3912_v11 }
  0xde   :  { %3561 = vmatprep.subr.bf16.mxu1 %v3915_v14 }
  0xdf   :  { %3540 = vmatpush3.bf16.msra.mxu0 %v3914_v13 }
  0xe0   :  { %3569 = vmatprep.subr.bf16.mxu0 %v3918_v19 }
  0xe1   :  { %3562 = vmatpush3.bf16.msra.mxu1 %v3917_v17 }
  0xe2   :  { %3618 = vmatprep.subr.bf16.mxu1 %v3984_v27  ;;  %2624 = vmatmul.mubr.bf16.vlgmr.msra.gmra.mrb[24].mxu0 %v113_v18 }
  0xe3   :  { %3570 = vmatpush3.bf16.msra.mxu0 %v3920_v23  ;;  %2703 = vmatprep.mubr.bf16.mxu0 %v118_v62 }
  0xe4   :  { %2664 = vmatmul.mubr.bf16.vlgmr.msra.gmra.mrb[24].mxu1 %v115_v24  ;;  %3571 = vmatprep.subr.bf16.mxu0 %v3922_v28 }
  0xe5   :  { %3619 = vmatpush3.bf16.msra.mxu1 %v3921_v25  ;;  %3634 = vmatprep.mubr.msk.bf16.mxu1 %vm3985_vm0, %v3984_v27 }
  0xe6   :  { %3620 = vmatprep.subr.bf16.mxu1 %v3984_v27 }
  0xe7   :  { %3572 = vmatpush3.bf16.msra.mxu0 %v3923_v29 }
  0xe8   :  { %3573 = vmatprep.subr.bf16.mxu0 %v3925_v30 }
  0xe9   :  { %3621 = vmatpush3.bf16.msra.mxu1 %v3924_v31 }
  0xea   :  { %3622 = vmatprep.subr.bf16.mxu1 %v3984_v27 }
  0xeb   :  { %3574 = vmatpush3.bf16.msra.mxu0 %v3926_v32 }
  0xec   :  { %3575 = vmatprep.subr.bf16.mxu0 %v3928_v33 }
  0xed   :  { %3623 = vmatpush3.bf16.msra.mxu1 %v3927_v34 }
  0xee   :  { %3624 = vmatprep.subr.bf16.mxu1 %v3984_v27 }
  0xef   :  { %3576 = vmatpush3.bf16.msra.mxu0 %v3929_v35 }
  0xf0   :  { %3577 = vmatprep.subr.bf16.mxu0 %v3931_v36 }
  0xf1   :  { %3625 = vmatpush3.bf16.msra.mxu1 %v3930_v37 }
  0xf2   :  { %3626 = vmatprep.subr.bf16.mxu1 %v3984_v27 }
  0xf3   :  { %3578 = vmatpush3.bf16.msra.mxu0 %v3932_v38 }
  0xf4   :  { %3579 = vmatprep.subr.bf16.mxu0 %v3934_v40 }
  0xf5   :  { %v3277_v41 = vpop.f32.mrb[0].mxu0  ;;  %3627 = vmatpush3.bf16.msra.mxu1 %v3933_v42 }
  0xf6   :  { %v3278_v43 = vpop.f32.mrb[1].mxu0  ;;  %3628 = vmatprep.subr.bf16.mxu1 %v3984_v27 }
  0xf7   :  { %v3279_v45 = vadd.f32 %v3278_v43, %v3277_v41  ;;  %v3280_v46 = vpop.f32.mrb[2].mxu0  ;;  %v3299_v47 = vpop.f32.mrb[0].mxu1  ;;  %3580 = vmatpush3.bf16.msra.mxu0 %v3935_v44 }
  0xf8   :  { %v3281_v48 = vpop.f32.mrb[3].mxu0  ;;  %v3300_v49 = vpop.f32.mrb[1].mxu1  ;;  %3581 = vmatprep.subr.bf16.mxu0 %v3937_v51 }
  0xf9   :  { %v2146_v52 = vadd.f32 %v3279_v45, %v2994_v39  ;;  %v3301_v53 = vadd.f32 %v3300_v49, %v3299_v47  ;;  %v3302_v54 = vpop.f32.mrb[2].mxu1  ;;  %3629 = vmatpush3.bf16.msra.mxu1 %v3936_v50 }
  0xfa   :  { %v3303_v56 = vpop.f32.mrb[3].mxu1  ;;  %3630 = vmatprep.subr.bf16.mxu1 %v3984_v27 }
  0xfb   :  { %v2186_v60 = vadd.f32 %v3301_v53, %v2146_v52  ;;  %3582 = vmatpush3.bf16.msra.mxu0 %v3938_v57 }
  0xfc   :  { %3583 = vmatprep.subr.bf16.mxu0 %v3940_v58 }
  0xfd   :  { %3631 = vmatpush3.bf16.msra.mxu1 %v3939_v61 }
  0xfe   :  { %3632 = vmatprep.subr.bf16.mxu1 %v3984_v27 }
  0xff   :  { %3584 = vmatpush3.bf16.msra.mxu0 %v3941_v63 }
 0x100   :  { %3638 = vmatprep.subr.bf16.mxu0 %v3984_v27 }
 0x101   :  { %3633 = vmatpush3.bf16.msra.mxu1 %v3943_v0 }
 0x102   :  { %12 = vsyncpa [#allocation3], 0  ;;  %2704 = vmatmul.mubr.bf16.vlgmr.msra.gmra.mrb[28].mxu0 %v117_v2  ;;  %3658 = vmatprep.subr.bf16.mxu1 %v3984_v27  ;;  %v3944_v29 = vld [vmem:[%s4923_s5] sm:$0xff]   ;;  %v3946_v31 = vld [vmem:[%s4923_s5 + $0x8] sm:$0xff]   ;;  %vm2927_vm1 = vcmask 1045504   ;;  %vm2923_vm2 = vcmask 1014784  }
 0x103   :  { %3654 = vmatprep.mubr.msk.bf16.mxu0 %vm3985_vm0, %v3984_v27  ;;  %v3945_v30 = vld [vmem:[%s4922_s4] sm:$0xff]   ;;  %3639 = vmatpush3.bf16.msra.mxu0 %v3944_v29  ;;  %v3947_v32 = vld [vmem:[%s4922_s4 + $0x8] sm:$0xff]   ;;  %v3948_v33 = vld [vmem:[%s4923_s5 + $0x10] sm:$0xff]  }
 0x104   :  { %3635 = vmatmul.mubr.bf16.vlgmr.msra.gmra.mrb[28].mxu1 %v119_v3  ;;  %3640 = vmatprep.subr.bf16.mxu0 %v3984_v27  ;;  %v3949_v34 = vld [vmem:[%s4922_s4 + $0x10] sm:$0xff]   ;;  %v3950_v35 = vld [vmem:[%s4923_s5 + $0x18] sm:$0xff]   ;;  %v3952_v37 = vld [vmem:[%s4923_s5 + $0x20] sm:$0xff]  }
 0x105   :  { %3674 = vmatprep.mubr.msk.bf16.mxu1 %vm3985_vm0, %v3984_v27  ;;  %3659 = vmatpush3.bf16.msra.mxu1 %v3945_v30  ;;  %v3951_v36 = vld [vmem:[%s4922_s4 + $0x18] sm:$0xff]   ;;  %v3953_v38 = vld [vmem:[%s4922_s4 + $0x20] sm:$0xff]   ;;  %v3954_v39 = vld [vmem:[%s4923_s5 + $0x28] sm:$0xff]  }
 0x106   :  { %3660 = vmatprep.subr.bf16.mxu1 %v3984_v27  ;;  %v3955_v42 = vld [vmem:[%s4922_s4 + $0x28] sm:$0xff]   ;;  %v3956_v46 = vld [vmem:[%s4923_s5 + $0x30] sm:$0xff]   ;;  %v3958_v55 = vld [vmem:[%s4923_s5 + $0x38] sm:$0xff]   ;;  %s3986_s5 = smov [#allocation2]  }
 0x107   :  { %3641 = vmatpush3.bf16.msra.mxu0 %v3946_v31  ;;  %v3957_v53 = vld [vmem:[%s4922_s4 + $0x30] sm:$0xff]   ;;  %v2753_v56 = vld [vmem:[%s4919_s1] sm:$0xf]  ;;  %v3959_v58 = vld [vmem:[%s4922_s4 + $0x38] sm:$0x3f]   ;;  %s2986_s3 = sshll.u32 %s3986_s5, 4  ;;  %s2987_s3 = int_to_ptr.vmem [resolvable:$true] %s2986_s3 }
 0x108   :  { %3642 = vmatprep.subr.bf16.mxu0 %v3984_v27  ;;  %v2754_v57 = vmax.f32 %v2753_v56, 0.0  ;;  %s3960_s30 = scalar_lea.vmem %s2987_s3, 64  ;;  %p3965_p1 = scmp.lt.s32.totalorder %s2987_s3, %s2987_s3 }
 0x109   :  { %3661 = vmatpush3.bf16.msra.mxu1 %v3947_v32  ;;  %p3961_p0 = scmp.ne.s32.totalorder %s2987_s3, %s3960_s30  ;;  %p3966_p2 = scmp.lt.s32.totalorder %s3960_s30, %s3960_s30 }
 0x10a   :  { %3662 = vmatprep.subr.bf16.mxu1 %v3984_v27  ;;  %v2755_v59 = vpack.c.bf16 %v2754_v57, %v2754_v57 }
 0x10b   :  { %3643 = vmatpush3.bf16.msra.mxu0 %v3948_v33  ;;  %p3967_p3 = por %p3966_p2, %p3965_p1 }
 0x10c   :  { %3644 = vmatprep.subr.bf16.mxu0 %v3984_v27 }
 0x10d   :  { %3663 = vmatpush3.bf16.msra.mxu1 %v3949_v34  ;;  %p3968_p4 = pnand %p3967_p3, %p3961_p0 }
 0x10e   :  { %3664 = vmatprep.subr.bf16.mxu1 %v3984_v27 }
 0x10f   :  { %3645 = vmatpush3.bf16.msra.mxu0 %v3950_v35 }
 0x110   :  { %3646 = vmatprep.subr.bf16.mxu0 %v3984_v27 }
 0x111   :  { %3665 = vmatpush3.bf16.msra.mxu1 %v3951_v36 }
 0x112   :  { %3666 = vmatprep.subr.bf16.mxu1 %v3984_v27 }
 0x113   :  { %3647 = vmatpush3.bf16.msra.mxu0 %v3952_v37 }
 0x114   :  { %3648 = vmatprep.subr.bf16.mxu0 %v3984_v27 }
 0x115   :  { %v3321_v4 = vpop.f32.mrb[4].mxu0  ;;  %3667 = vmatpush3.bf16.msra.mxu1 %v3953_v38 }
 0x116   :  { %v3322_v5 = vpop.f32.mrb[5].mxu0  ;;  %3668 = vmatprep.subr.bf16.mxu1 %v3984_v27 }
 0x117   :  { %v3323_v6 = vadd.f32 %v3322_v5, %v3321_v4  ;;  %v3324_v7 = vpop.f32.mrb[6].mxu0  ;;  %v3343_v8 = vpop.f32.mrb[4].mxu1  ;;  %3649 = vmatpush3.bf16.msra.mxu0 %v3954_v39 }
 0x118   :  { %v3325_v9 = vpop.f32.mrb[7].mxu0  ;;  %v3344_v11 = vpop.f32.mrb[5].mxu1  ;;  %3650 = vmatprep.subr.bf16.mxu0 %v3984_v27 }
 0x119   :  { %v2226_v10 = vadd.f32 %v3323_v6, %v2186_v60  ;;  %v3345_v12 = vadd.f32 %v3344_v11, %v3343_v8  ;;  %v3346_v13 = vpop.f32.mrb[6].mxu1  ;;  %3669 = vmatpush3.bf16.msra.mxu1 %v3955_v42  ;;  %v2929_v60 = vsel %vm2927_vm1, %v3959_v58, 0 }
 0x11a   :  { %v3347_v14 = vpop.f32.mrb[7].mxu1  ;;  %3670 = vmatprep.subr.bf16.mxu1 %v3984_v27 }
 0x11b   :  { %v2266_v15 = vadd.f32 %v3345_v12, %v2226_v10  ;;  %3651 = vmatpush3.bf16.msra.mxu0 %v3956_v46 }
 0x11c   :  { %3652 = vmatprep.subr.bf16.mxu0 %v3984_v27 }
 0x11d   :  { %3671 = vmatpush3.bf16.msra.mxu1 %v3957_v53 }
 0x11e   :  { %3672 = vmatprep.subr.bf16.mxu1 %v3984_v27 }
 0x11f   :  { %3653 = vmatpush3.bf16.msra.mxu0 %v3958_v55 }
 0x121   :  { %3673 = vmatpush3.bf16.msra.mxu1 %v2929_v60 }
 0x122   :  { %3655 = vmatmul.mubr.bf16.vlgmr.msra.gmra.mrb[32].mxu0 %v2755_v59 }
 0x135   :  { %v3365_v16 = vpop.f32.mrb[8].mxu0 }
 0x136   :  { %v3366_v17 = vpop.f32.mrb[9].mxu0 }
 0x137   :  { %v3367_v18 = vadd.f32 %v3366_v17, %v3365_v16  ;;  %v3368_v19 = vpop.f32.mrb[10].mxu0  ;;  %v3387_v20 = vpop.f32.mrb[8].mxu1 }
 0x138   :  { %v3369_v21 = vpop.f32.mrb[11].mxu0  ;;  %v3388_v22 = vpop.f32.mrb[9].mxu1 }
 0x139   :  { %v2306_v23 = vadd.f32 %v3367_v18, %v2266_v15  ;;  %v3389_v24 = vadd.f32 %v3388_v22, %v3387_v20  ;;  %v3390_v25 = vpop.f32.mrb[10].mxu1 }
 0x13a   :  { %v3391_v26 = vpop.f32.mrb[11].mxu1 }
 0x13b   :  { %v2346_v28 = vadd.f32 %v3389_v24, %v2306_v23 }
 0x155   :  { %v3409_v40 = vpop.f32.mrb[12].mxu0 }
 0x156   :  { %v3410_v41 = vpop.f32.mrb[13].mxu0 }
 0x157   :  { %v3411_v43 = vadd.f32 %v3410_v41, %v3409_v40  ;;  %v3412_v44 = vpop.f32.mrb[14].mxu0  ;;  %v3431_v45 = vpop.f32.mrb[12].mxu1 }
 0x158   :  { %v3413_v47 = vpop.f32.mrb[15].mxu0  ;;  %v3432_v48 = vpop.f32.mrb[13].mxu1 }
 0x159   :  { %v2386_v49 = vadd.f32 %v3411_v43, %v2346_v28  ;;  %v3433_v50 = vadd.f32 %v3432_v48, %v3431_v45  ;;  %v3434_v51 = vpop.f32.mrb[14].mxu1 }
 0x15a   :  { %v3435_v52 = vpop.f32.mrb[15].mxu1  ;;  %v3260_v51 = vld [vmem:[%s4924_s6] ss:$0 sm:$0xff] }
 0x15b   :  { %v2426_v54 = vadd.f32 %v3433_v50, %v2386_v49 }
 0x175   :  { %v3453_v61 = vpop.f32.mrb[16].mxu0 }
 0x176   :  { %v3454_v62 = vpop.f32.mrb[17].mxu0 }
 0x177   :  { %v3455_v63 = vadd.f32 %v3454_v62, %v3453_v61  ;;  %v3456_v0 = vpop.f32.mrb[18].mxu0  ;;  %v3475_v1 = vpop.f32.mrb[16].mxu1 }
 0x178   :  { %v3457_v2 = vpop.f32.mrb[19].mxu0  ;;  %v3476_v4 = vpop.f32.mrb[17].mxu1 }
 0x179   :  { %v2466_v3 = vadd.f32 %v3455_v63, %v2426_v54  ;;  %v3477_v5 = vadd.f32 %v3476_v4, %v3475_v1  ;;  %v3478_v6 = vpop.f32.mrb[18].mxu1 }
 0x17a   :  { %v3479_v27 = vpop.f32.mrb[19].mxu1 }
 0x17b   :  { %v2506_v7 = vadd.f32 %v3477_v5, %v2466_v3 }
 0x195   :  { %v3497_v8 = vpop.f32.mrb[20].mxu0 }
 0x196   :  { %v3498_v9 = vpop.f32.mrb[21].mxu0 }
 0x197   :  { %v3499_v10 = vadd.f32 %v3498_v9, %v3497_v8  ;;  %v3500_v11 = vpop.f32.mrb[22].mxu0  ;;  %v3519_v12 = vpop.f32.mrb[20].mxu1 }
 0x198   :  { %v3501_v13 = vpop.f32.mrb[23].mxu0  ;;  %v3520_v14 = vpop.f32.mrb[21].mxu1 }
 0x199   :  { %v2546_v15 = vadd.f32 %v3499_v10, %v2506_v7  ;;  %v3521_v16 = vadd.f32 %v3520_v14, %v3519_v12  ;;  %v3522_v17 = vpop.f32.mrb[22].mxu1 }
 0x19a   :  { %v3523_v18 = vpop.f32.mrb[23].mxu1 }
 0x19b   :  { %v2586_v19 = vadd.f32 %v3521_v16, %v2546_v15 }
 0x1b5   :  { %v3541_v20 = vpop.f32.mrb[24].mxu0 }
 0x1b6   :  { %v3542_v21 = vpop.f32.mrb[25].mxu0 }
 0x1b7   :  { %v3543_v22 = vadd.f32 %v3542_v21, %v3541_v20  ;;  %v3544_v23 = vpop.f32.mrb[26].mxu0  ;;  %v3563_v24 = vpop.f32.mrb[24].mxu1 }
 0x1b8   :  { %v3545_v25 = vpop.f32.mrb[27].mxu0  ;;  %v3564_v26 = vpop.f32.mrb[25].mxu1 }
 0x1b9   :  { %v2626_v28 = vadd.f32 %v3543_v22, %v2586_v19  ;;  %v3565_v29 = vadd.f32 %v3564_v26, %v3563_v24  ;;  %v3566_v30 = vpop.f32.mrb[26].mxu1 }
 0x1ba   :  { %v3567_v31 = vpop.f32.mrb[27].mxu1 }
 0x1bb   :  { %v2666_v32 = vadd.f32 %v3565_v29, %v2626_v28 }
 0x1d5   :  { %v3585_v33 = vpop.f32.mrb[28].mxu0 }
 0x1d6   :  { %v3586_v34 = vpop.f32.mrb[29].mxu0 }
 0x1d7   :  { %v3587_v35 = vadd.f32 %v3586_v34, %v3585_v33  ;;  %v3588_v36 = vpop.f32.mrb[30].mxu0  ;;  %v2745_v37 = vpop.f32.mrb[28].mxu1 }
 0x1d8   :  { %v3589_v38 = vpop.f32.mrb[31].mxu0  ;;  %v3636_v39 = vpop.f32.mrb[29].mxu1 }
 0x1d9   :  { %v2706_v40 = vadd.f32 %v3587_v35, %v2666_v32  ;;  %v2748_v41 = vpop.f32.mrb[30].mxu1 }
 0x1da   :  { %v3637_v42 = vpop.f32.mrb[31].mxu1 }
 0x1db   :  { %v2746_v43 = vadd.f32 %v2745_v37, %v2706_v40 }
 0x1dd   :  { %v2751_v44 = vmax.f32 %v2746_v43, 0.0 }
 0x1df   :  { %v2752_v45 = vpack.c.bf16 %v2751_v44, %v2751_v44 }
 0x1e1   :  { %3675 = vmatmul.mubr.msk.bf16.vlgmr.msra.gmra.mrb[32].mxu1 %vm2923_vm2, %v2752_v45 }
 0x1f5   :  { %v2870_v46 = vpop.f32.mrb[32].mxu0 }
 0x1f6   :  { %v3656_v47 = vpop.f32.mrb[33].mxu0 }
 0x1f7   :  { %v2873_v48 = vpop.f32.mrb[34].mxu0 }
 0x1f8   :  { %v3657_v49 = vpop.f32.mrb[35].mxu0 }
 0x2b4   :  { %v2965_v50 = vpop.f32.mrb[32].mxu1 }
 0x2b5   :  { %v2966_v52 = vadd.f32 %v2965_v50, %v2870_v46  ;;  %v3676_v53 = vpop.f32.mrb[33].mxu1 }
 0x2b6   :  { %v2968_v54 = vpop.f32.mrb[34].mxu1 }
 0x2b7   :  { %v3677_v55 = vpop.f32.mrb[35].mxu1  ;;  %v2978_v56 = vadd.f32 %v3260_v51, %v2966_v52 }
 0x2b9   :  { %2979 = vst [vmem:[#allocation2] sm:$0xf] %v2978_v56 }
 0x2ba   :  { %3971 = shalt.err (!%p3968_p4)
}
 0x2bb   :  { %s3972_s6 = scalar_lea.hbm %s4925_s7, 64 }
 0x2bc   :  { %p3973_p5 = scmp.ne.s32.totalorder %s4925_s7, %s3972_s6  ;;  %p3976_p6 = scmp.lt.u32.totalorder %s3972_s6, %s4925_s7 }
 0x2be   :  { %p3978_p7 = pnand %p3976_p6, %p3973_p5 }
 0x2c0   :  { %3981 = shalt.err (!%p3978_p7)
}
 0x2c1   :  { %2989 = dma.vmem_to_hbm [thread:$0]  %s2987_s3, 64, %s4925_s7, [#allocation3]  }
 0x2c2   :  { %3982 = dma.done.wait [#allocation3], 64  }
 0x2c3   :  { %3983 = vsyncadd [#allocation3], 4294967232 }
 0x2c4   :  { %2993 = vsyncpa [#allocation3], 1 }

</bundles_post_ra>
